<compile_context>
chip_gen: v7x
topology: tpu7x:2x2x1
jax: 0.10.0
libtpu: 0.0.40
codegen_flags: <defaults>
</compile_context>

<pallas_src>
import functools

import jax
import jax.numpy as jnp
from jax.experimental import pallas as pl
from jax.experimental.pallas import tpu as pltpu


# ----------------------------------------------------------------------------
# Fused matmul + bias + activation kernel (MXU path)
# ----------------------------------------------------------------------------

def _fused_matmul_kernel(p_ref, w_ref, b_ref, o_ref, *, act):
    # w: (Cout, K) bf16, p: (K, Mtile) bf16 -> f32 accumulation on the MXU.
    acc = jnp.dot(w_ref[...], p_ref[...], preferred_element_type=jnp.float32)
    acc = acc + b_ref[...]
    if act == "leaky_relu":
        acc = jnp.where(acc >= 0, acc, 0.2 * acc)
    elif act == "tanh":
        acc = jnp.tanh(acc)
    elif act != "none":
        raise ValueError(act)
    o_ref[...] = acc.astype(o_ref.dtype)


def _pick_m_tile(M):
    for t in (1024, 512, 256, 128):
        if M % t == 0:
            return t
    return M


def fused_matmul(patches, weights, bias, act, out_dtype=jnp.bfloat16):
    """act(weights @ patches + bias).  patches: (K, M), weights: (Cout, K)."""
    K, M = patches.shape
    Cout = weights.shape[0]
    tm = _pick_m_tile(M)
    bias2 = bias.reshape(Cout, 1).astype(jnp.float32)
    return pl.pallas_call(
        functools.partial(_fused_matmul_kernel, act=act),
        out_shape=jax.ShapeDtypeStruct((Cout, M), out_dtype),
        grid=(M // tm,),
        in_specs=[
            pl.BlockSpec((K, tm), lambda i: (0, i)),
            pl.BlockSpec((Cout, K), lambda i: (0, 0)),
            pl.BlockSpec((Cout, 1), lambda i: (0, 0)),
        ],
        out_specs=pl.BlockSpec((Cout, tm), lambda i: (0, i)),
        compiler_params=pltpu.CompilerParams(
            dimension_semantics=("parallel",)),
        cost_estimate=pl.CostEstimate(
            flops=2 * Cout * K * M,
            transcendentals=(Cout * M if act == "tanh" else 0),
            bytes_accessed=2 * (K * M + Cout * K) + 4 * Cout * M),
    )(patches.astype(jnp.bfloat16), weights.astype(jnp.bfloat16), bias2)


# ----------------------------------------------------------------------------
# 3x3 / stride 1 / pad 1 convolution (patch panel + fused MXU matmul)
# ----------------------------------------------------------------------------

def conv3x3(x_cnhw, w, b, act, out_dtype=jnp.bfloat16):
    """x: (Cin, N, H, W), w: (Cout, Cin, 3, 3).  Returns (Cout, N*H*W) panel."""
    Cin, N_, H, W = x_cnhw.shape
    Cout = w.shape[0]
    xp = jnp.pad(x_cnhw, ((0, 0), (0, 0), (1, 1), (1, 1)))
    # TODO(synk): at production resolutions replace this host-side 9-tap patch
    # panel (9x HBM blowup) with in-kernel tap accumulation over a K grid axis.
    taps = [xp[:, :, kh:kh + H, kw:kw + W] for kh in range(3) for kw in range(3)]
    patches = jnp.stack(taps, axis=1).reshape(Cin * 9, N_ * H * W)
    wm = w.reshape(Cout, Cin * 9)           # K index = ci*9 + kh*3 + kw (matches stack)
    return fused_matmul(patches, wm, b, act, out_dtype)


# ----------------------------------------------------------------------------
# avg_pool -> nearest upsample -> LeakyReLU, fused as block-averaging matmuls
# ----------------------------------------------------------------------------

def build_pool_matrices(H, W, ks):
    """P_k[hw_in, hw_out] = 1/k^2 if both pixels fall in the same kxk block."""
    hw = jnp.arange(H * W)
    h = hw // W
    w = hw % W
    mats = []
    for k in ks:
        same = (h[:, None] // k == h[None, :] // k) & (w[:, None] // k == w[None, :] // k)
        mats.append(same.astype(jnp.float32) / float(k * k))
    return jnp.stack(mats, axis=0)          # (4, HW, HW)


def _pool_branch_kernel(s_ref, p_ref, o_ref):
    # s: (1, N, HW), p: (1, HW, HW) block-averaging matrix.
    y = jnp.dot(s_ref[0], p_ref[0], preferred_element_type=jnp.float32)
    y = jnp.where(y >= 0, y, 0.2 * y)       # LeakyReLU(0.2) after pooling
    o_ref[0] = y.astype(o_ref.dtype)


def pool_upsample_branches(s_panel, pool_mats, N_, H, W):
    """s_panel: (4, N*H*W) 1x1-conv outputs.  Returns (4, N*H*W) branch maps."""
    HW = H * W
    s = s_panel.reshape(4, N_, HW).astype(jnp.bfloat16)
    out = pl.pallas_call(
        _pool_branch_kernel,
        out_shape=jax.ShapeDtypeStruct((4, N_, HW), jnp.bfloat16),
        grid=(4,),
        in_specs=[
            pl.BlockSpec((1, N_, HW), lambda j: (j, 0, 0)),
            pl.BlockSpec((1, HW, HW), lambda j: (j, 0, 0)),
        ],
        out_specs=pl.BlockSpec((1, N_, HW), lambda j: (j, 0, 0)),
        compiler_params=pltpu.CompilerParams(
            dimension_semantics=("parallel",)),
    )(s, pool_mats.astype(jnp.bfloat16))
    return out.reshape(4, N_ * HW)


# ----------------------------------------------------------------------------
# RefinerBlock forward
# ----------------------------------------------------------------------------

def refiner_block(params, x_nchw):
    N_, Cin, H, W = x_nchw.shape
    x = jnp.transpose(x_nchw, (1, 0, 2, 3)).astype(jnp.bfloat16)      # (Cin, N, H, W)

    # refine1 / refine2: 3x3 conv with LeakyReLU(0.2) fused into the epilogue.
    h1 = conv3x3(x, params["w1"], params["b1"], act="leaky_relu")      # (20, M)
    h1 = h1.reshape(20, N_, H, W)
    h2 = conv3x3(h1, params["w2"], params["b2"], act="leaky_relu")     # (20, M)

    # Four pooling branches.  conv1x1 commutes with avg_pool, so apply the
    # combined (4, 20) 1x1 conv first, then fused pool+upsample+LeakyReLU.
    s = fused_matmul(h2, params["wp"], params["bp"], act="none")       # (4, M)
    branches = pool_upsample_branches(s, params["pool_mats"], N_, H, W)

    # Channel concat order matches torch.cat((x1010, x1020, x1030, x1040, output), 1).
    feat = jnp.concatenate([branches, h2], axis=0).reshape(24, N_, H, W)

    out = conv3x3(feat, params["w3"], params["b3"], act="tanh", out_dtype=jnp.float32)
    out = out.reshape(-1, N_, H, W).transpose(1, 0, 2, 3)              # (N, Cout, H, W)
    return out


# ----------------------------------------------------------------------------
# Main
# ----------------------------------------------------------------------------

if __name__ == "__main__":
    key = jax.random.PRNGKey(0)
    kx, k1, k2, k3, k4, k5, k6, k7, k8 = jax.random.split(key, 9)

    # H = W = 32 is the smallest spatial size F.avg_pool2d(out, 32) accepts.
    N_, input_nc, H, W = 2, 4, 32, 32
    output_nc = 3

    params = {
        "w1": 0.1 * jax.random.normal(k1, (20, input_nc, 3, 3), jnp.float32),
        "b1": 0.05 * jax.random.normal(k2, (20,), jnp.float32),
        "w2": 0.1 * jax.random.normal(k3, (20, 20, 3, 3), jnp.float32),
        "b2": 0.05 * jax.random.normal(k4, (20,), jnp.float32),
        # conv1010 / conv1020 / conv1030 / conv1040 (each 20 -> 1) stacked into one matrix.
        "wp": 0.1 * jax.random.normal(k5, (4, 20), jnp.float32),
        "bp": 0.05 * jax.random.normal(k6, (4,), jnp.float32),
        "w3": 0.1 * jax.random.normal(k7, (output_nc, 24, 3, 3), jnp.float32),
        "b3": 0.05 * jax.random.normal(k8, (output_nc,), jnp.float32),
        "pool_mats": build_pool_matrices(H, W, (32, 16, 8, 4)),
    }

    x = jax.random.uniform(kx, (N_, input_nc, H, W), jnp.float32, minval=-1.0, maxval=1.0)

    fwd = jax.jit(refiner_block)
    out = fwd(params, x)
    jax.block_until_ready(out)

    assert out.shape == (N_, output_nc, H, W)
    print("KERNEL_OK")
</pallas_src>

<mosaic_0001>
module attributes {stable_mosaic.version = 11 : i64} {
  func.func @_fused_matmul_kernel(%arg0: i32, %arg1: memref<36x1024xbf16, #tpu.memory_space<vmem>>, %arg2: memref<20x36xbf16, #tpu.memory_space<vmem>>, %arg3: memref<20x1xf32, #tpu.memory_space<vmem>>, %arg4: memref<20x1024xbf16, #tpu.memory_space<vmem>>) attributes {dimension_semantics = [#tpu.dimension_semantics<parallel>], iteration_bounds = array<i64: 2>, scalar_prefetch = 0 : i64, scratch_operands = 0 : i64, tpu.core_type = #tpu.core_type<tc>, window_params = [{transform_indices = @transform_0, window_bounds = array<i64: 36, 1024>}, {pipeline_mode = #tpu.pipeline_mode<synchronous>, transform_indices = @transform_1, window_bounds = array<i64: 20, 36>}, {pipeline_mode = #tpu.pipeline_mode<synchronous>, transform_indices = @transform_2, window_bounds = array<i64: 20, 1>}, {transform_indices = @transform_3, window_bounds = array<i64: 20, 1024>}]} {
    %c0 = arith.constant 0 : index
    %c0_0 = arith.constant 0 : index
    %0 = vector.load %arg2[%c0, %c0_0] : memref<20x36xbf16, #tpu.memory_space<vmem>>, vector<20x36xbf16>
    %c0_1 = arith.constant 0 : index
    %c0_2 = arith.constant 0 : index
    %1 = vector.load %arg1[%c0_1, %c0_2] : memref<36x1024xbf16, #tpu.memory_space<vmem>>, vector<36x1024xbf16>
    %cst = arith.constant dense<0.000000e+00> : vector<20x1024xf32>
    %2 = tpu.matmul %0, %1, %cst {dimension_numbers = #tpu.dot_dimension_numbers<[1], [0], [0], [1], [0, 0, 1, 1], [], []>} : vector<20x36xbf16>, vector<36x1024xbf16>, vector<20x1024xf32> -> vector<20x1024xf32>
    %c0_3 = arith.constant 0 : index
    %c0_4 = arith.constant 0 : index
    %3 = vector.load %arg3[%c0_3, %c0_4] : memref<20x1xf32, #tpu.memory_space<vmem>>, vector<20x1xf32>
    %4 = vector.broadcast %3 : vector<20x1xf32> to vector<20x1024xf32>
    %5 = arith.addf %2, %4 : vector<20x1024xf32>
    %cst_5 = arith.constant 0.000000e+00 : f32
    %6 = vector.broadcast %cst_5 : f32 to vector<20x1024xf32>
    %7 = arith.cmpf oge, %5, %6 : vector<20x1024xf32>
    %cst_6 = arith.constant 2.000000e-01 : f32
    %8 = vector.broadcast %cst_6 : f32 to vector<20x1024xf32>
    %9 = arith.mulf %8, %5 : vector<20x1024xf32>
    %10 = arith.select %7, %5, %9 : vector<20x1024xi1>, vector<20x1024xf32>
    %11 = arith.truncf %10 : vector<20x1024xf32> to vector<20x1024xbf16>
    %c0_7 = arith.constant 0 : index
    %c0_8 = arith.constant 0 : index
    %12 = vector.load %arg4[%c0_7, %c0_8] : memref<20x1024xbf16, #tpu.memory_space<vmem>>, vector<20x1024xbf16>
    tpu.vector_store %arg4[%c0_7, %c0_8], %11 {strides = array<i32>} : memref<20x1024xbf16, #tpu.memory_space<vmem>>, vector<20x1024xbf16>,
    return
  }
  func.func @transform_0(%arg0: i32) -> (i32, i32) {
    %c0_i32 = arith.constant 0 : i32
    %c0_i32_0 = arith.constant 0 : i32
    return %c0_i32, %arg0 : i32, i32
  }
  func.func @transform_1(%arg0: i32) -> (i32, i32) {
    %c0_i32 = arith.constant 0 : i32
    %c0_i32_0 = arith.constant 0 : i32
    %c0_i32_1 = arith.constant 0 : i32
    return %c0_i32, %c0_i32_0 : i32, i32
  }
  func.func @transform_2(%arg0: i32) -> (i32, i32) {
    %c0_i32 = arith.constant 0 : i32
    %c0_i32_0 = arith.constant 0 : i32
    %c0_i32_1 = arith.constant 0 : i32
    return %c0_i32, %c0_i32_0 : i32, i32
  }
  func.func @transform_3(%arg0: i32) -> (i32, i32) {
    %c0_i32 = arith.constant 0 : i32
    %c0_i32_0 = arith.constant 0 : i32
    return %c0_i32, %arg0 : i32, i32
  }
}

module attributes {stable_mosaic.version = 11 : i64} {
  func.func @_fused_matmul_kernel(%arg0: i32, %arg1: memref<20x1024xbf16, #tpu.memory_space<vmem>>, %arg2: memref<4x20xbf16, #tpu.memory_space<vmem>>, %arg3: memref<4x1xf32, #tpu.memory_space<vmem>>, %arg4: memref<4x1024xbf16, #tpu.memory_space<vmem>>) attributes {dimension_semantics = [#tpu.dimension_semantics<parallel>], iteration_bounds = array<i64: 2>, scalar_prefetch = 0 : i64, scratch_operands = 0 : i64, tpu.core_type = #tpu.core_type<tc>, window_params = [{transform_indices = @transform_0, window_bounds = array<i64: 20, 1024>}, {pipeline_mode = #tpu.pipeline_mode<synchronous>, transform_indices = @transform_1, window_bounds = array<i64: 4, 20>}, {pipeline_mode = #tpu.pipeline_mode<synchronous>, transform_indices = @transform_2, window_bounds = array<i64: 4, 1>}, {transform_indices = @transform_3, window_bounds = array<i64: 4, 1024>}]} {
    %c0 = arith.constant 0 : index
    %c0_0 = arith.constant 0 : index
    %0 = vector.load %arg2[%c0, %c0_0] : memref<4x20xbf16, #tpu.memory_space<vmem>>, vector<4x20xbf16>
    %c0_1 = arith.constant 0 : index
    %c0_2 = arith.constant 0 : index
    %1 = vector.load %arg1[%c0_1, %c0_2] : memref<20x1024xbf16, #tpu.memory_space<vmem>>, vector<20x1024xbf16>
    %cst = arith.constant dense<0.000000e+00> : vector<4x1024xf32>
    %2 = tpu.matmul %0, %1, %cst {dimension_numbers = #tpu.dot_dimension_numbers<[1], [0], [0], [1], [0, 0, 1, 1], [], []>} : vector<4x20xbf16>, vector<20x1024xbf16>, vector<4x1024xf32> -> vector<4x1024xf32>
    %c0_3 = arith.constant 0 : index
    %c0_4 = arith.constant 0 : index
    %3 = vector.load %arg3[%c0_3, %c0_4] : memref<4x1xf32, #tpu.memory_space<vmem>>, vector<4x1xf32>
    %4 = vector.broadcast %3 : vector<4x1xf32> to vector<4x1024xf32>
    %5 = arith.addf %2, %4 : vector<4x1024xf32>
    %6 = arith.truncf %5 : vector<4x1024xf32> to vector<4x1024xbf16>
    %c0_5 = arith.constant 0 : index
    %c0_6 = arith.constant 0 : index
    %7 = vector.load %arg4[%c0_5, %c0_6] : memref<4x1024xbf16, #tpu.memory_space<vmem>>, vector<4x1024xbf16>
    tpu.vector_store %arg4[%c0_5, %c0_6], %6 {strides = array<i32>} : memref<4x1024xbf16, #tpu.memory_space<vmem>>, vector<4x1024xbf16>,
    return
  }
  func.func @transform_0(%arg0: i32) -> (i32, i32) {
    %c0_i32 = arith.constant 0 : i32
    %c0_i32_0 = arith.constant 0 : i32
    return %c0_i32, %arg0 : i32, i32
  }
  func.func @transform_1(%arg0: i32) -> (i32, i32) {
    %c0_i32 = arith.constant 0 : i32
    %c0_i32_0 = arith.constant 0 : i32
    %c0_i32_1 = arith.constant 0 : i32
    return %c0_i32, %c0_i32_0 : i32, i32
  }
  func.func @transform_2(%arg0: i32) -> (i32, i32) {
    %c0_i32 = arith.constant 0 : i32
    %c0_i32_0 = arith.constant 0 : i32
    %c0_i32_1 = arith.constant 0 : i32
    return %c0_i32, %c0_i32_0 : i32, i32
  }
  func.func @transform_3(%arg0: i32) -> (i32, i32) {
    %c0_i32 = arith.constant 0 : i32
    %c0_i32_0 = arith.constant 0 : i32
    return %c0_i32, %arg0 : i32, i32
  }
}

module attributes {stable_mosaic.version = 11 : i64} {
  func.func @_fused_matmul_kernel(%arg0: i32, %arg1: memref<180x1024xbf16, #tpu.memory_space<vmem>>, %arg2: memref<20x180xbf16, #tpu.memory_space<vmem>>, %arg3: memref<20x1xf32, #tpu.memory_space<vmem>>, %arg4: memref<20x1024xbf16, #tpu.memory_space<vmem>>) attributes {dimension_semantics = [#tpu.dimension_semantics<parallel>], iteration_bounds = array<i64: 2>, scalar_prefetch = 0 : i64, scratch_operands = 0 : i64, tpu.core_type = #tpu.core_type<tc>, window_params = [{transform_indices = @transform_0, window_bounds = array<i64: 180, 1024>}, {pipeline_mode = #tpu.pipeline_mode<synchronous>, transform_indices = @transform_1, window_bounds = array<i64: 20, 180>}, {pipeline_mode = #tpu.pipeline_mode<synchronous>, transform_indices = @transform_2, window_bounds = array<i64: 20, 1>}, {transform_indices = @transform_3, window_bounds = array<i64: 20, 1024>}]} {
    %c0 = arith.constant 0 : index
    %c0_0 = arith.constant 0 : index
    %0 = vector.load %arg2[%c0, %c0_0] : memref<20x180xbf16, #tpu.memory_space<vmem>>, vector<20x180xbf16>
    %c0_1 = arith.constant 0 : index
    %c0_2 = arith.constant 0 : index
    %1 = vector.load %arg1[%c0_1, %c0_2] : memref<180x1024xbf16, #tpu.memory_space<vmem>>, vector<180x1024xbf16>
    %cst = arith.constant dense<0.000000e+00> : vector<20x1024xf32>
    %2 = tpu.matmul %0, %1, %cst {dimension_numbers = #tpu.dot_dimension_numbers<[1], [0], [0], [1], [0, 0, 1, 1], [], []>} : vector<20x180xbf16>, vector<180x1024xbf16>, vector<20x1024xf32> -> vector<20x1024xf32>
    %c0_3 = arith.constant 0 : index
    %c0_4 = arith.constant 0 : index
    %3 = vector.load %arg3[%c0_3, %c0_4] : memref<20x1xf32, #tpu.memory_space<vmem>>, vector<20x1xf32>
    %4 = vector.broadcast %3 : vector<20x1xf32> to vector<20x1024xf32>
    %5 = arith.addf %2, %4 : vector<20x1024xf32>
    %cst_5 = arith.constant 0.000000e+00 : f32
    %6 = vector.broadcast %cst_5 : f32 to vector<20x1024xf32>
    %7 = arith.cmpf oge, %5, %6 : vector<20x1024xf32>
    %cst_6 = arith.constant 2.000000e-01 : f32
    %8 = vector.broadcast %cst_6 : f32 to vector<20x1024xf32>
    %9 = arith.mulf %8, %5 : vector<20x1024xf32>
    %10 = arith.select %7, %5, %9 : vector<20x1024xi1>, vector<20x1024xf32>
    %11 = arith.truncf %10 : vector<20x1024xf32> to vector<20x1024xbf16>
    %c0_7 = arith.constant 0 : index
    %c0_8 = arith.constant 0 : index
    %12 = vector.load %arg4[%c0_7, %c0_8] : memref<20x1024xbf16, #tpu.memory_space<vmem>>, vector<20x1024xbf16>
    tpu.vector_store %arg4[%c0_7, %c0_8], %11 {strides = array<i32>} : memref<20x1024xbf16, #tpu.memory_space<vmem>>, vector<20x1024xbf16>,
    return
  }
  func.func @transform_0(%arg0: i32) -> (i32, i32) {
    %c0_i32 = arith.constant 0 : i32
    %c0_i32_0 = arith.constant 0 : i32
    return %c0_i32, %arg0 : i32, i32
  }
  func.func @transform_1(%arg0: i32) -> (i32, i32) {
    %c0_i32 = arith.constant 0 : i32
    %c0_i32_0 = arith.constant 0 : i32
    %c0_i32_1 = arith.constant 0 : i32
    return %c0_i32, %c0_i32_0 : i32, i32
  }
  func.func @transform_2(%arg0: i32) -> (i32, i32) {
    %c0_i32 = arith.constant 0 : i32
    %c0_i32_0 = arith.constant 0 : i32
    %c0_i32_1 = arith.constant 0 : i32
    return %c0_i32, %c0_i32_0 : i32, i32
  }
  func.func @transform_3(%arg0: i32) -> (i32, i32) {
    %c0_i32 = arith.constant 0 : i32
    %c0_i32_0 = arith.constant 0 : i32
    return %c0_i32, %arg0 : i32, i32
  }
}

module attributes {stable_mosaic.version = 11 : i64} {
  func.func @_pool_branch_kernel(%arg0: i32, %arg1: memref<1x2x1024xbf16, #tpu.memory_space<vmem>>, %arg2: memref<1x1024x1024xbf16, #tpu.memory_space<vmem>>, %arg3: memref<1x2x1024xbf16, #tpu.memory_space<vmem>>) attributes {dimension_semantics = [#tpu.dimension_semantics<parallel>], iteration_bounds = array<i64: 4>, scalar_prefetch = 0 : i64, scratch_operands = 0 : i64, tpu.core_type = #tpu.core_type<tc>, window_params = [{transform_indices = @transform_0, window_bounds = array<i64: 1, 2, 1024>}, {transform_indices = @transform_1, window_bounds = array<i64: 1, 1024, 1024>}, {transform_indices = @transform_2, window_bounds = array<i64: 1, 2, 1024>}]} {
    %c0 = arith.constant 0 : index
    %c0_0 = arith.constant 0 : index
    %c0_1 = arith.constant 0 : index
    %0 = vector.load %arg1[%c0, %c0_0, %c0_1] : memref<1x2x1024xbf16, #tpu.memory_space<vmem>>, vector<1x2x1024xbf16>
    %1 = vector.shape_cast %0 : vector<1x2x1024xbf16> to vector<2x1024xbf16>
    %c0_2 = arith.constant 0 : index
    %c0_3 = arith.constant 0 : index
    %c0_4 = arith.constant 0 : index
    %2 = vector.load %arg2[%c0_2, %c0_3, %c0_4] : memref<1x1024x1024xbf16, #tpu.memory_space<vmem>>, vector<1x1024x1024xbf16>
    %3 = vector.shape_cast %2 : vector<1x1024x1024xbf16> to vector<1024x1024xbf16>
    %cst = arith.constant dense<0.000000e+00> : vector<2x1024xf32>
    %4 = tpu.matmul %1, %3, %cst {dimension_numbers = #tpu.dot_dimension_numbers<[1], [0], [0], [1], [0, 0, 1, 1], [], []>} : vector<2x1024xbf16>, vector<1024x1024xbf16>, vector<2x1024xf32> -> vector<2x1024xf32>
    %cst_5 = arith.constant 0.000000e+00 : f32
    %5 = vector.broadcast %cst_5 : f32 to vector<2x1024xf32>
    %6 = arith.cmpf oge, %4, %5 : vector<2x1024xf32>
    %cst_6 = arith.constant 2.000000e-01 : f32
    %7 = vector.broadcast %cst_6 : f32 to vector<2x1024xf32>
    %8 = arith.mulf %7, %4 : vector<2x1024xf32>
    %9 = arith.select %6, %4, %8 : vector<2x1024xi1>, vector<2x1024xf32>
    %10 = arith.truncf %9 : vector<2x1024xf32> to vector<2x1024xbf16>
    %c0_7 = arith.constant 0 : index
    %c0_8 = arith.constant 0 : index
    %c0_9 = arith.constant 0 : index
    %11 = vector.load %arg3[%c0_7, %c0_8, %c0_9] : memref<1x2x1024xbf16, #tpu.memory_space<vmem>>, vector<1x2x1024xbf16>
    %12 = vector.shape_cast %11 : vector<1x2x1024xbf16> to vector<2x1024xbf16>
    %13 = vector.shape_cast %10 : vector<2x1024xbf16> to vector<1x2x1024xbf16>
    tpu.vector_store %arg3[%c0_7, %c0_8, %c0_9], %13 {strides = array<i32>} : memref<1x2x1024xbf16, #tpu.memory_space<vmem>>, vector<1x2x1024xbf16>,
    return
  }
  func.func @transform_0(%arg0: i32) -> (i32, i32, i32) {
    %c0_i32 = arith.constant 0 : i32
    %c0_i32_0 = arith.constant 0 : i32
    %c0_i32_1 = arith.constant 0 : i32
    return %arg0, %c0_i32, %c0_i32_0 : i32, i32, i32
  }
  func.func @transform_1(%arg0: i32) -> (i32, i32, i32) {
    %c0_i32 = arith.constant 0 : i32
    %c0_i32_0 = arith.constant 0 : i32
    %c0_i32_1 = arith.constant 0 : i32
    return %arg0, %c0_i32, %c0_i32_0 : i32, i32, i32
  }
  func.func @transform_2(%arg0: i32) -> (i32, i32, i32) {
    %c0_i32 = arith.constant 0 : i32
    %c0_i32_0 = arith.constant 0 : i32
    %c0_i32_1 = arith.constant 0 : i32
    return %arg0, %c0_i32, %c0_i32_0 : i32, i32, i32
  }
}

module attributes {stable_mosaic.version = 11 : i64} {
  func.func @_fused_matmul_kernel(%arg0: i32, %arg1: memref<216x1024xbf16, #tpu.memory_space<vmem>>, %arg2: memref<3x216xbf16, #tpu.memory_space<vmem>>, %arg3: memref<3x1xf32, #tpu.memory_space<vmem>>, %arg4: memref<3x1024xf32, #tpu.memory_space<vmem>>) attributes {dimension_semantics = [#tpu.dimension_semantics<parallel>], iteration_bounds = array<i64: 2>, scalar_prefetch = 0 : i64, scratch_operands = 0 : i64, tpu.core_type = #tpu.core_type<tc>, window_params = [{transform_indices = @transform_0, window_bounds = array<i64: 216, 1024>}, {pipeline_mode = #tpu.pipeline_mode<synchronous>, transform_indices = @transform_1, window_bounds = array<i64: 3, 216>}, {pipeline_mode = #tpu.pipeline_mode<synchronous>, transform_indices = @transform_2, window_bounds = array<i64: 3, 1>}, {transform_indices = @transform_3, window_bounds = array<i64: 3, 1024>}]} {
    %c0 = arith.constant 0 : index
    %c0_0 = arith.constant 0 : index
    %0 = vector.load %arg2[%c0, %c0_0] : memref<3x216xbf16, #tpu.memory_space<vmem>>, vector<3x216xbf16>
    %c0_1 = arith.constant 0 : index
    %c0_2 = arith.constant 0 : index
    %1 = vector.load %arg1[%c0_1, %c0_2] : memref<216x1024xbf16, #tpu.memory_space<vmem>>, vector<216x1024xbf16>
    %cst = arith.constant dense<0.000000e+00> : vector<3x1024xf32>
    %2 = tpu.matmul %0, %1, %cst {dimension_numbers = #tpu.dot_dimension_numbers<[1], [0], [0], [1], [0, 0, 1, 1], [], []>} : vector<3x216xbf16>, vector<216x1024xbf16>, vector<3x1024xf32> -> vector<3x1024xf32>
    %c0_3 = arith.constant 0 : index
    %c0_4 = arith.constant 0 : index
    %3 = vector.load %arg3[%c0_3, %c0_4] : memref<3x1xf32, #tpu.memory_space<vmem>>, vector<3x1xf32>
    %4 = vector.broadcast %3 : vector<3x1xf32> to vector<3x1024xf32>
    %5 = arith.addf %2, %4 : vector<3x1024xf32>
    %6 = math.tanh %5 : vector<3x1024xf32>
    %c0_5 = arith.constant 0 : index
    %c0_6 = arith.constant 0 : index
    %7 = vector.load %arg4[%c0_5, %c0_6] : memref<3x1024xf32, #tpu.memory_space<vmem>>, vector<3x1024xf32>
    tpu.vector_store %arg4[%c0_5, %c0_6], %6 {strides = array<i32>} : memref<3x1024xf32, #tpu.memory_space<vmem>>, vector<3x1024xf32>,
    return
  }
  func.func @transform_0(%arg0: i32) -> (i32, i32) {
    %c0_i32 = arith.constant 0 : i32
    %c0_i32_0 = arith.constant 0 : i32
    return %c0_i32, %arg0 : i32, i32
  }
  func.func @transform_1(%arg0: i32) -> (i32, i32) {
    %c0_i32 = arith.constant 0 : i32
    %c0_i32_0 = arith.constant 0 : i32
    %c0_i32_1 = arith.constant 0 : i32
    return %c0_i32, %c0_i32_0 : i32, i32
  }
  func.func @transform_2(%arg0: i32) -> (i32, i32) {
    %c0_i32 = arith.constant 0 : i32
    %c0_i32_0 = arith.constant 0 : i32
    %c0_i32_1 = arith.constant 0 : i32
    return %c0_i32, %c0_i32_0 : i32, i32
  }
  func.func @transform_3(%arg0: i32) -> (i32, i32) {
    %c0_i32 = arith.constant 0 : i32
    %c0_i32_0 = arith.constant 0 : i32
    return %c0_i32, %arg0 : i32, i32
  }
}

</mosaic_0001>

<bundles_post_ra>
// kernel: refiner_block.5
= control target key start
LH: loop header
LB: loop body
LE: loop exit
PB: predicated region body
PF: predicated region fallthrough
CT: control target
= control target key end

     0   :  { %s1040_s12 = smov 0   ;;  %s1042_s13 = smov 0   ;;  %s1270_s0 = inlined_call_operand.vmem [shape: bf16[36,2048], index: 0, kind: input, shape index: {}]   ;;  %s1271_s1 = inlined_call_operand.vmem [shape: bf16[20,36], index: 1, kind: input, shape index: {}]   ;;  %s1272_s2 = inlined_call_operand.vmem [shape: f32[20,1], index: 2, kind: input, shape index: {}]   ;;  %s1273_s3 = inlined_call_operand.vmem [shape: bf16[20,2048], index: 3, kind: output, shape index: {}]  }
   0x1   :  { %s1044_s14 = smov 0  }
   0x2 LB: > { %s880_s15 = sadd.s32 4294967295, %s1017_s14   ;;  %s1057_s16 = sadd.s32 1, %s1017_s14   ;;  %s1017_s14 = sphi %s1044_s14, %s1277_s14   ;;  %s1013_s13 = sphi %s1042_s13, %s1276_s13   ;;  %s1009_s12 = sphi %s1040_s12, %s1275_s12  }
   0x3   : > { %s17_s17 = ssub.s32 %s1017_s14, %s1057_s16  ;;  %s20_s18 = sadd.s32 1, %s1013_s13 }
   0x4   : > { %p18_p0 = scmp.eq.s32.totalorder %s17_s17, 0  ;;  %p27_p1 = scmp.ne.s32.totalorder %s1013_s13, %s1009_s12 }
   0x5   : > { %p28_p2 = scmp.eq.s32.totalorder %s1017_s14, 0  ;;  %p99_p3 = scmp.eq.s32.totalorder %s880_s15, 1 }
   0x6   : > { %s1068_s19 = scalar_select %p18_p0, %s1013_s13, %s20_s18  }
   0x7   : > { %p29_p4 = por %p28_p2, %p27_p1  ;;  %p1070_p5 = por %p99_p3, %p27_p1 }
   0x8   : > { %p883_p6 = scmp.ge.s32.totalorder %s1017_s14, 2 }
   0xa   : > { %127 = sbr.rel (%p883_p6) target bundleno = 32 (0x20), region = 24 }
  0x11   : > { %130 = sbr.rel (!%p29_p4) target bundleno = 32 (0x20), region = 28  ;;  %s132_s21 = sand.u32 (%p29_p4), 1, %s1013_s13  }
  0x12   : > { %s941_s22 = sshll.u32 (%p29_p4), %s1017_s14, 5  ;;  %s955_s23 = smul.u32 (%p29_p4), 160, %s132_s21 }
  0x13   : > { %s1080_s26 = scalar_lea.vmem (%p29_p4), %s1270_s0, %s941_s22 }
  0x14   : > { %v150_v0 = vld [vmem:[%s1080_s26] sm:$0xff] (%p29_p4)  ;;  %v152_v1 = vld [vmem:[%s1080_s26 + $0x8] sm:$0xff] (%p29_p4)  ;;  %v154_v2 = vld [vmem:[%s1080_s26 + $0x10] sm:$0xff] (%p29_p4)  ;;  %s1088_s27 = scalar_lea.vmem (%p29_p4), [#allocation2], %s955_s23 }
  0x15   : > { %v156_v3 = vld [vmem:[%s1080_s26 + $0x18] sm:$0xff] (%p29_p4)  ;;  %v158_v4 = vld [vmem:[%s1080_s26 + $0x40] sm:$0xff] (%p29_p4)  ;;  %v160_v5 = vld [vmem:[%s1080_s26 + $0x48] sm:$0xff] (%p29_p4)  ;;  %151 = vst [vmem:[%s1088_s27] sm:$0xff] (%p29_p4), %v150_v0 }
  0x16   : > { %153 = vst [vmem:[%s1088_s27 + $0x8] sm:$0xff] (%p29_p4), %v152_v1  ;;  %155 = vst [vmem:[%s1088_s27 + $0x10] sm:$0xff] (%p29_p4), %v154_v2  ;;  %v162_v6 = vld [vmem:[%s1080_s26 + $0x50] sm:$0xff] (%p29_p4)  ;;  %v164_v7 = vld [vmem:[%s1080_s26 + $0x58] sm:$0xff] (%p29_p4) }
  0x17   : > { %157 = vst [vmem:[%s1088_s27 + $0x18] sm:$0xff] (%p29_p4), %v156_v3  ;;  %159 = vst [vmem:[%s1088_s27 + $0x20] sm:$0xff] (%p29_p4), %v158_v4  ;;  %v166_v8 = vld [vmem:[%s1080_s26 + $0x80] sm:$0xff] (%p29_p4)  ;;  %v168_v9 = vld [vmem:[%s1080_s26 + $0x88] sm:$0xff] (%p29_p4) }
  0x18   : > { %161 = vst [vmem:[%s1088_s27 + $0x28] sm:$0xff] %v160_v5  ;;  %163 = vst [vmem:[%s1088_s27 + $0x30] sm:$0xff] %v162_v6  ;;  %v170_v10 = vld [vmem:[%s1080_s26 + $0x90] sm:$0xff]  ;;  %v172_v11 = vld [vmem:[%s1080_s26 + $0x98] sm:$0xff] }
  0x19   : > { %165 = vst [vmem:[%s1088_s27 + $0x38] sm:$0xff] %v164_v7  ;;  %167 = vst [vmem:[%s1088_s27 + $0x40] sm:$0xff] %v166_v8  ;;  %v174_v12 = vld [vmem:[%s1080_s26 + $0xc0] sm:$0xff]  ;;  %v176_v13 = vld [vmem:[%s1080_s26 + $0xc8] sm:$0xff] }
  0x1a   : > { %169 = vst [vmem:[%s1088_s27 + $0x48] sm:$0xff] %v168_v9  ;;  %171 = vst [vmem:[%s1088_s27 + $0x50] sm:$0xff] %v170_v10  ;;  %v178_v14 = vld [vmem:[%s1080_s26 + $0xd0] sm:$0xff]  ;;  %v180_v15 = vld [vmem:[%s1080_s26 + $0xd8] sm:$0xff] }
  0x1b   : > { %173 = vst [vmem:[%s1088_s27 + $0x58] sm:$0xff] %v172_v11  ;;  %175 = vst [vmem:[%s1088_s27 + $0x60] sm:$0xff] %v174_v12  ;;  %v182_v16 = vld [vmem:[%s1080_s26 + $0x100] sm:$0xff]  ;;  %v184_v17 = vld [vmem:[%s1080_s26 + $0x108] sm:$0xff] }
  0x1c   : > { %177 = vst [vmem:[%s1088_s27 + $0x68] sm:$0xff] %v176_v13  ;;  %179 = vst [vmem:[%s1088_s27 + $0x70] sm:$0xff] %v178_v14  ;;  %v186_v18 = vld [vmem:[%s1080_s26 + $0x110] sm:$0xff]  ;;  %v188_v19 = vld [vmem:[%s1080_s26 + $0x118] sm:$0xff] }
  0x1d   : > { %181 = vst [vmem:[%s1088_s27 + $0x78] sm:$0xff] %v180_v15  ;;  %183 = vst [vmem:[%s1088_s27 + $0x80] sm:$0xff] %v182_v16 }
  0x1e   : > { %185 = vst [vmem:[%s1088_s27 + $0x88] sm:$0xff] %v184_v17  ;;  %187 = vst [vmem:[%s1088_s27 + $0x90] sm:$0xff] %v186_v18 }
  0x1f   : > { %189 = vst [vmem:[%s1088_s27 + $0x98] sm:$0xff] %v188_v19 }
  0x20 PF: > { %p886_p7 = scmp.ge.s32.totalorder %s1017_s14, 1  ;;  %p194_p8 = scmp.lt.s32.totalorder %s1017_s14, 3 }
  0x22   : > { %p195_p9 = pnand %p886_p7, %p194_p8 }
  0x23   : > { %s201_s28 = sand.u32 (!%p195_p9), 1, %s1009_s12   ;;  %v1019_v20 = vmov (!%p195_p9), 0   ;;  %v249_v21 = vld [vmem:[%s1272_s2] sm:$0xff] (!%p195_p9)  ;;  %v251_v22 = vld [vmem:[%s1272_s2 + $0x10] sm:$0xf] (!%p195_p9)  ;;  %v250_v39 = vld [vmem:[%s1272_s2 + $0x8] sm:$0xff] (!%p195_p9) }
  0x24   : > { %198 = sbr.rel (%p195_p9) target bundleno = 310 (0x136), region = 51  ;;  %439 = vmatprep.mubr.bf16.mxu0 (!%p195_p9), %v1019_v20  ;;  %490 = vmatprep.mubr.bf16.mxu1 (!%p195_p9), %v1019_v20  ;;  %vm382_vm0 = vcmask (!%p195_p9), 1041408   ;;  %v989_v56 = vld [vmem:[%s1271_s1] sm:$0xff] (!%p195_p9)   ;;  %vm375_vm1 = vcmask (!%p195_p9), 293888  }
  0x25   : > { %s956_s29 = smul.u32 (!%p195_p9), 160, %s201_s28  ;;  %983 = vset.pattern.permute.xlu0 (!%p195_p9), %v1019_v20  ;;  %984 = vset.pattern.permute.xlu1 (!%p195_p9), %v1019_v20  ;;  %v990_v7 = vld [vmem:[%s1271_s1 + $0x8] ss:$0 sps:$4 sm:$0x33] (!%p195_p9)  }
  0x26   : > { %254 = vperm.xlu0 (!%p195_p9), %983, %v249_v21   ;;  %264 = vperm.xlu1 (!%p195_p9), %984, %v251_v22   ;;  %s1200_s21 = smul.u32 (!%p195_p9), 96, %s201_s28 }
  0x27   : > { %s1139_s7 = scalar_lea.vmem (!%p195_p9), [#allocation2], %s956_s29 }
  0x28   : > { %v229_v23 = vld [vmem:[%s1139_s7] sm:$0xff] (!%p195_p9)  ;;  %v230_v25 = vld [vmem:[%s1139_s7 + $0x8] sm:$0xff] (!%p195_p9)  ;;  %v231_v46 = vld [vmem:[%s1139_s7 + $0x10] sm:$0xff] (!%p195_p9)  ;;  %s1211_s12 = scalar_lea.vmem (!%p195_p9), [#allocation3], %s1200_s21 }
  0x29   : > { %v233_v24 = vld [vmem:[%s1139_s7 + $0x20] sm:$0xff] (!%p195_p9)  ;;  %v234_v27 = vld [vmem:[%s1139_s7 + $0x28] sm:$0xff] (!%p195_p9)  ;;  %v235_v47 = vld [vmem:[%s1139_s7 + $0x30] sm:$0xff] (!%p195_p9) }
  0x2a   : > { %v890_v26 = vcombine.high (!%p195_p9), %v229_v23, %v233_v24  ;;  %v889_v28 = vcombine.low (!%p195_p9), %v229_v23, %v233_v24  ;;  %v237_v29 = vld [vmem:[%s1139_s7 + $0x40] sm:$0xff] (!%p195_p9)  ;;  %v892_v31 = vcombine.high (!%p195_p9), %v230_v25, %v234_v27  ;;  %v891_v32 = vcombine.low (!%p195_p9), %v230_v25, %v234_v27  ;;  %v238_v34 = vld [vmem:[%s1139_s7 + $0x48] sm:$0xff] (!%p195_p9)  ;;  %259 = vperm.xlu0 (!%p195_p9), %983, %v250_v39   ;;  %v232_v48 = vld [vmem:[%s1139_s7 + $0x18] sm:$0xff] (!%p195_p9) }
  0x2b   : > { %v241_v30 = vld [vmem:[%s1139_s7 + $0x60] sm:$0xff]  ;;  %v242_v35 = vld [vmem:[%s1139_s7 + $0x68] sm:$0xff]  ;;  %v236_v49 = vld [vmem:[%s1139_s7 + $0x38] sm:$0xff]  ;;  %v894_v51 = vcombine.high %v231_v46, %v235_v47  ;;  %v893_v59 = vcombine.low %v231_v46, %v235_v47  ;;  %s954_s22 = sshll.u32 (%p1070_p5), %s880_s15, 5 }
  0x2c   : > { %v898_v33 = vcombine.high %v237_v29, %v241_v30  ;;  %v245_v36 = vld [vmem:[%s1139_s7 + $0x80] sm:$0x33]  ;;  %407 = vmatprep.subr.bf16.mxu0 %v890_v26  ;;  %v900_v37 = vcombine.high %v238_v34, %v242_v35  ;;  %v246_v38 = vld [vmem:[%s1139_s7 + $0x88] sm:$0x33]  ;;  %458 = vmatprep.subr.bf16.mxu1 %v892_v31  ;;  %v897_v40 = vcombine.low %v237_v29, %v241_v30  ;;  %v239_v54 = vld [vmem:[%s1139_s7 + $0x50] sm:$0xff]  ;;  %s784_s20 = scalar_lea.vmem (%p1070_p5), %s1273_s3, %s954_s22 }
  0x2d   : > { %408 = vmatpush1.bf16.msra.mxu0 %v889_v28  ;;  %459 = vmatpush1.bf16.msra.mxu1 %v891_v32  ;;  %v899_v41 = vcombine.low %v238_v34, %v242_v35  ;;  %v906_v42 = vcombine.high %v245_v36, %v245_v36  ;;  %v905_v43 = vcombine.low %v245_v36, %v245_v36  ;;  %v243_v55 = vld [vmem:[%s1139_s7 + $0x70] sm:$0xff]  ;;  %v240_v57 = vld [vmem:[%s1139_s7 + $0x58] sm:$0xff] }
  0x2e   : > { %409 = vmatprep.subr.bf16.mxu0 %v898_v33  ;;  %460 = vmatprep.subr.bf16.mxu1 %v900_v37  ;;  %v908_v44 = vcombine.high %v246_v38, %v246_v38  ;;  %v907_v45 = vcombine.low %v246_v38, %v246_v38  ;;  %v896_v53 = vcombine.high %v232_v48, %v236_v49  ;;  %v244_v58 = vld [vmem:[%s1139_s7 + $0x78] sm:$0xff]  ;;  %v247_v63 = vld [vmem:[%s1139_s7 + $0x90] sm:$0x33] }
  0x2f   : > { %v384_v50 = vsel %vm382_vm0, %v905_v43, 0  ;;  %v895_v60 = vcombine.low %v232_v48, %v236_v49  ;;  %v902_v61 = vcombine.high %v239_v54, %v243_v55  ;;  %v904_v62 = vcombine.high %v240_v57, %v244_v58  ;;  %v248_v0 = vld [vmem:[%s1139_s7 + $0x98] sm:$0x33] }
  0x30   : > { %v390_v52 = vsel %vm382_vm0, %v907_v45, 0  ;;  %v901_v1 = vcombine.low %v239_v54, %v243_v55  ;;  %v903_v2 = vcombine.low %v240_v57, %v244_v58  ;;  %v910_v3 = vcombine.high %v247_v63, %v247_v63 }
  0x31   : > { %410 = vmatpush1.bf16.msra.mxu0 %v897_v40  ;;  %461 = vmatpush1.bf16.msra.mxu1 %v899_v41  ;;  %v909_v4 = vcombine.low %v247_v63, %v247_v63  ;;  %v912_v5 = vcombine.high %v248_v0, %v248_v0  ;;  %v911_v6 = vcombine.low %v248_v0, %v248_v0 }
  0x32   : > { %913 = vmatprep.subr.msk.bf16.mxu0 %vm382_vm0, %v906_v42  ;;  %916 = vmatprep.subr.msk.bf16.mxu1 %vm382_vm0, %v908_v44 }
  0x33   : > { %v396_v8 = vsel %vm382_vm0, %v909_v4, 0  ;;  %v402_v9 = vsel %vm382_vm0, %v911_v6, 0 }
  0x35   : > { %412 = vmatpush1.bf16.msra.mxu0 %v384_v50  ;;  %463 = vmatpush1.bf16.msra.mxu1 %v390_v52 }
  0x36   : > { %509 = vmatprep.subr.bf16.mxu0 %v894_v51  ;;  %560 = vmatprep.subr.bf16.mxu1 %v896_v53 }
  0x38   : > { %914 = vmatmul.mubr.msk.bf16.vlgmr.msra.gmra.mrb[0].mxu0 %vm375_vm1, %v989_v56  ;;  %917 = vmatmul.mubr.msk.bf16.vlgmr.msra.gmra.mrb[0].mxu1 %vm375_vm1, %v989_v56 }
  0x39   : > { %510 = vmatpush1.bf16.msra.mxu0 %v893_v59  ;;  %561 = vmatpush1.bf16.msra.mxu1 %v895_v60 }
  0x3a   : > { %511 = vmatprep.subr.bf16.mxu0 %v902_v61  ;;  %562 = vmatprep.subr.bf16.mxu1 %v904_v62 }
  0x3b   : > { %449 = vmatprep.mubr.bf16.mxu0 %v1019_v20  ;;  %500 = vmatprep.mubr.bf16.mxu1 %v1019_v20 }
  0x3d   : > { %512 = vmatpush1.bf16.msra.mxu0 %v901_v1  ;;  %563 = vmatpush1.bf16.msra.mxu1 %v903_v2 }
  0x3e   : > { %919 = vmatprep.subr.msk.bf16.mxu0 %vm382_vm0, %v910_v3  ;;  %922 = vmatprep.subr.msk.bf16.mxu1 %vm382_vm0, %v912_v5 }
  0x40   : > { %915 = vmatmul.mubr.msk.bf16.gmra.mrb[4].mxu0 %vm375_vm1, %v990_v7  ;;  %918 = vmatmul.mubr.msk.bf16.gmra.mrb[4].mxu1 %vm375_vm1, %v990_v7 }
  0x41   : > { %514 = vmatpush1.bf16.msra.mxu0 %v396_v8  ;;  %565 = vmatpush1.bf16.msra.mxu1 %v402_v9 }
  0x42   : > { %541 = vmatprep.mubr.bf16.mxu0 %v1019_v20  ;;  %592 = vmatprep.mubr.bf16.mxu1 %v1019_v20 }
  0x48   : > { %920 = vmatmul.mubr.msk.bf16.vlgmr.msra.gmra.mrb[8].mxu0 %vm375_vm1, %v989_v56  ;;  %923 = vmatmul.mubr.msk.bf16.vlgmr.msra.gmra.mrb[8].mxu1 %vm375_vm1, %v989_v56 }
  0x49   : > { %551 = vmatprep.mubr.bf16.mxu0 %v1019_v20  ;;  %602 = vmatprep.mubr.bf16.mxu1 %v1019_v20 }
  0x50   : > { %921 = vmatmul.mubr.msk.bf16.gmra.mrb[12].mxu0 %vm375_vm1, %v990_v7  ;;  %924 = vmatmul.mubr.msk.bf16.gmra.mrb[12].mxu1 %vm375_vm1, %v990_v7 }
  0xa5   : > { %v1192_v10 = vpop.permute.xlu0 %254  ;;  %v1208_v38 = vpop.permute.xlu1 %264 }
  0xa9   : > { %v1194_v12 = vpop.permute.xlu0 %259 }
 0x10b   : > { %v441_v11 = vpop.f32.mrb[0].mxu0  ;;  %v492_v14 = vpop.f32.mrb[0].mxu1 }
 0x10c   : > { %v442_v13 = vadd.f32 %v441_v11, %v1192_v10  ;;  %v443_v15 = vpop.f32.mrb[1].mxu0  ;;  %v493_v16 = vadd.f32 %v492_v14, %v1192_v10  ;;  %v494_v18 = vpop.f32.mrb[1].mxu1 }
 0x10d   : > { %v444_v17 = vadd.f32 %v443_v15, %v1192_v10  ;;  %v445_v19 = vpop.f32.mrb[2].mxu0  ;;  %v495_v21 = vadd.f32 %v494_v18, %v1192_v10  ;;  %v496_v23 = vpop.f32.mrb[2].mxu1 }
 0x10e   : > { %vm611_vm2 = vcmp.ge.f32.partialorder %v442_v13, 0.0  ;;  %v635_v20 = vmul.f32 0.2, %v442_v13  ;;  %v446_v22 = vadd.f32 %v445_v19, %v1194_v12  ;;  %v447_v24 = vpop.f32.mrb[3].mxu0  ;;  %vm613_vm3 = vcmp.ge.f32.partialorder %v493_v16, 0.0  ;;  %v498_v29 = vpop.f32.mrb[3].mxu1 }
 0x10f   : > { %v637_v25 = vmul.f32 0.2, %v493_v16  ;;  %vm612_vm4 = vcmp.ge.f32.partialorder %v444_v17, 0.0  ;;  %v636_v26 = vmul.f32 0.2, %v444_v17  ;;  %vm614_vm5 = vcmp.ge.f32.partialorder %v495_v21, 0.0 }
 0x110   : > { %v659_v27 = vsel %vm611_vm2, %v442_v13, %v635_v20  ;;  %v638_v28 = vmul.f32 0.2, %v495_v21  ;;  %vm619_vm6 = vcmp.ge.f32.partialorder %v446_v22, 0.0  ;;  %v643_v32 = vmul.f32 0.2, %v446_v22 }
 0x111   : > { %v661_v30 = vsel %vm613_vm3, %v493_v16, %v637_v25  ;;  %v660_v31 = vsel %vm612_vm4, %v444_v17, %v636_v26  ;;  %v497_v33 = vadd.f32 %v496_v23, %v1194_v12  ;;  %v448_v36 = vadd.f32 %v447_v24, %v1194_v12 }
 0x112   : > { %v942_v34 = vpack.c.bf16 %v660_v31, %v659_v27  ;;  %v662_v35 = vsel %vm614_vm5, %v495_v21, %v638_v28  ;;  %v499_v37 = vadd.f32 %v498_v29, %v1194_v12  ;;  %v667_v40 = vsel %vm619_vm6, %v446_v22, %v643_v32 }
 0x113   : > { %v943_v39 = vpack.c.bf16 %v662_v35, %v661_v30  ;;  %vm621_vm7 = vcmp.ge.f32.partialorder %v497_v33, 0.0  ;;  %v645_v41 = vmul.f32 0.2, %v497_v33  ;;  %v451_v42 = vpop.f32.mrb[4].mxu0  ;;  %vm620_vm8 = vcmp.ge.f32.partialorder %v448_v36, 0.0  ;;  %v502_v47 = vpop.f32.mrb[4].mxu1 }
 0x114   : > { %763 = vst [vmem:[%s1211_s12] sm:$0xff] %v942_v34  ;;  %v644_v43 = vmul.f32 0.2, %v448_v36  ;;  %vm622_vm9 = vcmp.ge.f32.partialorder %v499_v37, 0.0  ;;  %v646_v44 = vmul.f32 0.2, %v499_v37  ;;  %v452_v46 = vadd.f32 %v451_v42, %v1208_v38  ;;  %v453_v48 = vpop.f32.mrb[5].mxu0 }
 0x115   : > { %764 = vst [vmem:[%s1211_s12 + $0x8] sm:$0xff] %v943_v39  ;;  %v669_v45 = vsel %vm621_vm7, %v497_v33, %v645_v41  ;;  %v503_v51 = vadd.f32 %v502_v47, %v1208_v38  ;;  %v454_v52 = vadd.f32 %v453_v48, %v1208_v38  ;;  %v504_v53 = vpop.f32.mrb[5].mxu1  ;;  %v455_v54 = vpop.f32.mrb[6].mxu0 }
 0x116   : > { %v668_v49 = vsel %vm620_vm8, %v448_v36, %v644_v43  ;;  %v670_v50 = vsel %vm622_vm9, %v499_v37, %v646_v44  ;;  %vm627_vm10 = vcmp.ge.f32.partialorder %v452_v46, 0.0  ;;  %v651_v57 = vmul.f32 0.2, %v452_v46  ;;  %v506_v58 = vpop.f32.mrb[6].mxu1  ;;  %v456_v59 = vpop.f32.mrb[7].mxu0 }
 0x117   : > { %v946_v55 = vpack.c.bf16 %v668_v49, %v667_v40  ;;  %v947_v56 = vpack.c.bf16 %v670_v50, %v669_v45  ;;  %vm629_vm11 = vcmp.ge.f32.partialorder %v503_v51, 0.0  ;;  %v653_v60 = vmul.f32 0.2, %v503_v51  ;;  %v507_v0 = vpop.f32.mrb[7].mxu1 }
 0x118   : > { %vm628_vm12 = vcmp.ge.f32.partialorder %v454_v52, 0.0  ;;  %v652_v61 = vmul.f32 0.2, %v454_v52  ;;  %v675_v62 = vsel %vm627_vm10, %v452_v46, %v651_v57  ;;  %v505_v63 = vadd.f32 %v504_v53, %v1208_v38 }
 0x119   : > { %767 = vst [vmem:[%s1211_s12 + $0x20] sm:$0xff] %v946_v55  ;;  %768 = vst [vmem:[%s1211_s12 + $0x28] sm:$0xff] %v947_v56  ;;  %v677_v2 = vsel %vm629_vm11, %v503_v51, %v653_v60 }
 0x11a   : > { %v676_v1 = vsel %vm628_vm12, %v454_v52, %v652_v61  ;;  %vm630_vm13 = vcmp.ge.f32.partialorder %v505_v63, 0.0  ;;  %v654_v4 = vmul.f32 0.2, %v505_v63 }
 0x11b   : > { %v950_v3 = vpack.c.bf16 %v676_v1, %v675_v62  ;;  %v543_v5 = vpop.f32.mrb[8].mxu0  ;;  %v594_v7 = vpop.f32.mrb[8].mxu1 }
 0x11c   : > { %v544_v6 = vadd.f32 %v543_v5, %v1192_v10  ;;  %v545_v8 = vpop.f32.mrb[9].mxu0  ;;  %v678_v9 = vsel %vm630_vm13, %v505_v63, %v654_v4  ;;  %v595_v11 = vadd.f32 %v594_v7, %v1192_v10  ;;  %v596_v14 = vpop.f32.mrb[9].mxu1 }
 0x11d   : > { %771 = vst [vmem:[%s1211_s12 + $0x40] sm:$0x33] %v950_v3  ;;  %v546_v13 = vadd.f32 %v545_v8, %v1192_v10  ;;  %v547_v15 = vpop.f32.mrb[10].mxu0  ;;  %v951_v16 = vpack.c.bf16 %v678_v9, %v677_v2  ;;  %v597_v18 = vadd.f32 %v596_v14, %v1192_v10  ;;  %v598_v19 = vpop.f32.mrb[10].mxu1  ;;  %v799_v2 = vld [vmem:[%s1211_s12 + $0x8] sm:$0xff] (%p1070_p5) }
 0x11e   : > { %vm615_vm14 = vcmp.ge.f32.partialorder %v544_v6, 0.0  ;;  %v639_v17 = vmul.f32 0.2, %v544_v6  ;;  %v549_v20 = vpop.f32.mrb[11].mxu0  ;;  %vm617_vm15 = vcmp.ge.f32.partialorder %v595_v11, 0.0  ;;  %v548_v25 = vadd.f32 %v547_v15, %v1194_v12  ;;  %v600_v26 = vpop.f32.mrb[11].mxu1 }
 0x11f   : > { %v641_v21 = vmul.f32 0.2, %v595_v11  ;;  %vm616_vm0 = vcmp.ge.f32.partialorder %v546_v13, 0.0  ;;  %v640_v22 = vmul.f32 0.2, %v546_v13  ;;  %vm618_vm1 = vcmp.ge.f32.partialorder %v597_v18, 0.0 }
 0x120   : > { %772 = vst [vmem:[%s1211_s12 + $0x48] sm:$0x33] %v951_v16  ;;  %v663_v23 = vsel %vm615_vm14, %v544_v6, %v639_v17  ;;  %v642_v24 = vmul.f32 0.2, %v597_v18  ;;  %v599_v29 = vadd.f32 %v598_v19, %v1194_v12  ;;  %v550_v10 = vadd.f32 %v549_v20, %v1194_v12  ;;  %v805_v5 = vld [vmem:[%s1211_s12 + $0x20] sm:$0xff] (%p1070_p5)  ;;  %v807_v6 = vld [vmem:[%s1211_s12 + $0x28] sm:$0xff] (%p1070_p5) }
 0x121   : > { %v665_v27 = vsel %vm617_vm15, %v595_v11, %v641_v21  ;;  %v664_v28 = vsel %vm616_vm0, %v546_v13, %v640_v22  ;;  %vm623_vm2 = vcmp.ge.f32.partialorder %v548_v25, 0.0  ;;  %v647_v32 = vmul.f32 0.2, %v548_v25  ;;  %800 = vst [vmem:[%s784_s20 + $0x8] sm:$0xff] (%p1070_p5), %v799_v2  ;;  %806 = vst [vmem:[%s784_s20 + $0x40] sm:$0xff] (%p1070_p5), %v805_v5 }
 0x122   : > { %v944_v30 = vpack.c.bf16 %v664_v28, %v663_v23  ;;  %v666_v31 = vsel %vm618_vm1, %v597_v18, %v642_v24  ;;  %vm625_vm3 = vcmp.ge.f32.partialorder %v599_v29, 0.0  ;;  %v649_v34 = vmul.f32 0.2, %v599_v29  ;;  %808 = vst [vmem:[%s784_s20 + $0x48] sm:$0xff] (%p1070_p5), %v807_v6 }
 0x123   : > { %v945_v33 = vpack.c.bf16 %v666_v31, %v665_v27  ;;  %vm624_vm4 = vcmp.ge.f32.partialorder %v550_v10, 0.0  ;;  %v553_v35 = vpop.f32.mrb[12].mxu0  ;;  %v671_v36 = vsel %vm623_vm2, %v548_v25, %v647_v32  ;;  %v648_v37 = vmul.f32 0.2, %v550_v10  ;;  %v604_v41 = vpop.f32.mrb[12].mxu1 }
 0x124   : > { %765 = vst [vmem:[%s1211_s12 + $0x10] sm:$0xff] %v944_v30  ;;  %v601_v39 = vadd.f32 %v600_v26, %v1194_v12  ;;  %v554_v40 = vadd.f32 %v553_v35, %v1208_v38  ;;  %v555_v42 = vpop.f32.mrb[13].mxu0  ;;  %v673_v43 = vsel %vm625_vm3, %v599_v29, %v649_v34  ;;  %v605_v44 = vadd.f32 %v604_v41, %v1208_v38  ;;  %v606_v46 = vpop.f32.mrb[13].mxu1  ;;  %v813_v9 = vld [vmem:[%s1211_s12 + $0x40] sm:$0xff] (%p1070_p5) }
 0x125   : > { %766 = vst [vmem:[%s1211_s12 + $0x18] sm:$0xff] %v945_v33  ;;  %v556_v45 = vadd.f32 %v555_v42, %v1208_v38  ;;  %v557_v47 = vpop.f32.mrb[14].mxu0  ;;  %v672_v48 = vsel %vm624_vm4, %v550_v10, %v648_v37  ;;  %v608_v50 = vpop.f32.mrb[14].mxu1  ;;  %v607_v57 = vadd.f32 %v606_v46, %v1208_v38  ;;  %v797_v38 = vld [vmem:[%s1211_s12] sm:$0xff] (%p1070_p5)  ;;  %814 = vst [vmem:[%s784_s20 + $0x80] sm:$0xff] (%p1070_p5), %v813_v9 }
 0x126   : > { %vm626_vm5 = vcmp.ge.f32.partialorder %v601_v39, 0.0  ;;  %v650_v49 = vmul.f32 0.2, %v601_v39  ;;  %vm631_vm6 = vcmp.ge.f32.partialorder %v554_v40, 0.0  ;;  %v558_v51 = vpop.f32.mrb[15].mxu0  ;;  %v948_v12 = vpack.c.bf16 %v672_v48, %v671_v36  ;;  %v609_v54 = vpop.f32.mrb[15].mxu1  ;;  %798 = vst [vmem:[%s784_s20] sm:$0xff] (%p1070_p5), %v797_v38 }
 0x127   : > { %v655_v52 = vmul.f32 0.2, %v554_v40  ;;  %vm633_vm7 = vcmp.ge.f32.partialorder %v605_v44, 0.0  ;;  %v657_v53 = vmul.f32 0.2, %v605_v44  ;;  %vm632_vm8 = vcmp.ge.f32.partialorder %v556_v45, 0.0 }
 0x128   : > { %v674_v55 = vsel %vm626_vm5, %v601_v39, %v650_v49  ;;  %v656_v56 = vmul.f32 0.2, %v556_v45  ;;  %769 = vst [vmem:[%s1211_s12 + $0x30] sm:$0xff] %v948_v12  ;;  %vm634_vm9 = vcmp.ge.f32.partialorder %v607_v57, 0.0  ;;  %v658_v62 = vmul.f32 0.2, %v607_v57 }
 0x129   : > { %v949_v58 = vpack.c.bf16 %v674_v55, %v673_v43  ;;  %v679_v59 = vsel %vm631_vm6, %v554_v40, %v655_v52  ;;  %v681_v60 = vsel %vm633_vm7, %v605_v44, %v657_v53  ;;  %781 = sbr.rel (!%p1070_p5) target bundleno = 310 (0x136), region = 59  ;;  %v815_v11 = vld [vmem:[%s1211_s12 + $0x48] sm:$0xff] (%p1070_p5) }
 0x12a   : > { %v680_v61 = vsel %vm632_vm8, %v556_v45, %v656_v56  ;;  %v682_v0 = vsel %vm634_vm9, %v607_v57, %v658_v62  ;;  %816 = vst [vmem:[%s784_s20 + $0x88] sm:$0xff] (%p1070_p5), %v815_v11 }
 0x12b   : > { %770 = vst [vmem:[%s1211_s12 + $0x38] sm:$0xff] %v949_v58  ;;  %v952_v63 = vpack.c.bf16 %v680_v61, %v679_v59  ;;  %v953_v1 = vpack.c.bf16 %v682_v0, %v681_v60  ;;  %v801_v3 = vld [vmem:[%s1211_s12 + $0x10] sm:$0xff] (%p1070_p5) }
 0x12c   : > { %v803_v4 = vld [vmem:[%s1211_s12 + $0x18] sm:$0xff] (%p1070_p5)  ;;  %802 = vst [vmem:[%s784_s20 + $0x10] sm:$0xff] (%p1070_p5), %v801_v3 }
 0x12d   : > { %773 = vst [vmem:[%s1211_s12 + $0x50] sm:$0x33] %v952_v63  ;;  %774 = vst [vmem:[%s1211_s12 + $0x58] sm:$0x33] %v953_v1 }
 0x12e   : > { %804 = vst [vmem:[%s784_s20 + $0x18] sm:$0xff] (%p1070_p5), %v803_v4 }
 0x12f   : > { %v809_v7 = vld [vmem:[%s1211_s12 + $0x30] sm:$0xff] (%p1070_p5) }
 0x130   : > { %810 = vst [vmem:[%s784_s20 + $0x50] sm:$0xff] %v809_v7 }
 0x132   : > { %v811_v8 = vld [vmem:[%s1211_s12 + $0x38] sm:$0xff] }
 0x133   : > { %812 = vst [vmem:[%s784_s20 + $0x58] sm:$0xff] %v811_v8 }
 0x134   : > { %v817_v13 = vld [vmem:[%s1211_s12 + $0x50] sm:$0xff]  ;;  %v819_v14 = vld [vmem:[%s1211_s12 + $0x58] sm:$0xff] }
 0x135   : > { %818 = vst [vmem:[%s784_s20 + $0x90] sm:$0xff] %v817_v13  ;;  %820 = vst [vmem:[%s784_s20 + $0x98] sm:$0xff] %v819_v14 }
 0x136 PF: > { %p10_p10 = scmp.ge.s32.totalorder %s1057_s16, 4   ;;  %s1275_s12 = smov %s1013_s13 }
 0x137   : > { %s1276_s13 = smov %s1068_s19  ;;  %s1277_s14 = smov %s1057_s16 }
 0x138   :  { %12 = sbr.rel (!%p10_p10) target bundleno = 2 (0x2), region = 113 }

// kernel: refiner_block.7
= control target key start
LH: loop header
LB: loop body
LE: loop exit
PB: predicated region body
PF: predicated region fallthrough
CT: control target
= control target key end

     0   :  { %s727_s12 = smov 0   ;;  %s729_s13 = smov 0   ;;  %s811_s0 = inlined_call_operand.vmem [shape: bf16[20,2048], index: 0, kind: input, shape index: {}]   ;;  %s812_s1 = inlined_call_operand.vmem [shape: bf16[4,20], index: 1, kind: input, shape index: {}]   ;;  %s813_s2 = inlined_call_operand.vmem [shape: f32[4,1], index: 2, kind: input, shape index: {}]   ;;  %s814_s3 = inlined_call_operand.vmem [shape: bf16[4,2048], index: 3, kind: output, shape index: {}]  }
   0x1   :  { %s731_s14 = smov 0  }
   0x2 LB: > { %s604_s15 = sadd.s32 4294967295, %s703_s14   ;;  %s744_s16 = sadd.s32 1, %s703_s14   ;;  %s703_s14 = sphi %s731_s14, %s817_s14   ;;  %s699_s13 = sphi %s729_s13, %s816_s13   ;;  %s695_s12 = sphi %s727_s12, %s815_s12  }
   0x3   : > { %s17_s17 = ssub.s32 %s703_s14, %s744_s16  ;;  %s20_s18 = sadd.s32 1, %s699_s13 }
   0x4   : > { %p18_p0 = scmp.eq.s32.totalorder %s17_s17, 0  ;;  %p27_p1 = scmp.ne.s32.totalorder %s699_s13, %s695_s12 }
   0x5   : > { %p28_p2 = scmp.eq.s32.totalorder %s703_s14, 0  ;;  %p607_p4 = scmp.ge.s32.totalorder %s703_s14, 2 }
   0x6   : > { %s753_s19 = scalar_select %p18_p0, %s699_s13, %s20_s18  }
   0x7   : > { %p29_p3 = por %p28_p2, %p27_p1  ;;  %127 = sbr.rel (%p607_p4) target bundleno = 25 (0x19), region = 24 }
   0xe   : > { %130 = sbr.rel (!%p29_p3) target bundleno = 25 (0x19), region = 28  ;;  %s132_s20 = sand.u32 (%p29_p3), 1, %s699_s13  }
   0xf   : > { %s643_s21 = sshll.u32 (%p29_p3), %s703_s14, 5  ;;  %s644_s22 = smul.u32 (%p29_p3), 96, %s132_s20 }
  0x10   : > { %s137_s25 = scalar_lea.vmem (%p29_p3), %s811_s0, %s643_s21 }
  0x11   : > { %v150_v0 = vld [vmem:[%s137_s25] sm:$0xff] (%p29_p3)  ;;  %v152_v1 = vld [vmem:[%s137_s25 + $0x8] sm:$0xff] (%p29_p3)  ;;  %v154_v2 = vld [vmem:[%s137_s25 + $0x10] sm:$0xff] (%p29_p3)  ;;  %s134_s26 = scalar_lea.vmem (%p29_p3), [#allocation2], %s644_s22 }
  0x12   : > { %v156_v3 = vld [vmem:[%s137_s25 + $0x18] sm:$0xff] (%p29_p3)  ;;  %v158_v4 = vld [vmem:[%s137_s25 + $0x40] sm:$0xff] (%p29_p3)  ;;  %v160_v5 = vld [vmem:[%s137_s25 + $0x48] sm:$0xff] (%p29_p3)  ;;  %151 = vst [vmem:[%s134_s26] sm:$0xff] (%p29_p3), %v150_v0 }
  0x13   : > { %153 = vst [vmem:[%s134_s26 + $0x8] sm:$0xff] (%p29_p3), %v152_v1  ;;  %155 = vst [vmem:[%s134_s26 + $0x10] sm:$0xff] (%p29_p3), %v154_v2  ;;  %v162_v6 = vld [vmem:[%s137_s25 + $0x50] sm:$0xff] (%p29_p3)  ;;  %v164_v7 = vld [vmem:[%s137_s25 + $0x58] sm:$0xff] (%p29_p3) }
  0x14   : > { %157 = vst [vmem:[%s134_s26 + $0x18] sm:$0xff] (%p29_p3), %v156_v3  ;;  %159 = vst [vmem:[%s134_s26 + $0x20] sm:$0xff] (%p29_p3), %v158_v4  ;;  %v166_v8 = vld [vmem:[%s137_s25 + $0x80] sm:$0xff] (%p29_p3)  ;;  %v168_v9 = vld [vmem:[%s137_s25 + $0x88] sm:$0xff] (%p29_p3) }
  0x15   : > { %161 = vst [vmem:[%s134_s26 + $0x28] sm:$0xff] %v160_v5  ;;  %163 = vst [vmem:[%s134_s26 + $0x30] sm:$0xff] %v162_v6  ;;  %v170_v10 = vld [vmem:[%s137_s25 + $0x90] sm:$0xff]  ;;  %v172_v11 = vld [vmem:[%s137_s25 + $0x98] sm:$0xff] }
  0x16   : > { %165 = vst [vmem:[%s134_s26 + $0x38] sm:$0xff] %v164_v7  ;;  %167 = vst [vmem:[%s134_s26 + $0x40] sm:$0xff] %v166_v8 }
  0x17   : > { %169 = vst [vmem:[%s134_s26 + $0x48] sm:$0xff] %v168_v9  ;;  %171 = vst [vmem:[%s134_s26 + $0x50] sm:$0xff] %v170_v10 }
  0x18   : > { %173 = vst [vmem:[%s134_s26 + $0x58] sm:$0xff] %v172_v11 }
  0x19 PF: > { %p610_p5 = scmp.ge.s32.totalorder %s703_s14, 1  ;;  %p178_p6 = scmp.lt.s32.totalorder %s703_s14, 3 }
  0x1b   : > { %p179_p7 = pnand %p610_p5, %p178_p6 }
  0x1c   : > { %s185_s27 = sand.u32 (!%p179_p7), 1, %s695_s12   ;;  %v705_v12 = vmov (!%p179_p7), 0   ;;  %v229_v13 = vld [vmem:[%s813_s2] sm:$0xf] (!%p179_p7)  ;;  %vm299_vm0 = vcmask (!%p179_p7), 1041408   ;;  %vm295_vm1 = vcmask (!%p179_p7), 162816   ;;  %v509_v49 = vlaneseq (!%p179_p7) }
  0x1d   : > { %182 = sbr.rel (%p179_p7) target bundleno = 275 (0x113), region = 51  ;;  %356 = vmatprep.mubr.bf16.mxu0 (!%p179_p7), %v705_v12  ;;  %397 = vmatprep.mubr.bf16.mxu1 (!%p179_p7), %v705_v12  ;;  %v216_v38 = vld [vmem:[%s812_s1] sm:$0x3] (!%p179_p7)  ;;  %v706_v47 = vmov (!%p179_p7), 1983009808   ;;  %s611_s7 = sshll.u32 (!%p179_p7), %s604_s15, 3 }
  0x1e   : > { %s645_s28 = smul.u32 (!%p179_p7), 96, %s185_s27  ;;  %672 = vset.pattern.permute.xlu0 (!%p179_p7), %v705_v12  ;;  %v507_v48 = vunpack.c.l.s4 (!%p179_p7), %v706_v47  ;;  %p210_p8 = scmp.lt.s32.totalorder (!%p179_p7), %s611_s7, 15  ;;  %v510_v52 = vshrl.u32 (!%p179_p7), %v509_v49, 7 }
  0x1f   : > { %232 = vperm.xlu0 (!%p179_p7), %672, %v229_v13  }
  0x20   : > { %s767_s4 = scalar_lea.vmem (!%p179_p7), [#allocation2], %s645_s28  ;;  %v508_v51 = vunpack.c.0.s8 (!%p179_p7), %v507_v48 }
  0x21   : > { %v217_v14 = vld [vmem:[%s767_s4] sm:$0xff] (!%p179_p7)  ;;  %v218_v16 = vld [vmem:[%s767_s4 + $0x8] sm:$0xff] (!%p179_p7)  ;;  %v219_v26 = vld [vmem:[%s767_s4 + $0x10] sm:$0xff] (!%p179_p7) }
  0x22   : > { %v221_v15 = vld [vmem:[%s767_s4 + $0x20] sm:$0xff] (!%p179_p7)  ;;  %v222_v18 = vld [vmem:[%s767_s4 + $0x28] sm:$0xff] (!%p179_p7)  ;;  %v223_v27 = vld [vmem:[%s767_s4 + $0x30] sm:$0xff] (!%p179_p7)  ;;  %v511_v58 = vsub.s32 (!%p179_p7), %v508_v51, %v510_v52 }
  0x23   : > { %v614_v17 = vcombine.high (!%p179_p7), %v217_v14, %v221_v15  ;;  %v613_v19 = vcombine.low (!%p179_p7), %v217_v14, %v221_v15  ;;  %v225_v20 = vld [vmem:[%s767_s4 + $0x40] sm:$0x33] (!%p179_p7)  ;;  %v226_v21 = vld [vmem:[%s767_s4 + $0x48] sm:$0x33] (!%p179_p7)  ;;  %v616_v22 = vcombine.high (!%p179_p7), %v218_v16, %v222_v18  ;;  %v615_v23 = vcombine.low (!%p179_p7), %v218_v16, %v222_v18  ;;  %v220_v30 = vld [vmem:[%s767_s4 + $0x18] sm:$0xff] (!%p179_p7) }
  0x24   : > { %v622_v24 = vcombine.high %v225_v20, %v225_v20  ;;  %v624_v25 = vcombine.high %v226_v21, %v226_v21  ;;  %v621_v28 = vcombine.low %v225_v20, %v225_v20  ;;  %v623_v29 = vcombine.low %v226_v21, %v226_v21  ;;  %v224_v31 = vld [vmem:[%s767_s4 + $0x38] sm:$0xff]  ;;  %v227_v36 = vld [vmem:[%s767_s4 + $0x50] sm:$0x33]  ;;  %s819_s7 = smov (!%p210_p8, %s611_s7), 15 }
  0x25   : > { %324 = vmatprep.subr.bf16.mxu0 %v614_v17  ;;  %365 = vmatprep.subr.bf16.mxu1 %v616_v22  ;;  %v618_v33 = vcombine.high %v219_v26, %v223_v27  ;;  %v620_v35 = vcombine.high %v220_v30, %v224_v31  ;;  %v228_v37 = vld [vmem:[%s767_s4 + $0x58] sm:$0x33]  ;;  %v617_v39 = vcombine.low %v219_v26, %v223_v27  ;;  %s612_s8 = sshll.u32 %s819_s7, 1 }
  0x26   : > { %325 = vmatpush1.bf16.msra.mxu0 %v613_v19  ;;  %366 = vmatpush1.bf16.msra.mxu1 %v615_v23  ;;  %v301_v32 = vsel %vm299_vm0, %v621_v28, 0  ;;  %v307_v34 = vsel %vm299_vm0, %v623_v29, 0  ;;  %v619_v40 = vcombine.low %v220_v30, %v224_v31  ;;  %v626_v41 = vcombine.high %v227_v36, %v227_v36  ;;  %s213_s11 = scalar_lea.vmem %s814_s3, %s612_s8 }
  0x27   : > { %629 = vmatprep.subr.msk.bf16.mxu0 %vm299_vm0, %v622_v24  ;;  %631 = vmatprep.subr.msk.bf16.mxu1 %vm299_vm0, %v624_v25  ;;  %v625_v42 = vcombine.low %v227_v36, %v227_v36  ;;  %v628_v43 = vcombine.high %v228_v37, %v228_v37  ;;  %v627_v44 = vcombine.low %v228_v37, %v228_v37 }
  0x29   : > { %v313_v45 = vsel %vm299_vm0, %v625_v42, 0  ;;  %v319_v46 = vsel %vm299_vm0, %v627_v44, 0 }
  0x2a   : > { %327 = vmatpush1.bf16.msra.mxu0 %v301_v32  ;;  %368 = vmatpush1.bf16.msra.mxu1 %v307_v34 }
  0x2b   : > { %406 = vmatprep.subr.bf16.mxu0 %v618_v33  ;;  %447 = vmatprep.subr.bf16.mxu1 %v620_v35 }
  0x2d   : > { %630 = vmatmul.mubr.msk.bf16.vlgmr.msra.gmra.mrb[0].mxu0 %vm295_vm1, %v216_v38  ;;  %632 = vmatmul.mubr.msk.bf16.vlgmr.msra.gmra.mrb[0].mxu1 %vm295_vm1, %v216_v38 }
  0x2e   : > { %407 = vmatpush1.bf16.msra.mxu0 %v617_v39  ;;  %448 = vmatpush1.bf16.msra.mxu1 %v619_v40 }
  0x2f   : > { %633 = vmatprep.subr.msk.bf16.mxu0 %vm299_vm0, %v626_v41  ;;  %635 = vmatprep.subr.msk.bf16.mxu1 %vm299_vm0, %v628_v43 }
  0x30   : > { %438 = vmatprep.mubr.bf16.mxu0 %v705_v12  ;;  %479 = vmatprep.mubr.bf16.mxu1 %v705_v12 }
  0x32   : > { %409 = vmatpush1.bf16.msra.mxu0 %v313_v45  ;;  %450 = vmatpush1.bf16.msra.mxu1 %v319_v46 }
  0x35   : > { %634 = vmatmul.mubr.msk.bf16.vlgmr.msra.gmra.mrb[4].mxu0 %vm295_vm1, %v216_v38  ;;  %636 = vmatmul.mubr.msk.bf16.vlgmr.msra.gmra.mrb[4].mxu1 %vm295_vm1, %v216_v38 }
  0x9e   : > { %v233_v50 = vpop.permute.xlu0 %232 }
 0x100   : > { %v358_v53 = vpop.f32.mrb[0].mxu0  ;;  %v399_v54 = vpop.f32.mrb[0].mxu1 }
 0x101   : > { %v359_v55 = vadd.f32 %v358_v53, %v233_v50  ;;  %v360_v56 = vpop.f32.mrb[1].mxu0  ;;  %v400_v59 = vadd.f32 %v399_v54, %v233_v50  ;;  %v401_v60 = vpop.f32.mrb[1].mxu1 }
 0x102   : > { %v361_v57 = vadd.f32 %v360_v56, %v233_v50  ;;  %v362_v61 = vpop.f32.mrb[2].mxu0  ;;  %v402_v62 = vadd.f32 %v401_v60, %v233_v50  ;;  %v403_v63 = vpop.f32.mrb[2].mxu1 }
 0x103   : > { %v363_v0 = vpop.f32.mrb[3].mxu0  ;;  %v404_v2 = vpop.f32.mrb[3].mxu1 }
 0x104   : > { %v637_v1 = vpack.c.bf16 %v361_v57, %v359_v55  ;;  %v638_v3 = vpack.c.bf16 %v402_v62, %v400_v59 }
 0x106   : > { %v512_v4 = vrot.slane %v637_v1, %v511_v58  ;;  %v519_v5 = vrot.slane %v638_v3, %v511_v58 }
 0x108   : > { %v440_v6 = vpop.f32.mrb[4].mxu0  ;;  %v520_v7 = vcombine.low %v512_v4, %v519_v5  ;;  %v481_v9 = vpop.f32.mrb[4].mxu1 }
 0x109   : > { %v441_v8 = vadd.f32 %v440_v6, %v233_v50  ;;  %v442_v10 = vpop.f32.mrb[5].mxu0  ;;  %v482_v11 = vadd.f32 %v481_v9, %v233_v50  ;;  %v483_v13 = vpop.f32.mrb[5].mxu1 }
 0x10a   : > { %v443_v12 = vadd.f32 %v442_v10, %v233_v50  ;;  %v444_v14 = vpop.f32.mrb[6].mxu0  ;;  %540 = vst [vmem:[%s213_s11] sm:$0xff] %v520_v7  ;;  %v484_v15 = vadd.f32 %v483_v13, %v233_v50  ;;  %v485_v16 = vpop.f32.mrb[6].mxu1 }
 0x10b   : > { %v445_v17 = vpop.f32.mrb[7].mxu0  ;;  %v486_v19 = vpop.f32.mrb[7].mxu1 }
 0x10c   : > { %v639_v18 = vpack.c.bf16 %v443_v12, %v441_v8  ;;  %v640_v20 = vpack.c.bf16 %v484_v15, %v482_v11 }
 0x10e   : > { %v529_v21 = vrot.slane %v639_v18, %v511_v58  ;;  %v536_v22 = vrot.slane %v640_v20, %v511_v58 }
 0x110   : > { %v537_v23 = vcombine.low %v529_v21, %v536_v22 }
 0x112   : > { %541 = vst [vmem:[%s213_s11 + $0x8] sm:$0xff] %v537_v23 }
 0x113 PF: > { %p10_p9 = scmp.ge.s32.totalorder %s744_s16, 4   ;;  %s815_s12 = smov %s699_s13 }
 0x114   : > { %s816_s13 = smov %s753_s19  ;;  %s817_s14 = smov %s744_s16 }
 0x115   :  { %12 = sbr.rel (!%p10_p9) target bundleno = 2 (0x2), region = 90 }

// kernel: refiner_block.6
= control target key start
LH: loop header
LB: loop body
LE: loop exit
PB: predicated region body
PF: predicated region fallthrough
CT: control target
= control target key end

     0   :  { %s1700_s12 = smov 0   ;;  %s1702_s13 = smov 0   ;;  %s2163_s0 = inlined_call_operand.vmem [shape: bf16[180,2048], index: 0, kind: input, shape index: {}]   ;;  %s2164_s1 = inlined_call_operand.vmem [shape: bf16[20,180], index: 1, kind: input, shape index: {}]   ;;  %s2165_s2 = inlined_call_operand.vmem [shape: f32[20,1], index: 2, kind: input, shape index: {}]   ;;  %s2166_s3 = inlined_call_operand.vmem [shape: bf16[20,2048], index: 3, kind: output, shape index: {}]  }
   0x1   :  { %s1704_s14 = smov 0  }
   0x2 LB: > { %s1463_s15 = sadd.s32 4294967295, %s1677_s14   ;;  %s1717_s16 = sadd.s32 1, %s1677_s14   ;;  %s1677_s14 = sphi %s1704_s14, %s2170_s14   ;;  %s1673_s13 = sphi %s1702_s13, %s2169_s13   ;;  %s1669_s12 = sphi %s1700_s12, %s2168_s12  }
   0x3   : > { %s17_s17 = ssub.s32 %s1677_s14, %s1717_s16  ;;  %s20_s18 = sadd.s32 1, %s1673_s13 }
   0x4   : > { %p18_p0 = scmp.eq.s32.totalorder %s17_s17, 0  ;;  %p27_p1 = scmp.ne.s32.totalorder %s1673_s13, %s1669_s12 }
   0x5   : > { %p28_p2 = scmp.eq.s32.totalorder %s1677_s14, 0  ;;  %p99_p3 = scmp.eq.s32.totalorder %s1463_s15, 1 }
   0x6   : > { %s1728_s19 = scalar_select %p18_p0, %s1673_s13, %s20_s18  }
   0x7   : > { %p29_p4 = por %p28_p2, %p27_p1  ;;  %p1730_p5 = por %p99_p3, %p27_p1 }
   0x8   : > { %p1466_p6 = scmp.ge.s32.totalorder %s1677_s14, 2 }
   0xa   : > { %127 = sbr.rel (%p1466_p6) target bundleno = 68 (0x44), region = 24 }
  0x11   : > { %130 = sbr.rel (!%p29_p4) target bundleno = 68 (0x44), region = 28  ;;  %s132_s21 = sand.u32 (%p29_p4), 1, %s1673_s13  }
  0x12   : > { %s1598_s22 = sshll.u32 (%p29_p4), %s1677_s14, 5  ;;  %s1612_s23 = smul.u32 (%p29_p4), 736, %s132_s21 }
  0x13   : > { %s1740_s26 = scalar_lea.vmem (%p29_p4), %s2163_s0, %s1598_s22 }
  0x14   : > { %v150_v0 = vld [vmem:[%s1740_s26] sm:$0xff] (%p29_p4)  ;;  %v152_v1 = vld [vmem:[%s1740_s26 + $0x8] sm:$0xff] (%p29_p4)  ;;  %v154_v2 = vld [vmem:[%s1740_s26 + $0x10] sm:$0xff] (%p29_p4)  ;;  %s1748_s27 = scalar_lea.vmem (%p29_p4), [#allocation2], %s1612_s23 }
  0x15   : > { %v156_v3 = vld [vmem:[%s1740_s26 + $0x18] sm:$0xff] (%p29_p4)  ;;  %v158_v4 = vld [vmem:[%s1740_s26 + $0x40] sm:$0xff] (%p29_p4)  ;;  %v160_v5 = vld [vmem:[%s1740_s26 + $0x48] sm:$0xff] (%p29_p4)  ;;  %151 = vst [vmem:[%s1748_s27] sm:$0xff] (%p29_p4), %v150_v0 }
  0x16   : > { %153 = vst [vmem:[%s1748_s27 + $0x8] sm:$0xff] (%p29_p4), %v152_v1  ;;  %155 = vst [vmem:[%s1748_s27 + $0x10] sm:$0xff] (%p29_p4), %v154_v2  ;;  %v162_v6 = vld [vmem:[%s1740_s26 + $0x50] sm:$0xff] (%p29_p4)  ;;  %v164_v7 = vld [vmem:[%s1740_s26 + $0x58] sm:$0xff] (%p29_p4) }
  0x17   : > { %157 = vst [vmem:[%s1748_s27 + $0x18] sm:$0xff] (%p29_p4), %v156_v3  ;;  %159 = vst [vmem:[%s1748_s27 + $0x20] sm:$0xff] (%p29_p4), %v158_v4  ;;  %v166_v8 = vld [vmem:[%s1740_s26 + $0x80] sm:$0xff] (%p29_p4)  ;;  %v168_v9 = vld [vmem:[%s1740_s26 + $0x88] sm:$0xff] (%p29_p4) }
  0x18   : > { %161 = vst [vmem:[%s1748_s27 + $0x28] sm:$0xff] %v160_v5  ;;  %163 = vst [vmem:[%s1748_s27 + $0x30] sm:$0xff] %v162_v6  ;;  %v170_v10 = vld [vmem:[%s1740_s26 + $0x90] sm:$0xff]  ;;  %v172_v11 = vld [vmem:[%s1740_s26 + $0x98] sm:$0xff] }
  0x19   : > { %165 = vst [vmem:[%s1748_s27 + $0x38] sm:$0xff] %v164_v7  ;;  %167 = vst [vmem:[%s1748_s27 + $0x40] sm:$0xff] %v166_v8  ;;  %v174_v12 = vld [vmem:[%s1740_s26 + $0xc0] sm:$0xff]  ;;  %v176_v13 = vld [vmem:[%s1740_s26 + $0xc8] sm:$0xff] }
  0x1a   : > { %169 = vst [vmem:[%s1748_s27 + $0x48] sm:$0xff] %v168_v9  ;;  %171 = vst [vmem:[%s1748_s27 + $0x50] sm:$0xff] %v170_v10  ;;  %v178_v14 = vld [vmem:[%s1740_s26 + $0xd0] sm:$0xff]  ;;  %v180_v15 = vld [vmem:[%s1740_s26 + $0xd8] sm:$0xff] }
  0x1b   : > { %173 = vst [vmem:[%s1748_s27 + $0x58] sm:$0xff] %v172_v11  ;;  %175 = vst [vmem:[%s1748_s27 + $0x60] sm:$0xff] %v174_v12  ;;  %v182_v16 = vld [vmem:[%s1740_s26 + $0x100] sm:$0xff]  ;;  %v184_v17 = vld [vmem:[%s1740_s26 + $0x108] sm:$0xff] }
  0x1c   : > { %177 = vst [vmem:[%s1748_s27 + $0x68] sm:$0xff] %v176_v13  ;;  %179 = vst [vmem:[%s1748_s27 + $0x70] sm:$0xff] %v178_v14  ;;  %v186_v18 = vld [vmem:[%s1740_s26 + $0x110] sm:$0xff]  ;;  %v188_v19 = vld [vmem:[%s1740_s26 + $0x118] sm:$0xff] }
  0x1d   : > { %181 = vst [vmem:[%s1748_s27 + $0x78] sm:$0xff] %v180_v15  ;;  %183 = vst [vmem:[%s1748_s27 + $0x80] sm:$0xff] %v182_v16  ;;  %v190_v20 = vld [vmem:[%s1740_s26 + $0x140] sm:$0xff]  ;;  %v192_v21 = vld [vmem:[%s1740_s26 + $0x148] sm:$0xff] }
  0x1e   : > { %185 = vst [vmem:[%s1748_s27 + $0x88] sm:$0xff] %v184_v17  ;;  %187 = vst [vmem:[%s1748_s27 + $0x90] sm:$0xff] %v186_v18  ;;  %v194_v22 = vld [vmem:[%s1740_s26 + $0x150] sm:$0xff]  ;;  %v196_v23 = vld [vmem:[%s1740_s26 + $0x158] sm:$0xff] }
  0x1f   : > { %189 = vst [vmem:[%s1748_s27 + $0x98] sm:$0xff] %v188_v19  ;;  %191 = vst [vmem:[%s1748_s27 + $0xa0] sm:$0xff] %v190_v20  ;;  %v198_v24 = vld [vmem:[%s1740_s26 + $0x180] sm:$0xff]  ;;  %v200_v25 = vld [vmem:[%s1740_s26 + $0x188] sm:$0xff] }
  0x20   : > { %193 = vst [vmem:[%s1748_s27 + $0xa8] sm:$0xff] %v192_v21  ;;  %195 = vst [vmem:[%s1748_s27 + $0xb0] sm:$0xff] %v194_v22  ;;  %v202_v26 = vld [vmem:[%s1740_s26 + $0x190] sm:$0xff]  ;;  %v204_v27 = vld [vmem:[%s1740_s26 + $0x198] sm:$0xff] }
  0x21   : > { %197 = vst [vmem:[%s1748_s27 + $0xb8] sm:$0xff] %v196_v23  ;;  %199 = vst [vmem:[%s1748_s27 + $0xc0] sm:$0xff] %v198_v24  ;;  %v206_v28 = vld [vmem:[%s1740_s26 + $0x1c0] sm:$0xff]  ;;  %v208_v29 = vld [vmem:[%s1740_s26 + $0x1c8] sm:$0xff] }
  0x22   : > { %201 = vst [vmem:[%s1748_s27 + $0xc8] sm:$0xff] %v200_v25  ;;  %203 = vst [vmem:[%s1748_s27 + $0xd0] sm:$0xff] %v202_v26  ;;  %v210_v30 = vld [vmem:[%s1740_s26 + $0x1d0] sm:$0xff]  ;;  %v212_v31 = vld [vmem:[%s1740_s26 + $0x1d8] sm:$0xff] }
  0x23   : > { %205 = vst [vmem:[%s1748_s27 + $0xd8] sm:$0xff] %v204_v27  ;;  %207 = vst [vmem:[%s1748_s27 + $0xe0] sm:$0xff] %v206_v28  ;;  %v214_v32 = vld [vmem:[%s1740_s26 + $0x200] sm:$0xff]  ;;  %v216_v33 = vld [vmem:[%s1740_s26 + $0x208] sm:$0xff] }
  0x24   : > { %209 = vst [vmem:[%s1748_s27 + $0xe8] sm:$0xff] %v208_v29  ;;  %211 = vst [vmem:[%s1748_s27 + $0xf0] sm:$0xff] %v210_v30  ;;  %v218_v34 = vld [vmem:[%s1740_s26 + $0x210] sm:$0xff]  ;;  %v220_v35 = vld [vmem:[%s1740_s26 + $0x218] sm:$0xff] }
  0x25   : > { %213 = vst [vmem:[%s1748_s27 + $0xf8] sm:$0xff] %v212_v31  ;;  %215 = vst [vmem:[%s1748_s27 + $0x100] sm:$0xff] %v214_v32  ;;  %v222_v36 = vld [vmem:[%s1740_s26 + $0x240] sm:$0xff]  ;;  %v224_v37 = vld [vmem:[%s1740_s26 + $0x248] sm:$0xff] }
  0x26   : > { %217 = vst [vmem:[%s1748_s27 + $0x108] sm:$0xff] %v216_v33  ;;  %219 = vst [vmem:[%s1748_s27 + $0x110] sm:$0xff] %v218_v34  ;;  %v226_v38 = vld [vmem:[%s1740_s26 + $0x250] sm:$0xff]  ;;  %v228_v39 = vld [vmem:[%s1740_s26 + $0x258] sm:$0xff] }
  0x27   : > { %221 = vst [vmem:[%s1748_s27 + $0x118] sm:$0xff] %v220_v35  ;;  %223 = vst [vmem:[%s1748_s27 + $0x120] sm:$0xff] %v222_v36  ;;  %v230_v40 = vld [vmem:[%s1740_s26 + $0x280] sm:$0xff]  ;;  %v232_v41 = vld [vmem:[%s1740_s26 + $0x288] sm:$0xff] }
  0x28   : > { %225 = vst [vmem:[%s1748_s27 + $0x128] sm:$0xff] %v224_v37  ;;  %227 = vst [vmem:[%s1748_s27 + $0x130] sm:$0xff] %v226_v38  ;;  %v234_v42 = vld [vmem:[%s1740_s26 + $0x290] sm:$0xff]  ;;  %v236_v43 = vld [vmem:[%s1740_s26 + $0x298] sm:$0xff] }
  0x29   : > { %229 = vst [vmem:[%s1748_s27 + $0x138] sm:$0xff] %v228_v39  ;;  %231 = vst [vmem:[%s1748_s27 + $0x140] sm:$0xff] %v230_v40  ;;  %v238_v44 = vld [vmem:[%s1740_s26 + $0x2c0] sm:$0xff]  ;;  %v240_v45 = vld [vmem:[%s1740_s26 + $0x2c8] sm:$0xff] }
  0x2a   : > { %233 = vst [vmem:[%s1748_s27 + $0x148] sm:$0xff] %v232_v41  ;;  %235 = vst [vmem:[%s1748_s27 + $0x150] sm:$0xff] %v234_v42  ;;  %v242_v46 = vld [vmem:[%s1740_s26 + $0x2d0] sm:$0xff]  ;;  %v244_v47 = vld [vmem:[%s1740_s26 + $0x2d8] sm:$0xff] }
  0x2b   : > { %237 = vst [vmem:[%s1748_s27 + $0x158] sm:$0xff] %v236_v43  ;;  %239 = vst [vmem:[%s1748_s27 + $0x160] sm:$0xff] %v238_v44  ;;  %v246_v48 = vld [vmem:[%s1740_s26 + $0x300] sm:$0xff]  ;;  %v248_v49 = vld [vmem:[%s1740_s26 + $0x308] sm:$0xff] }
  0x2c   : > { %241 = vst [vmem:[%s1748_s27 + $0x168] sm:$0xff] %v240_v45  ;;  %243 = vst [vmem:[%s1748_s27 + $0x170] sm:$0xff] %v242_v46  ;;  %v250_v50 = vld [vmem:[%s1740_s26 + $0x310] sm:$0xff]  ;;  %v252_v51 = vld [vmem:[%s1740_s26 + $0x318] sm:$0xff] }
  0x2d   : > { %245 = vst [vmem:[%s1748_s27 + $0x178] sm:$0xff] %v244_v47  ;;  %247 = vst [vmem:[%s1748_s27 + $0x180] sm:$0xff] %v246_v48  ;;  %v254_v52 = vld [vmem:[%s1740_s26 + $0x340] sm:$0xff]  ;;  %v256_v53 = vld [vmem:[%s1740_s26 + $0x348] sm:$0xff] }
  0x2e   : > { %249 = vst [vmem:[%s1748_s27 + $0x188] sm:$0xff] %v248_v49  ;;  %251 = vst [vmem:[%s1748_s27 + $0x190] sm:$0xff] %v250_v50  ;;  %v258_v54 = vld [vmem:[%s1740_s26 + $0x350] sm:$0xff]  ;;  %v260_v55 = vld [vmem:[%s1740_s26 + $0x358] sm:$0xff] }
  0x2f   : > { %253 = vst [vmem:[%s1748_s27 + $0x198] sm:$0xff] %v252_v51  ;;  %255 = vst [vmem:[%s1748_s27 + $0x1a0] sm:$0xff] %v254_v52  ;;  %v262_v56 = vld [vmem:[%s1740_s26 + $0x380] sm:$0xff]  ;;  %v264_v57 = vld [vmem:[%s1740_s26 + $0x388] sm:$0xff] }
  0x30   : > { %257 = vst [vmem:[%s1748_s27 + $0x1a8] sm:$0xff] %v256_v53  ;;  %259 = vst [vmem:[%s1748_s27 + $0x1b0] sm:$0xff] %v258_v54  ;;  %v266_v58 = vld [vmem:[%s1740_s26 + $0x390] sm:$0xff]  ;;  %v268_v59 = vld [vmem:[%s1740_s26 + $0x398] sm:$0xff] }
  0x31   : > { %261 = vst [vmem:[%s1748_s27 + $0x1b8] sm:$0xff] %v260_v55  ;;  %263 = vst [vmem:[%s1748_s27 + $0x1c0] sm:$0xff] %v262_v56  ;;  %v270_v60 = vld [vmem:[%s1740_s26 + $0x3c0] sm:$0xff]  ;;  %v272_v61 = vld [vmem:[%s1740_s26 + $0x3c8] sm:$0xff] }
  0x32   : > { %265 = vst [vmem:[%s1748_s27 + $0x1c8] sm:$0xff] %v264_v57  ;;  %267 = vst [vmem:[%s1748_s27 + $0x1d0] sm:$0xff] %v266_v58  ;;  %v274_v62 = vld [vmem:[%s1740_s26 + $0x3d0] sm:$0xff]  ;;  %v276_v63 = vld [vmem:[%s1740_s26 + $0x3d8] sm:$0xff] }
  0x33   : > { %269 = vst [vmem:[%s1748_s27 + $0x1d8] sm:$0xff] %v268_v59  ;;  %271 = vst [vmem:[%s1748_s27 + $0x1e0] sm:$0xff] %v270_v60  ;;  %v278_v0 = vld [vmem:[%s1740_s26 + $0x400] sm:$0xff]  ;;  %v280_v1 = vld [vmem:[%s1740_s26 + $0x408] sm:$0xff] }
  0x34   : > { %273 = vst [vmem:[%s1748_s27 + $0x1e8] sm:$0xff] %v272_v61  ;;  %275 = vst [vmem:[%s1748_s27 + $0x1f0] sm:$0xff] %v274_v62  ;;  %v282_v2 = vld [vmem:[%s1740_s26 + $0x410] sm:$0xff]  ;;  %v284_v3 = vld [vmem:[%s1740_s26 + $0x418] sm:$0xff] }
  0x35   : > { %277 = vst [vmem:[%s1748_s27 + $0x1f8] sm:$0xff] %v276_v63  ;;  %279 = vst [vmem:[%s1748_s27 + $0x200] sm:$0xff] %v278_v0  ;;  %v286_v4 = vld [vmem:[%s1740_s26 + $0x440] sm:$0xff]  ;;  %v288_v5 = vld [vmem:[%s1740_s26 + $0x448] sm:$0xff] }
  0x36   : > { %281 = vst [vmem:[%s1748_s27 + $0x208] sm:$0xff] %v280_v1  ;;  %283 = vst [vmem:[%s1748_s27 + $0x210] sm:$0xff] %v282_v2  ;;  %v290_v6 = vld [vmem:[%s1740_s26 + $0x450] sm:$0xff]  ;;  %v292_v7 = vld [vmem:[%s1740_s26 + $0x458] sm:$0xff] }
  0x37   : > { %285 = vst [vmem:[%s1748_s27 + $0x218] sm:$0xff] %v284_v3  ;;  %287 = vst [vmem:[%s1748_s27 + $0x220] sm:$0xff] %v286_v4  ;;  %v294_v8 = vld [vmem:[%s1740_s26 + $0x480] sm:$0xff]  ;;  %v296_v9 = vld [vmem:[%s1740_s26 + $0x488] sm:$0xff] }
  0x38   : > { %289 = vst [vmem:[%s1748_s27 + $0x228] sm:$0xff] %v288_v5  ;;  %291 = vst [vmem:[%s1748_s27 + $0x230] sm:$0xff] %v290_v6  ;;  %v298_v10 = vld [vmem:[%s1740_s26 + $0x490] sm:$0xff]  ;;  %v300_v11 = vld [vmem:[%s1740_s26 + $0x498] sm:$0xff] }
  0x39   : > { %293 = vst [vmem:[%s1748_s27 + $0x238] sm:$0xff] %v292_v7  ;;  %295 = vst [vmem:[%s1748_s27 + $0x240] sm:$0xff] %v294_v8  ;;  %v302_v12 = vld [vmem:[%s1740_s26 + $0x4c0] sm:$0xff]  ;;  %v304_v13 = vld [vmem:[%s1740_s26 + $0x4c8] sm:$0xff] }
  0x3a   : > { %297 = vst [vmem:[%s1748_s27 + $0x248] sm:$0xff] %v296_v9  ;;  %299 = vst [vmem:[%s1748_s27 + $0x250] sm:$0xff] %v298_v10  ;;  %v306_v14 = vld [vmem:[%s1740_s26 + $0x4d0] sm:$0xff]  ;;  %v308_v15 = vld [vmem:[%s1740_s26 + $0x4d8] sm:$0xff] }
  0x3b   : > { %301 = vst [vmem:[%s1748_s27 + $0x258] sm:$0xff] %v300_v11  ;;  %303 = vst [vmem:[%s1748_s27 + $0x260] sm:$0xff] %v302_v12  ;;  %v310_v16 = vld [vmem:[%s1740_s26 + $0x500] sm:$0xff]  ;;  %v312_v17 = vld [vmem:[%s1740_s26 + $0x508] sm:$0xff] }
  0x3c   : > { %305 = vst [vmem:[%s1748_s27 + $0x268] sm:$0xff] %v304_v13  ;;  %307 = vst [vmem:[%s1748_s27 + $0x270] sm:$0xff] %v306_v14  ;;  %v314_v18 = vld [vmem:[%s1740_s26 + $0x510] sm:$0xff]  ;;  %v316_v19 = vld [vmem:[%s1740_s26 + $0x518] sm:$0xff] }
  0x3d   : > { %309 = vst [vmem:[%s1748_s27 + $0x278] sm:$0xff] %v308_v15  ;;  %311 = vst [vmem:[%s1748_s27 + $0x280] sm:$0xff] %v310_v16  ;;  %v318_v20 = vld [vmem:[%s1740_s26 + $0x540] sm:$0xff]  ;;  %v320_v21 = vld [vmem:[%s1740_s26 + $0x548] sm:$0xff] }
  0x3e   : > { %313 = vst [vmem:[%s1748_s27 + $0x288] sm:$0xff] %v312_v17  ;;  %315 = vst [vmem:[%s1748_s27 + $0x290] sm:$0xff] %v314_v18  ;;  %v322_v22 = vld [vmem:[%s1740_s26 + $0x550] sm:$0xff]  ;;  %v324_v23 = vld [vmem:[%s1740_s26 + $0x558] sm:$0xff] }
  0x3f   : > { %317 = vst [vmem:[%s1748_s27 + $0x298] sm:$0xff] %v316_v19  ;;  %319 = vst [vmem:[%s1748_s27 + $0x2a0] sm:$0xff] %v318_v20  ;;  %v326_v24 = vld [vmem:[%s1740_s26 + $0x580] sm:$0xff]  ;;  %v328_v25 = vld [vmem:[%s1740_s26 + $0x588] sm:$0xff] }
  0x40   : > { %321 = vst [vmem:[%s1748_s27 + $0x2a8] sm:$0xff] %v320_v21  ;;  %323 = vst [vmem:[%s1748_s27 + $0x2b0] sm:$0xff] %v322_v22  ;;  %v330_v26 = vld [vmem:[%s1740_s26 + $0x590] sm:$0xff]  ;;  %v332_v27 = vld [vmem:[%s1740_s26 + $0x598] sm:$0xff] }
  0x41   : > { %325 = vst [vmem:[%s1748_s27 + $0x2b8] sm:$0xff] %v324_v23  ;;  %327 = vst [vmem:[%s1748_s27 + $0x2c0] sm:$0xff] %v326_v24 }
  0x42   : > { %329 = vst [vmem:[%s1748_s27 + $0x2c8] sm:$0xff] %v328_v25  ;;  %331 = vst [vmem:[%s1748_s27 + $0x2d0] sm:$0xff] %v330_v26 }
  0x43   : > { %333 = vst [vmem:[%s1748_s27 + $0x2d8] sm:$0xff] %v332_v27 }
  0x44 PF: > { %p1469_p7 = scmp.ge.s32.totalorder %s1677_s14, 1  ;;  %p338_p8 = scmp.lt.s32.totalorder %s1677_s14, 3 }
  0x46   : > { %p339_p9 = pnand %p1469_p7, %p338_p8 }
  0x47   : > { %s345_s28 = sand.u32 (!%p339_p9), 1, %s1669_s12   ;;  %v1934_v28 = vld [vmem:[%s2164_s1 + $0x4] ss:$8 sps:$4 sm:$0xff] (!%p339_p9)   ;;  %vm958_vm0 = vcmask (!%p339_p9), 424960   ;;  %v467_v30 = vld [vmem:[%s2165_s2 + $0x10] sm:$0xf] (!%p339_p9) }
  0x48   : > { %342 = sbr.rel (%p339_p9) target bundleno = 416 (0x1a0), region = 51  ;;  %1571 = vmatprep.mubr.msk.bf16.mxu0 (!%p339_p9), %vm958_vm0, %v1934_v28  ;;  %1574 = vmatprep.mubr.msk.bf16.mxu1 (!%p339_p9), %vm958_vm0, %v1934_v28  ;;  %v465_v29 = vld [vmem:[%s2165_s2] sm:$0xff] (!%p339_p9)  ;;  %v1679_v31 = vmov (!%p339_p9), 0   ;;  %v466_v51 = vld [vmem:[%s2165_s2 + $0x8] sm:$0xff] (!%p339_p9)  ;;  %vm965_vm1 = vcmask (!%p339_p9), 1041408  }
  0x49   : > { %s1613_s4 = smul.u32 (!%p339_p9), 736, %s345_s28  ;;  %1640 = vset.pattern.permute.xlu0 (!%p339_p9), %v1679_v31  ;;  %1641 = vset.pattern.permute.xlu1 (!%p339_p9), %v1679_v31 }
  0x4a   : > { %470 = vperm.xlu0 (!%p339_p9), %1640, %v465_v29   ;;  %480 = vperm.xlu1 (!%p339_p9), %1641, %v467_v30   ;;  %s2093_s23 = smul.u32 (!%p339_p9), 96, %s345_s28 }
  0x4b   : > { %s1948_s9 = scalar_lea.vmem (!%p339_p9), [#allocation2], %s1613_s4 }
  0x4c   : > { %v373_v32 = vld [vmem:[%s1948_s9] sm:$0xff] (!%p339_p9)  ;;  %v374_v34 = vld [vmem:[%s1948_s9 + $0x8] sm:$0xff] (!%p339_p9)  ;;  %s2104_s12 = scalar_lea.vmem (!%p339_p9), [#allocation3], %s2093_s23 }
  0x4d   : > { %v377_v33 = vld [vmem:[%s1948_s9 + $0x20] sm:$0xff] (!%p339_p9)  ;;  %v378_v36 = vld [vmem:[%s1948_s9 + $0x28] sm:$0xff] (!%p339_p9) }
  0x4e   : > { %v1475_v35 = vcombine.high (!%p339_p9), %v373_v32, %v377_v33  ;;  %v1474_v37 = vcombine.low (!%p339_p9), %v373_v32, %v377_v33  ;;  %v381_v38 = vld [vmem:[%s1948_s9 + $0x40] sm:$0xff] (!%p339_p9)  ;;  %v1477_v40 = vcombine.high (!%p339_p9), %v374_v34, %v378_v36  ;;  %v1476_v41 = vcombine.low (!%p339_p9), %v374_v34, %v378_v36  ;;  %v382_v43 = vld [vmem:[%s1948_s9 + $0x48] sm:$0xff] (!%p339_p9)  ;;  %475 = vperm.xlu0 (!%p339_p9), %1640, %v466_v51  }
  0x4f   : > { %v385_v39 = vld [vmem:[%s1948_s9 + $0x60] sm:$0xff]  ;;  %v386_v44 = vld [vmem:[%s1948_s9 + $0x68] sm:$0xff]  ;;  %s1611_s24 = sshll.u32 (%p1730_p5), %s1463_s15, 5 }
  0x50   : > { %v1483_v42 = vcombine.high %v381_v38, %v385_v39  ;;  %v389_v45 = vld [vmem:[%s1948_s9 + $0x80] sm:$0xff]  ;;  %990 = vmatprep.subr.bf16.mxu0 %v1475_v35  ;;  %v1485_v46 = vcombine.high %v382_v43, %v386_v44  ;;  %v390_v48 = vld [vmem:[%s1948_s9 + $0x88] sm:$0xff]  ;;  %1041 = vmatprep.subr.bf16.mxu1 %v1477_v40  ;;  %v1482_v50 = vcombine.low %v381_v38, %v385_v39  ;;  %s1367_s20 = scalar_lea.vmem (%p1730_p5), %s2166_s3, %s1611_s24 }
  0x51   : > { %v393_v47 = vld [vmem:[%s1948_s9 + $0xa0] sm:$0xff]  ;;  %v394_v49 = vld [vmem:[%s1948_s9 + $0xa8] sm:$0xff]  ;;  %991 = vmatpush1.bf16.msra.mxu0 %v1474_v37  ;;  %1042 = vmatpush1.bf16.msra.mxu1 %v1476_v41  ;;  %v1484_v52 = vcombine.low %v382_v43, %v386_v44 }
  0x52   : > { %992 = vmatprep.subr.bf16.mxu0 %v1483_v42  ;;  %v1491_v53 = vcombine.high %v389_v45, %v393_v47  ;;  %1043 = vmatprep.subr.bf16.mxu1 %v1485_v46  ;;  %v1493_v54 = vcombine.high %v390_v48, %v394_v49  ;;  %v397_v55 = vld [vmem:[%s1948_s9 + $0xc0] sm:$0xff]  ;;  %v398_v57 = vld [vmem:[%s1948_s9 + $0xc8] sm:$0xff]  ;;  %v1490_v59 = vcombine.low %v389_v45, %v393_v47 }
  0x53   : > { %v401_v56 = vld [vmem:[%s1948_s9 + $0xe0] sm:$0xff]  ;;  %v402_v58 = vld [vmem:[%s1948_s9 + $0xe8] sm:$0xff]  ;;  %v1492_v60 = vcombine.low %v390_v48, %v394_v49 }
  0x54   : > { %v1499_v61 = vcombine.high %v397_v55, %v401_v56  ;;  %v1501_v62 = vcombine.high %v398_v57, %v402_v58  ;;  %v405_v63 = vld [vmem:[%s1948_s9 + $0x100] sm:$0xff]  ;;  %v406_v1 = vld [vmem:[%s1948_s9 + $0x108] sm:$0xff]  ;;  %v1498_v3 = vcombine.low %v397_v55, %v401_v56  ;;  %v1500_v4 = vcombine.low %v398_v57, %v402_v58 }
  0x55   : > { %993 = vmatpush1.bf16.msra.mxu0 %v1482_v50  ;;  %1044 = vmatpush1.bf16.msra.mxu1 %v1484_v52  ;;  %v409_v0 = vld [vmem:[%s1948_s9 + $0x120] sm:$0xff]  ;;  %v410_v2 = vld [vmem:[%s1948_s9 + $0x128] sm:$0xff] }
  0x56   : > { %994 = vmatprep.subr.bf16.mxu0 %v1491_v53  ;;  %1045 = vmatprep.subr.bf16.mxu1 %v1493_v54  ;;  %v1507_v5 = vcombine.high %v405_v63, %v409_v0  ;;  %v1509_v6 = vcombine.high %v406_v1, %v410_v2  ;;  %v413_v7 = vld [vmem:[%s1948_s9 + $0x140] sm:$0xff]  ;;  %v414_v9 = vld [vmem:[%s1948_s9 + $0x148] sm:$0xff]  ;;  %v1506_v11 = vcombine.low %v405_v63, %v409_v0  ;;  %v375_v0 = vld [vmem:[%s1948_s9 + $0x10] sm:$0xff] }
  0x57   : > { %v417_v8 = vld [vmem:[%s1948_s9 + $0x160] sm:$0xff]  ;;  %v418_v10 = vld [vmem:[%s1948_s9 + $0x168] sm:$0xff]  ;;  %v1508_v12 = vcombine.low %v406_v1, %v410_v2  ;;  %v379_v1 = vld [vmem:[%s1948_s9 + $0x30] sm:$0xff] }
  0x58   : > { %v1515_v13 = vcombine.high %v413_v7, %v417_v8  ;;  %v1517_v14 = vcombine.high %v414_v9, %v418_v10  ;;  %v421_v15 = vld [vmem:[%s1948_s9 + $0x180] sm:$0xff]  ;;  %v422_v17 = vld [vmem:[%s1948_s9 + $0x188] sm:$0xff]  ;;  %v1514_v19 = vcombine.low %v413_v7, %v417_v8  ;;  %v1516_v20 = vcombine.low %v414_v9, %v418_v10  ;;  %v376_v2 = vld [vmem:[%s1948_s9 + $0x18] sm:$0xff] }
  0x59   : > { %995 = vmatpush1.bf16.msra.mxu0 %v1490_v59  ;;  %1046 = vmatpush1.bf16.msra.mxu1 %v1492_v60  ;;  %v425_v16 = vld [vmem:[%s1948_s9 + $0x1a0] sm:$0xff]  ;;  %v426_v18 = vld [vmem:[%s1948_s9 + $0x1a8] sm:$0xff]  ;;  %v383_v9 = vld [vmem:[%s1948_s9 + $0x50] sm:$0xff] }
  0x5a   : > { %996 = vmatprep.subr.bf16.mxu0 %v1499_v61  ;;  %1047 = vmatprep.subr.bf16.mxu1 %v1501_v62  ;;  %v1523_v21 = vcombine.high %v421_v15, %v425_v16  ;;  %v1525_v22 = vcombine.high %v422_v17, %v426_v18  ;;  %v429_v23 = vld [vmem:[%s1948_s9 + $0x1c0] sm:$0xff]  ;;  %v430_v25 = vld [vmem:[%s1948_s9 + $0x1c8] sm:$0xff]  ;;  %v1522_v27 = vcombine.low %v421_v15, %v425_v16  ;;  %v387_v10 = vld [vmem:[%s1948_s9 + $0x70] sm:$0xff] }
  0x5b   : > { %v433_v24 = vld [vmem:[%s1948_s9 + $0x1e0] sm:$0xff]  ;;  %v434_v26 = vld [vmem:[%s1948_s9 + $0x1e8] sm:$0xff]  ;;  %v1524_v29 = vcombine.low %v422_v17, %v426_v18  ;;  %v1487_v16 = vcombine.high %v383_v9, %v387_v10  ;;  %v391_v18 = vld [vmem:[%s1948_s9 + $0x90] sm:$0xff] }
  0x5c   : > { %v1531_v30 = vcombine.high %v429_v23, %v433_v24  ;;  %v1533_v31 = vcombine.high %v430_v25, %v434_v26  ;;  %v437_v32 = vld [vmem:[%s1948_s9 + $0x200] sm:$0xff]  ;;  %v438_v34 = vld [vmem:[%s1948_s9 + $0x208] sm:$0xff]  ;;  %v1530_v36 = vcombine.low %v429_v23, %v433_v24  ;;  %v1532_v37 = vcombine.low %v430_v25, %v434_v26 }
  0x5d   : > { %997 = vmatpush1.bf16.msra.mxu0 %v1498_v3  ;;  %1048 = vmatpush1.bf16.msra.mxu1 %v1500_v4  ;;  %v441_v33 = vld [vmem:[%s1948_s9 + $0x220] sm:$0xff]  ;;  %v442_v35 = vld [vmem:[%s1948_s9 + $0x228] sm:$0xff]  ;;  %v380_v3 = vld [vmem:[%s1948_s9 + $0x38] sm:$0xff]  ;;  %v1486_v23 = vcombine.low %v383_v9, %v387_v10 }
  0x5e   : > { %998 = vmatprep.subr.bf16.mxu0 %v1507_v5  ;;  %1049 = vmatprep.subr.bf16.mxu1 %v1509_v6  ;;  %v1539_v38 = vcombine.high %v437_v32, %v441_v33  ;;  %v1541_v39 = vcombine.high %v438_v34, %v442_v35  ;;  %v445_v40 = vld [vmem:[%s1948_s9 + $0x240] sm:$0xff]  ;;  %v446_v42 = vld [vmem:[%s1948_s9 + $0x248] sm:$0xff]  ;;  %v1538_v44 = vcombine.low %v437_v32, %v441_v33 }
  0x5f   : > { %v449_v41 = vld [vmem:[%s1948_s9 + $0x260] sm:$0xff]  ;;  %v450_v43 = vld [vmem:[%s1948_s9 + $0x268] sm:$0xff]  ;;  %v1540_v45 = vcombine.low %v438_v34, %v442_v35  ;;  %v1479_v5 = vcombine.high %v375_v0, %v379_v1  ;;  %v1481_v8 = vcombine.high %v376_v2, %v380_v3  ;;  %v1480_v15 = vcombine.low %v376_v2, %v380_v3 }
  0x60   : > { %v1547_v46 = vcombine.high %v445_v40, %v449_v41  ;;  %v1549_v47 = vcombine.high %v446_v42, %v450_v43  ;;  %v453_v48 = vld [vmem:[%s1948_s9 + $0x280] sm:$0xff]  ;;  %v454_v50 = vld [vmem:[%s1948_s9 + $0x288] sm:$0xff]  ;;  %v1546_v52 = vcombine.low %v445_v40, %v449_v41  ;;  %v1548_v53 = vcombine.low %v446_v42, %v450_v43  ;;  %v412_v40 = vld [vmem:[%s1948_s9 + $0x138] sm:$0xff] }
  0x61   : > { %999 = vmatpush1.bf16.msra.mxu0 %v1506_v11  ;;  %1050 = vmatpush1.bf16.msra.mxu1 %v1508_v12  ;;  %v457_v49 = vld [vmem:[%s1948_s9 + $0x2a0] sm:$0xff]  ;;  %v458_v51 = vld [vmem:[%s1948_s9 + $0x2a8] sm:$0xff]  ;;  %v384_v11 = vld [vmem:[%s1948_s9 + $0x58] sm:$0xff] }
  0x62   : > { %1000 = vmatprep.subr.bf16.mxu0 %v1515_v13  ;;  %1051 = vmatprep.subr.bf16.mxu1 %v1517_v14  ;;  %v1555_v54 = vcombine.high %v453_v48, %v457_v49  ;;  %v1557_v55 = vcombine.high %v454_v50, %v458_v51  ;;  %v461_v56 = vld [vmem:[%s1948_s9 + $0x2c0] sm:$0x33]  ;;  %v462_v57 = vld [vmem:[%s1948_s9 + $0x2c8] sm:$0x33]  ;;  %v1554_v58 = vcombine.low %v453_v48, %v457_v49  ;;  %v388_v12 = vld [vmem:[%s1948_s9 + $0x78] sm:$0xff] }
  0x63   : > { %v1556_v59 = vcombine.low %v454_v50, %v458_v51  ;;  %v1563_v60 = vcombine.high %v461_v56, %v461_v56  ;;  %v1562_v61 = vcombine.low %v461_v56, %v461_v56  ;;  %v1565_v62 = vcombine.high %v462_v57, %v462_v57  ;;  %v2010_v7 = vld [vmem:[%s2164_s1] ss:$8 sps:$4 sm:$0xff]   ;;  %v372_v13 = vld [vmem:[%s2164_s1 + $0x10] sm:$0x33]  ;;  %v420_v48 = vld [vmem:[%s1948_s9 + $0x178] sm:$0xff] }
  0x64   : > { %v1564_v63 = vcombine.low %v462_v57, %v462_v57  ;;  %v1478_v14 = vcombine.low %v375_v0, %v379_v1  ;;  %v1489_v17 = vcombine.high %v384_v11, %v388_v12  ;;  %v1488_v24 = vcombine.low %v384_v11, %v388_v12  ;;  %v428_v56 = vld [vmem:[%s1948_s9 + $0x1b8] sm:$0xff] }
  0x65   : > { %1001 = vmatpush1.bf16.msra.mxu0 %v1514_v19  ;;  %1052 = vmatpush1.bf16.msra.mxu1 %v1516_v20  ;;  %v967_v4 = vsel %vm965_vm1, %v1562_v61, 0  ;;  %v395_v19 = vld [vmem:[%s1948_s9 + $0xb0] sm:$0xff]  ;;  %v2021_v20 = vcombine.high %v372_v13, %v372_v13  ;;  %v2035_v32 = vcombine.low %v372_v13, %v372_v13 }
  0x66   : > { %1002 = vmatprep.subr.bf16.mxu0 %v1523_v21  ;;  %1053 = vmatprep.subr.bf16.mxu1 %v1525_v22  ;;  %v973_v6 = vsel %vm965_vm1, %v1564_v63, 0  ;;  %v392_v21 = vld [vmem:[%s1948_s9 + $0x98] sm:$0xff]  ;;  %v1495_v25 = vcombine.high %v391_v18, %v395_v19  ;;  %v1494_v33 = vcombine.low %v391_v18, %v395_v19  ;;  %v435_v61 = vld [vmem:[%s1948_s9 + $0x1f0] sm:$0xff] }
  0x67   : > { %v396_v22 = vld [vmem:[%s1948_s9 + $0xb8] sm:$0xff]  ;;  %v447_v13 = vld [vmem:[%s1948_s9 + $0x250] sm:$0xff] }
  0x68   : > { %v1497_v26 = vcombine.high %v392_v21, %v396_v22  ;;  %v1496_v34 = vcombine.low %v392_v21, %v396_v22  ;;  %v436_v63 = vld [vmem:[%s1948_s9 + $0x1f8] sm:$0xff]  ;;  %v455_v22 = vld [vmem:[%s1948_s9 + $0x290] sm:$0xff] }
  0x69   : > { %1003 = vmatpush1.bf16.msra.mxu0 %v1522_v27  ;;  %1054 = vmatpush1.bf16.msra.mxu1 %v1524_v29  ;;  %v399_v27 = vld [vmem:[%s1948_s9 + $0xd0] sm:$0xff] }
  0x6a   : > { %1004 = vmatprep.subr.bf16.mxu0 %v1531_v30  ;;  %1055 = vmatprep.subr.bf16.mxu1 %v1533_v31  ;;  %v403_v29 = vld [vmem:[%s1948_s9 + $0xf0] sm:$0xff]  ;;  %v400_v30 = vld [vmem:[%s1948_s9 + $0xd8] sm:$0xff] }
  0x6b   : > { %v404_v31 = vld [vmem:[%s1948_s9 + $0xf8] sm:$0xff]  ;;  %v1503_v35 = vcombine.high %v399_v27, %v403_v29  ;;  %v1502_v41 = vcombine.low %v399_v27, %v403_v29 }
  0x6c   : > { %v1504_v42 = vcombine.low %v400_v30, %v404_v31 }
  0x6d   : > { %1005 = vmatpush1.bf16.msra.mxu0 %v1530_v36  ;;  %1056 = vmatpush1.bf16.msra.mxu1 %v1532_v37  ;;  %v1505_v36 = vcombine.high %v400_v30, %v404_v31  ;;  %v407_v37 = vld [vmem:[%s1948_s9 + $0x110] sm:$0xff] }
  0x6e   : > { %1006 = vmatprep.subr.bf16.mxu0 %v1539_v38  ;;  %1057 = vmatprep.subr.bf16.mxu1 %v1541_v39  ;;  %v411_v38 = vld [vmem:[%s1948_s9 + $0x130] sm:$0xff]  ;;  %v408_v39 = vld [vmem:[%s1948_s9 + $0x118] sm:$0xff] }
  0x6f   : > { %v1511_v43 = vcombine.high %v407_v37, %v411_v38  ;;  %v1510_v49 = vcombine.low %v407_v37, %v411_v38  ;;  %v1512_v50 = vcombine.low %v408_v39, %v412_v40  ;;  %v463_v31 = vld [vmem:[%s1948_s9 + $0x2d0] sm:$0x33] }
  0x70   : > { %v1566_v37 = vcombine.low %v463_v31, %v463_v31 }
  0x71   : > { %1007 = vmatpush1.bf16.msra.mxu0 %v1538_v44  ;;  %1058 = vmatpush1.bf16.msra.mxu1 %v1540_v45  ;;  %v1513_v44 = vcombine.high %v408_v39, %v412_v40  ;;  %v415_v45 = vld [vmem:[%s1948_s9 + $0x150] sm:$0xff] }
  0x72   : > { %1008 = vmatprep.subr.bf16.mxu0 %v1547_v46  ;;  %1059 = vmatprep.subr.bf16.mxu1 %v1549_v47  ;;  %v419_v46 = vld [vmem:[%s1948_s9 + $0x170] sm:$0xff]  ;;  %v416_v47 = vld [vmem:[%s1948_s9 + $0x158] sm:$0xff]  ;;  %v979_v40 = vsel %vm965_vm1, %v1566_v37, 0 }
  0x73   : > { %v1519_v51 = vcombine.high %v415_v45, %v419_v46  ;;  %v1518_v57 = vcombine.low %v415_v45, %v419_v46 }
  0x75   : > { %1009 = vmatpush1.bf16.msra.mxu0 %v1546_v52  ;;  %1060 = vmatpush1.bf16.msra.mxu1 %v1548_v53  ;;  %v1521_v52 = vcombine.high %v416_v47, %v420_v48  ;;  %v423_v53 = vld [vmem:[%s1948_s9 + $0x190] sm:$0xff] }
  0x76   : > { %1010 = vmatprep.subr.bf16.mxu0 %v1555_v54  ;;  %1061 = vmatprep.subr.bf16.mxu1 %v1557_v55  ;;  %v427_v54 = vld [vmem:[%s1948_s9 + $0x1b0] sm:$0xff]  ;;  %v424_v55 = vld [vmem:[%s1948_s9 + $0x198] sm:$0xff] }
  0x77   : > { %v1526_v0 = vcombine.low %v423_v53, %v427_v54  ;;  %v1528_v1 = vcombine.low %v424_v55, %v428_v56 }
  0x79   : > { %1011 = vmatpush1.bf16.msra.mxu0 %v1554_v58  ;;  %1062 = vmatpush1.bf16.msra.mxu1 %v1556_v59  ;;  %v1527_v58 = vcombine.high %v423_v53, %v427_v54  ;;  %v1529_v59 = vcombine.high %v424_v55, %v428_v56 }
  0x7a   : > { %1570 = vmatprep.subr.msk.bf16.mxu0 %vm965_vm1, %v1563_v60  ;;  %1573 = vmatprep.subr.msk.bf16.mxu1 %vm965_vm1, %v1565_v62  ;;  %v431_v60 = vld [vmem:[%s1948_s9 + $0x1d0] sm:$0xff]  ;;  %v432_v62 = vld [vmem:[%s1948_s9 + $0x1d8] sm:$0xff] }
  0x7b   : > { %v1535_v2 = vcombine.high %v431_v60, %v435_v61  ;;  %v1537_v3 = vcombine.high %v432_v62, %v436_v63  ;;  %v1534_v9 = vcombine.low %v431_v60, %v435_v61  ;;  %v1536_v10 = vcombine.low %v432_v62, %v436_v63 }
  0x7d   : > { %1013 = vmatpush1.bf16.msra.mxu0 %v967_v4  ;;  %1064 = vmatpush1.bf16.msra.mxu1 %v973_v6  ;;  %v439_v4 = vld [vmem:[%s1948_s9 + $0x210] sm:$0xff]  ;;  %v440_v6 = vld [vmem:[%s1948_s9 + $0x218] sm:$0xff] }
  0x7e   : > { %1092 = vmatprep.subr.bf16.mxu0 %v1479_v5  ;;  %1143 = vmatprep.subr.bf16.mxu1 %v1481_v8  ;;  %v443_v5 = vld [vmem:[%s1948_s9 + $0x230] sm:$0xff]  ;;  %v444_v8 = vld [vmem:[%s1948_s9 + $0x238] sm:$0xff] }
  0x7f   : > { %v1543_v11 = vcombine.high %v439_v4, %v443_v5  ;;  %v1545_v12 = vcombine.high %v440_v6, %v444_v8  ;;  %v1544_v18 = vcombine.low %v440_v6, %v444_v8 }
  0x80   : > { %1023 = vmatmul.mubr.bf16.vlgmr.msra.gmra.mrb[0].mxu0 %v2010_v7  ;;  %1074 = vmatmul.mubr.bf16.vlgmr.msra.gmra.mrb[0].mxu1 %v2010_v7 }
  0x81   : > { %1093 = vmatpush1.bf16.msra.mxu0 %v1478_v14  ;;  %1144 = vmatpush1.bf16.msra.mxu1 %v1480_v15  ;;  %v451_v14 = vld [vmem:[%s1948_s9 + $0x270] sm:$0xff]  ;;  %v448_v15 = vld [vmem:[%s1948_s9 + $0x258] sm:$0xff] }
  0x82   : > { %1094 = vmatprep.subr.bf16.mxu0 %v1487_v16  ;;  %1145 = vmatprep.subr.bf16.mxu1 %v1489_v17  ;;  %v452_v16 = vld [vmem:[%s1948_s9 + $0x278] sm:$0xff]  ;;  %v1542_v17 = vcombine.low %v439_v4, %v443_v5  ;;  %v1551_v19 = vcombine.high %v447_v13, %v451_v14 }
  0x83   : > { %1572 = vmatprep.mubr.msk.bf16.mxu0 %vm958_vm0, %v2021_v20  ;;  %1575 = vmatprep.mubr.msk.bf16.mxu1 %vm958_vm0, %v2021_v20  ;;  %v1553_v21 = vcombine.high %v448_v15, %v452_v16  ;;  %v1552_v27 = vcombine.low %v448_v15, %v452_v16 }
  0x85   : > { %1095 = vmatpush1.bf16.msra.mxu0 %v1486_v23  ;;  %1146 = vmatpush1.bf16.msra.mxu1 %v1488_v24  ;;  %v459_v23 = vld [vmem:[%s1948_s9 + $0x2b0] sm:$0xff]  ;;  %v456_v24 = vld [vmem:[%s1948_s9 + $0x298] sm:$0xff] }
  0x86   : > { %1096 = vmatprep.subr.bf16.mxu0 %v1495_v25  ;;  %1147 = vmatprep.subr.bf16.mxu1 %v1497_v26  ;;  %v460_v25 = vld [vmem:[%s1948_s9 + $0x2b8] sm:$0xff]  ;;  %v1550_v26 = vcombine.low %v447_v13, %v451_v14  ;;  %v1559_v29 = vcombine.high %v455_v22, %v459_v23 }
  0x87   : > { %v1561_v30 = vcombine.high %v456_v24, %v460_v25 }
  0x88   : > { %1033 = vmatmul.mubr.bf16.gmra.mrb[4].mxu0 %v2035_v32  ;;  %1084 = vmatmul.mubr.bf16.gmra.mrb[4].mxu1 %v2035_v32 }
  0x89   : > { %1097 = vmatpush1.bf16.msra.mxu0 %v1494_v33  ;;  %1148 = vmatpush1.bf16.msra.mxu1 %v1496_v34  ;;  %v464_v33 = vld [vmem:[%s1948_s9 + $0x2d8] sm:$0x33]  ;;  %v1558_v34 = vcombine.low %v455_v22, %v459_v23 }
  0x8a   : > { %1098 = vmatprep.subr.bf16.mxu0 %v1503_v35  ;;  %1149 = vmatprep.subr.bf16.mxu1 %v1505_v36  ;;  %v1560_v35 = vcombine.low %v456_v24, %v460_v25  ;;  %v1567_v36 = vcombine.high %v463_v31, %v463_v31  ;;  %v1569_v38 = vcombine.high %v464_v33, %v464_v33 }
  0x8b   : > { %1577 = vmatprep.mubr.msk.bf16.mxu0 %vm958_vm0, %v1934_v28  ;;  %1580 = vmatprep.mubr.msk.bf16.mxu1 %vm958_vm0, %v1934_v28  ;;  %v1520_v28 = vcombine.low %v416_v47, %v420_v48  ;;  %v1568_v39 = vcombine.low %v464_v33, %v464_v33 }
  0x8d   : > { %1099 = vmatpush1.bf16.msra.mxu0 %v1502_v41  ;;  %1150 = vmatpush1.bf16.msra.mxu1 %v1504_v42  ;;  %v985_v41 = vsel %vm965_vm1, %v1568_v39, 0 }
  0x8e   : > { %1100 = vmatprep.subr.bf16.mxu0 %v1511_v43  ;;  %1151 = vmatprep.subr.bf16.mxu1 %v1513_v44 }
  0x91   : > { %1101 = vmatpush1.bf16.msra.mxu0 %v1510_v49  ;;  %1152 = vmatpush1.bf16.msra.mxu1 %v1512_v50 }
  0x92   : > { %1102 = vmatprep.subr.bf16.mxu0 %v1519_v51  ;;  %1153 = vmatprep.subr.bf16.mxu1 %v1521_v52 }
  0x95   : > { %1103 = vmatpush1.bf16.msra.mxu0 %v1518_v57  ;;  %1154 = vmatpush1.bf16.msra.mxu1 %v1520_v28 }
  0x96   : > { %1104 = vmatprep.subr.bf16.mxu0 %v1527_v58  ;;  %1155 = vmatprep.subr.bf16.mxu1 %v1529_v59 }
  0x99   : > { %1105 = vmatpush1.bf16.msra.mxu0 %v1526_v0  ;;  %1156 = vmatpush1.bf16.msra.mxu1 %v1528_v1 }
  0x9a   : > { %1106 = vmatprep.subr.bf16.mxu0 %v1535_v2  ;;  %1157 = vmatprep.subr.bf16.mxu1 %v1537_v3 }
  0x9d   : > { %1107 = vmatpush1.bf16.msra.mxu0 %v1534_v9  ;;  %1158 = vmatpush1.bf16.msra.mxu1 %v1536_v10 }
  0x9e   : > { %1108 = vmatprep.subr.bf16.mxu0 %v1543_v11  ;;  %1159 = vmatprep.subr.bf16.mxu1 %v1545_v12 }
  0xa1   : > { %1109 = vmatpush1.bf16.msra.mxu0 %v1542_v17  ;;  %1160 = vmatpush1.bf16.msra.mxu1 %v1544_v18 }
  0xa2   : > { %1110 = vmatprep.subr.bf16.mxu0 %v1551_v19  ;;  %1161 = vmatprep.subr.bf16.mxu1 %v1553_v21 }
  0xa5   : > { %1111 = vmatpush1.bf16.msra.mxu0 %v1550_v26  ;;  %1162 = vmatpush1.bf16.msra.mxu1 %v1552_v27 }
  0xa6   : > { %1112 = vmatprep.subr.bf16.mxu0 %v1559_v29  ;;  %1163 = vmatprep.subr.bf16.mxu1 %v1561_v30 }
  0xa9   : > { %1113 = vmatpush1.bf16.msra.mxu0 %v1558_v34  ;;  %1164 = vmatpush1.bf16.msra.mxu1 %v1560_v35 }
  0xaa   : > { %1576 = vmatprep.subr.msk.bf16.mxu0 %vm965_vm1, %v1567_v36  ;;  %1579 = vmatprep.subr.msk.bf16.mxu1 %vm965_vm1, %v1569_v38 }
  0xad   : > { %1115 = vmatpush1.bf16.msra.mxu0 %v979_v40  ;;  %1166 = vmatpush1.bf16.msra.mxu1 %v985_v41 }
  0xb0   : > { %1125 = vmatmul.mubr.bf16.vlgmr.msra.gmra.mrb[8].mxu0 %v2010_v7  ;;  %1176 = vmatmul.mubr.bf16.vlgmr.msra.gmra.mrb[8].mxu1 %v2010_v7 }
  0xb1   : > { %1578 = vmatprep.mubr.msk.bf16.mxu0 %vm958_vm0, %v2021_v20  ;;  %1581 = vmatprep.mubr.msk.bf16.mxu1 %vm958_vm0, %v2021_v20 }
  0xb8   : > { %1135 = vmatmul.mubr.bf16.gmra.mrb[12].mxu0 %v2035_v32  ;;  %1186 = vmatmul.mubr.bf16.gmra.mrb[12].mxu1 %v2035_v32 }
  0xc9   : > { %v2085_v42 = vpop.permute.xlu0 %470  ;;  %v2101_v2 = vpop.permute.xlu1 %480 }
  0xcd   : > { %v2087_v44 = vpop.permute.xlu0 %475 }
 0x153   : > { %v1024_v43 = vpop.f32.mrb[0].mxu0  ;;  %v1075_v46 = vpop.f32.mrb[0].mxu1 }
 0x154   : > { %v1025_v45 = vadd.f32 %v1024_v43, %v2085_v42  ;;  %v1026_v47 = vpop.f32.mrb[1].mxu0  ;;  %v1076_v7 = vadd.f32 %v1075_v46, %v2085_v42  ;;  %v1077_v48 = vpop.f32.mrb[1].mxu1 }
 0x155   : > { %v1027_v20 = vadd.f32 %v1026_v47, %v2085_v42  ;;  %v1028_v49 = vpop.f32.mrb[2].mxu0  ;;  %v1078_v50 = vadd.f32 %v1077_v48, %v2085_v42  ;;  %v1079_v52 = vpop.f32.mrb[2].mxu1 }
 0x156   : > { %vm1194_vm2 = vcmp.ge.f32.partialorder %v1025_v45, 0.0  ;;  %v1218_v32 = vmul.f32 0.2, %v1025_v45  ;;  %v1029_v51 = vadd.f32 %v1028_v49, %v2087_v44  ;;  %v1030_v53 = vpop.f32.mrb[3].mxu0  ;;  %vm1196_vm3 = vcmp.ge.f32.partialorder %v1076_v7, 0.0  ;;  %v1081_v28 = vpop.f32.mrb[3].mxu1 }
 0x157   : > { %v1220_v54 = vmul.f32 0.2, %v1076_v7  ;;  %vm1195_vm4 = vcmp.ge.f32.partialorder %v1027_v20, 0.0  ;;  %v1219_v55 = vmul.f32 0.2, %v1027_v20  ;;  %vm1197_vm5 = vcmp.ge.f32.partialorder %v1078_v50, 0.0 }
 0x158   : > { %v1242_v56 = vsel %vm1194_vm2, %v1025_v45, %v1218_v32  ;;  %v1221_v57 = vmul.f32 0.2, %v1078_v50  ;;  %vm1202_vm6 = vcmp.ge.f32.partialorder %v1029_v51, 0.0  ;;  %v1226_v60 = vmul.f32 0.2, %v1029_v51 }
 0x159   : > { %v1244_v58 = vsel %vm1196_vm3, %v1076_v7, %v1220_v54  ;;  %v1243_v59 = vsel %vm1195_vm4, %v1027_v20, %v1219_v55  ;;  %v1080_v61 = vadd.f32 %v1079_v52, %v2087_v44  ;;  %v1031_v0 = vadd.f32 %v1030_v53, %v2087_v44 }
 0x15a   : > { %v1599_v62 = vpack.c.bf16 %v1243_v59, %v1242_v56  ;;  %v1245_v63 = vsel %vm1197_vm5, %v1078_v50, %v1221_v57  ;;  %v1082_v1 = vadd.f32 %v1081_v28, %v2087_v44  ;;  %v1250_v4 = vsel %vm1202_vm6, %v1029_v51, %v1226_v60 }
 0x15b   : > { %v1600_v3 = vpack.c.bf16 %v1245_v63, %v1244_v58  ;;  %vm1204_vm7 = vcmp.ge.f32.partialorder %v1080_v61, 0.0  ;;  %v1228_v5 = vmul.f32 0.2, %v1080_v61  ;;  %v1034_v6 = vpop.f32.mrb[4].mxu0  ;;  %vm1203_vm8 = vcmp.ge.f32.partialorder %v1031_v0, 0.0  ;;  %v1085_v11 = vpop.f32.mrb[4].mxu1 }
 0x15c   : > { %1346 = vst [vmem:[%s2104_s12] sm:$0xff] %v1599_v62  ;;  %v1227_v8 = vmul.f32 0.2, %v1031_v0  ;;  %vm1205_vm9 = vcmp.ge.f32.partialorder %v1082_v1, 0.0  ;;  %v1229_v9 = vmul.f32 0.2, %v1082_v1  ;;  %v1035_v12 = vadd.f32 %v1034_v6, %v2101_v2  ;;  %v1036_v13 = vpop.f32.mrb[5].mxu0 }
 0x15d   : > { %1347 = vst [vmem:[%s2104_s12 + $0x8] sm:$0xff] %v1600_v3  ;;  %v1252_v10 = vsel %vm1204_vm7, %v1080_v61, %v1228_v5  ;;  %v1037_v16 = vadd.f32 %v1036_v13, %v2101_v2  ;;  %v1086_v17 = vadd.f32 %v1085_v11, %v2101_v2  ;;  %v1087_v18 = vpop.f32.mrb[5].mxu1  ;;  %v1038_v19 = vpop.f32.mrb[6].mxu0 }
 0x15e   : > { %v1251_v14 = vsel %vm1203_vm8, %v1031_v0, %v1227_v8  ;;  %v1253_v15 = vsel %vm1205_vm9, %v1082_v1, %v1229_v9  ;;  %vm1210_vm10 = vcmp.ge.f32.partialorder %v1035_v12, 0.0  ;;  %v1234_v23 = vmul.f32 0.2, %v1035_v12  ;;  %v1089_v24 = vpop.f32.mrb[6].mxu1  ;;  %v1039_v25 = vpop.f32.mrb[7].mxu0 }
 0x15f   : > { %v1603_v21 = vpack.c.bf16 %v1251_v14, %v1250_v4  ;;  %v1604_v22 = vpack.c.bf16 %v1253_v15, %v1252_v10  ;;  %vm1211_vm11 = vcmp.ge.f32.partialorder %v1037_v16, 0.0  ;;  %v1235_v26 = vmul.f32 0.2, %v1037_v16  ;;  %v1090_v29 = vpop.f32.mrb[7].mxu1 }
 0x160   : > { %v1088_v27 = vadd.f32 %v1087_v18, %v2101_v2  ;;  %vm1212_vm12 = vcmp.ge.f32.partialorder %v1086_v17, 0.0  ;;  %v1258_v30 = vsel %vm1210_vm10, %v1035_v12, %v1234_v23  ;;  %v1236_v31 = vmul.f32 0.2, %v1086_v17 }
 0x161   : > { %1350 = vst [vmem:[%s2104_s12 + $0x20] sm:$0xff] %v1603_v21  ;;  %1351 = vst [vmem:[%s2104_s12 + $0x28] sm:$0xff] %v1604_v22  ;;  %v1259_v33 = vsel %vm1211_vm11, %v1037_v16, %v1235_v26 }
 0x162   : > { %vm1213_vm13 = vcmp.ge.f32.partialorder %v1088_v27, 0.0  ;;  %v1237_v34 = vmul.f32 0.2, %v1088_v27  ;;  %v1607_v35 = vpack.c.bf16 %v1259_v33, %v1258_v30  ;;  %v1260_v36 = vsel %vm1212_vm12, %v1086_v17, %v1236_v31 }
 0x164   : > { %v1261_v37 = vsel %vm1213_vm13, %v1088_v27, %v1237_v34  ;;  %1354 = vst [vmem:[%s2104_s12 + $0x40] sm:$0x33] %v1607_v35  ;;  %v1382_v34 = vld [vmem:[%s2104_s12 + $0x8] sm:$0xff] (%p1730_p5) }
 0x165   : > { %v1608_v38 = vpack.c.bf16 %v1261_v37, %v1260_v36  ;;  %1383 = vst [vmem:[%s1367_s20 + $0x8] sm:$0xff] (%p1730_p5), %v1382_v34 }
 0x167   : > { %1355 = vst [vmem:[%s2104_s12 + $0x48] sm:$0x33] %v1608_v38 }
 0x168   : > { %v1388_v37 = vld [vmem:[%s2104_s12 + $0x20] sm:$0xff] (%p1730_p5)  ;;  %v1390_v38 = vld [vmem:[%s2104_s12 + $0x28] sm:$0xff] (%p1730_p5) }
 0x169   : > { %1389 = vst [vmem:[%s1367_s20 + $0x40] sm:$0xff] (%p1730_p5), %v1388_v37  ;;  %1391 = vst [vmem:[%s1367_s20 + $0x48] sm:$0xff] (%p1730_p5), %v1390_v38 }
 0x183   : > { %v1126_v39 = vpop.f32.mrb[8].mxu0  ;;  %v1177_v41 = vpop.f32.mrb[8].mxu1 }
 0x184   : > { %v1127_v40 = vadd.f32 %v1126_v39, %v2085_v42  ;;  %v1128_v43 = vpop.f32.mrb[9].mxu0  ;;  %v1178_v45 = vadd.f32 %v1177_v41, %v2085_v42  ;;  %v1179_v47 = vpop.f32.mrb[9].mxu1  ;;  %v1396_v41 = vld [vmem:[%s2104_s12 + $0x40] sm:$0xff] (%p1730_p5) }
 0x185   : > { %v1129_v46 = vadd.f32 %v1128_v43, %v2085_v42  ;;  %v1130_v7 = vpop.f32.mrb[10].mxu0  ;;  %v1180_v48 = vadd.f32 %v1179_v47, %v2085_v42  ;;  %v1181_v32 = vpop.f32.mrb[10].mxu1  ;;  %1397 = vst [vmem:[%s1367_s20 + $0x80] sm:$0xff] (%p1730_p5), %v1396_v41  ;;  %v1398_v43 = vld [vmem:[%s2104_s12 + $0x48] sm:$0xff] (%p1730_p5) }
 0x186   : > { %vm1198_vm14 = vcmp.ge.f32.partialorder %v1127_v40, 0.0  ;;  %v1222_v20 = vmul.f32 0.2, %v1127_v40  ;;  %v1131_v49 = vadd.f32 %v1130_v7, %v2087_v44  ;;  %v1132_v50 = vpop.f32.mrb[11].mxu0  ;;  %vm1200_vm15 = vcmp.ge.f32.partialorder %v1178_v45, 0.0  ;;  %v1183_v55 = vpop.f32.mrb[11].mxu1 }
 0x187   : > { %v1224_v51 = vmul.f32 0.2, %v1178_v45  ;;  %vm1199_vm0 = vcmp.ge.f32.partialorder %v1129_v46, 0.0  ;;  %v1223_v52 = vmul.f32 0.2, %v1129_v46  ;;  %vm1201_vm1 = vcmp.ge.f32.partialorder %v1180_v48, 0.0 }
 0x188   : > { %v1246_v53 = vsel %vm1198_vm14, %v1127_v40, %v1222_v20  ;;  %v1225_v54 = vmul.f32 0.2, %v1180_v48  ;;  %vm1206_vm2 = vcmp.ge.f32.partialorder %v1131_v49, 0.0  ;;  %v1230_v28 = vmul.f32 0.2, %v1131_v49  ;;  %1399 = vst [vmem:[%s1367_s20 + $0x88] sm:$0xff] (%p1730_p5), %v1398_v43 }
 0x189   : > { %v1248_v56 = vsel %vm1200_vm15, %v1178_v45, %v1224_v51  ;;  %v1247_v57 = vsel %vm1199_vm0, %v1129_v46, %v1223_v52  ;;  %v1182_v42 = vadd.f32 %v1181_v32, %v2087_v44  ;;  %v1133_v60 = vadd.f32 %v1132_v50, %v2087_v44 }
 0x18a   : > { %v1601_v58 = vpack.c.bf16 %v1247_v57, %v1246_v53  ;;  %v1249_v59 = vsel %vm1201_vm1, %v1180_v48, %v1225_v54  ;;  %v1184_v61 = vadd.f32 %v1183_v55, %v2087_v44  ;;  %v1254_v63 = vsel %vm1206_vm2, %v1131_v49, %v1230_v28 }
 0x18b   : > { %v1602_v62 = vpack.c.bf16 %v1249_v59, %v1248_v56  ;;  %vm1208_vm3 = vcmp.ge.f32.partialorder %v1182_v42, 0.0  ;;  %v1232_v0 = vmul.f32 0.2, %v1182_v42  ;;  %v1136_v1 = vpop.f32.mrb[12].mxu0  ;;  %vm1207_vm4 = vcmp.ge.f32.partialorder %v1133_v60, 0.0  ;;  %v1187_v8 = vpop.f32.mrb[12].mxu1 }
 0x18c   : > { %1348 = vst [vmem:[%s2104_s12 + $0x10] sm:$0xff] %v1601_v58  ;;  %v1231_v3 = vmul.f32 0.2, %v1133_v60  ;;  %vm1209_vm5 = vcmp.ge.f32.partialorder %v1184_v61, 0.0  ;;  %v1233_v4 = vmul.f32 0.2, %v1184_v61  ;;  %v1137_v6 = vadd.f32 %v1136_v1, %v2101_v2 }
 0x18d   : > { %1349 = vst [vmem:[%s2104_s12 + $0x18] sm:$0xff] %v1602_v62  ;;  %v1256_v5 = vsel %vm1208_vm3, %v1182_v42, %v1232_v0  ;;  %v1138_v9 = vpop.f32.mrb[13].mxu0  ;;  %v1188_v44 = vadd.f32 %v1187_v8, %v2101_v2  ;;  %v1189_v13 = vpop.f32.mrb[13].mxu1 }
 0x18e   : > { %v1255_v10 = vsel %vm1207_vm4, %v1133_v60, %v1231_v3  ;;  %v1257_v11 = vsel %vm1209_vm5, %v1184_v61, %v1233_v4  ;;  %v1139_v12 = vadd.f32 %v1138_v9, %v2101_v2  ;;  %v1140_v14 = vpop.f32.mrb[14].mxu0  ;;  %vm1214_vm6 = vcmp.ge.f32.partialorder %v1137_v6, 0.0  ;;  %v1191_v18 = vpop.f32.mrb[14].mxu1 }
 0x18f   : > { %v1605_v15 = vpack.c.bf16 %v1255_v10, %v1254_v63  ;;  %v1606_v16 = vpack.c.bf16 %v1257_v11, %v1256_v5  ;;  %v1238_v17 = vmul.f32 0.2, %v1137_v6  ;;  %v1141_v19 = vpop.f32.mrb[15].mxu0  ;;  %vm1216_vm7 = vcmp.ge.f32.partialorder %v1188_v44, 0.0  ;;  %v1192_v25 = vpop.f32.mrb[15].mxu1 }
 0x190   : > { %v1240_v21 = vmul.f32 0.2, %v1188_v44  ;;  %vm1215_vm8 = vcmp.ge.f32.partialorder %v1139_v12, 0.0  ;;  %v1239_v22 = vmul.f32 0.2, %v1139_v12  ;;  %v1190_v24 = vadd.f32 %v1189_v13, %v2101_v2  ;;  %v1380_v2 = vld [vmem:[%s2104_s12] sm:$0xff] (%p1730_p5) }
 0x191   : > { %1352 = vst [vmem:[%s2104_s12 + $0x30] sm:$0xff] %v1605_v15  ;;  %1353 = vst [vmem:[%s2104_s12 + $0x38] sm:$0xff] %v1606_v16  ;;  %v1262_v23 = vsel %vm1214_vm6, %v1137_v6, %v1238_v17  ;;  %1364 = sbr.rel (!%p1730_p5) target bundleno = 416 (0x1a0), region = 59 }
 0x192   : > { %v1263_v26 = vsel %vm1215_vm8, %v1139_v12, %v1239_v22  ;;  %v1264_v27 = vsel %vm1216_vm7, %v1188_v44, %v1240_v21  ;;  %vm1217_vm9 = vcmp.ge.f32.partialorder %v1190_v24, 0.0  ;;  %v1241_v30 = vmul.f32 0.2, %v1190_v24  ;;  %1381 = vst [vmem:[%s1367_s20] sm:$0xff] (%p1730_p5), %v1380_v2 }
 0x193   : > { %v1609_v29 = vpack.c.bf16 %v1263_v26, %v1262_v23  ;;  %v1384_v35 = vld [vmem:[%s2104_s12 + $0x10] sm:$0xff] (%p1730_p5) }
 0x194   : > { %v1265_v31 = vsel %vm1217_vm9, %v1190_v24, %v1241_v30  ;;  %v1386_v36 = vld [vmem:[%s2104_s12 + $0x18] sm:$0xff] (%p1730_p5)  ;;  %1385 = vst [vmem:[%s1367_s20 + $0x10] sm:$0xff] (%p1730_p5), %v1384_v35 }
 0x195   : > { %1356 = vst [vmem:[%s2104_s12 + $0x50] sm:$0x33] %v1609_v29  ;;  %v1610_v33 = vpack.c.bf16 %v1265_v31, %v1264_v27  ;;  %1387 = vst [vmem:[%s1367_s20 + $0x18] sm:$0xff] (%p1730_p5), %v1386_v36 }
 0x197   : > { %1357 = vst [vmem:[%s2104_s12 + $0x58] sm:$0x33] %v1610_v33 }
 0x198   : > { %v1392_v39 = vld [vmem:[%s2104_s12 + $0x30] sm:$0xff]  ;;  %v1394_v40 = vld [vmem:[%s2104_s12 + $0x38] sm:$0xff] }
 0x199   : > { %1393 = vst [vmem:[%s1367_s20 + $0x50] sm:$0xff] %v1392_v39  ;;  %1395 = vst [vmem:[%s1367_s20 + $0x58] sm:$0xff] %v1394_v40 }
 0x19c   : > { %v1400_v45 = vld [vmem:[%s2104_s12 + $0x50] sm:$0xff] }
 0x19d   : > { %1401 = vst [vmem:[%s1367_s20 + $0x90] sm:$0xff] %v1400_v45 }
 0x19e   : > { %v1402_v46 = vld [vmem:[%s2104_s12 + $0x58] sm:$0xff] }
 0x19f   : > { %1403 = vst [vmem:[%s1367_s20 + $0x98] sm:$0xff] %v1402_v46 }
 0x1a0 PF: > { %p10_p10 = scmp.ge.s32.totalorder %s1717_s16, 4   ;;  %s2168_s12 = smov %s1673_s13 }
 0x1a1   : > { %s2169_s13 = smov %s1728_s19  ;;  %s2170_s14 = smov %s1717_s16 }
 0x1a2   :  { %12 = sbr.rel (!%p10_p10) target bundleno = 2 (0x2), region = 113 }

// kernel: refiner_block.8
= control target key start
LH: loop header
LB: loop body
LE: loop exit
PB: predicated region body
PF: predicated region fallthrough
CT: control target
= control target key end

     0   :  { %s4712_s9 = smov 0   ;;  %s5348_s0 = inlined_call_operand.vmem [shape: bf16[4,2,1024], index: 0, kind: input, shape index: {}]   ;;  %s5349_s1 = inlined_call_operand.vmem [shape: bf16[4,1024,1024], index: 1, kind: input, shape index: {}]   ;;  %s5350_s2 = inlined_call_operand.vmem [shape: bf16[4,2,1024], index: 2, kind: output, shape index: {}]  }
   0x1 LB: > { %s4102_s10 = sadd.s32 4294967295, %s4694_s9   ;;  %p4106_p0 = scmp.ge.s32.totalorder %s4694_s9, 1  ;;  %s4694_s9 = sphi %s4712_s9, %s12_s9  }
   0x2   : > { %p121_p1 = scmp.lt.s32.totalorder %s4694_s9, 5 }
   0x4   : > { %p122_p2 = pnand %p4106_p0, %p121_p1 }
   0x5   : > { %p146_p3 = scmp.lt.s32.totalorder (!%p122_p2), %s4102_s10, 3  ;;  %v4696_v32 = vmov (!%p122_p2), 1966171168   ;;  %v677_v34 = vlaneseq (!%p122_p2) }
   0x6   : > { %125 = sbr.rel (%p122_p2) target bundleno = 760 (0x2f8), region = 28  ;;  %v675_v33 = vunpack.c.l.s4 (!%p122_p2), %v4696_v32 }
   0x7   : > { %v678_v44 = vshrl.u32 (!%p122_p2), %v677_v34, 7 }
   0x8   : > { %v676_v43 = vunpack.c.0.s8 (!%p122_p2), %v675_v33 }
   0xa   : > { %v4760_v53 = vsub.s32 (!%p122_p2), %v676_v43, %v678_v44 }
   0xd   : > { %s5352_s10 = smov (!%p146_p3, %s4102_s10), 3 }
   0xe   : > { %s4629_s11 = sshll.u32 %s5352_s10, 12  ;;  %s4107_s15 = sshll.u32 %s5352_s10, 3 }
   0xf   : > { %s4726_s14 = scalar_lea.vmem %s5349_s1, %s4629_s11  ;;  %s149_s18 = scalar_lea.vmem %s5348_s0, %s4107_s15 }
  0x10   : > { %v160_v0 = vld [vmem:[%s4726_s14] sm:$0xff]  ;;  %v161_v2 = vld [vmem:[%s4726_s14 + $0x8] sm:$0xff]  ;;  %s158_s21 = scalar_lea.vmem %s5350_s2, %s4107_s15 }
  0x11   : > { %v164_v1 = vld [vmem:[%s4726_s14 + $0x20] sm:$0xff]  ;;  %v165_v4 = vld [vmem:[%s4726_s14 + $0x28] sm:$0xff] }
  0x12   : > { %v4112_v3 = vcombine.high %v160_v0, %v164_v1  ;;  %v4111_v5 = vcombine.low %v160_v0, %v164_v1  ;;  %v168_v6 = vld [vmem:[%s4726_s14 + $0x40] sm:$0xff]  ;;  %v4114_v8 = vcombine.high %v161_v2, %v165_v4  ;;  %v4113_v9 = vcombine.low %v161_v2, %v165_v4  ;;  %v169_v11 = vld [vmem:[%s4726_s14 + $0x48] sm:$0xff] }
  0x13   : > { %v172_v7 = vld [vmem:[%s4726_s14 + $0x60] sm:$0xff]  ;;  %v173_v12 = vld [vmem:[%s4726_s14 + $0x68] sm:$0xff] }
  0x14   : > { %v4120_v10 = vcombine.high %v168_v6, %v172_v7  ;;  %v176_v13 = vld [vmem:[%s4726_s14 + $0x80] sm:$0xff]  ;;  %3290 = vmatprep.subr.bf16.mxu0 %v4112_v3  ;;  %v4122_v14 = vcombine.high %v169_v11, %v173_v12  ;;  %v177_v16 = vld [vmem:[%s4726_s14 + $0x88] sm:$0xff]  ;;  %3454 = vmatprep.subr.bf16.mxu1 %v4114_v8  ;;  %v4119_v18 = vcombine.low %v168_v6, %v172_v7 }
  0x15   : > { %v180_v15 = vld [vmem:[%s4726_s14 + $0xa0] sm:$0xff]  ;;  %v181_v17 = vld [vmem:[%s4726_s14 + $0xa8] sm:$0xff]  ;;  %3291 = vmatpush1.bf16.msra.mxu0 %v4111_v5  ;;  %3455 = vmatpush1.bf16.msra.mxu1 %v4113_v9  ;;  %v4121_v19 = vcombine.low %v169_v11, %v173_v12 }
  0x16   : > { %3292 = vmatprep.subr.bf16.mxu0 %v4120_v10  ;;  %v4128_v20 = vcombine.high %v176_v13, %v180_v15  ;;  %3456 = vmatprep.subr.bf16.mxu1 %v4122_v14  ;;  %v4130_v21 = vcombine.high %v177_v16, %v181_v17  ;;  %v184_v22 = vld [vmem:[%s4726_s14 + $0xc0] sm:$0xff]  ;;  %v185_v24 = vld [vmem:[%s4726_s14 + $0xc8] sm:$0xff]  ;;  %v4127_v26 = vcombine.low %v176_v13, %v180_v15 }
  0x17   : > { %v188_v23 = vld [vmem:[%s4726_s14 + $0xe0] sm:$0xff]  ;;  %v189_v25 = vld [vmem:[%s4726_s14 + $0xe8] sm:$0xff]  ;;  %v4129_v27 = vcombine.low %v177_v16, %v181_v17 }
  0x18   : > { %v4136_v28 = vcombine.high %v184_v22, %v188_v23  ;;  %v4138_v29 = vcombine.high %v185_v24, %v189_v25  ;;  %v192_v30 = vld [vmem:[%s4726_s14 + $0x100] sm:$0xff]  ;;  %v193_v35 = vld [vmem:[%s4726_s14 + $0x108] sm:$0xff]  ;;  %v4135_v37 = vcombine.low %v184_v22, %v188_v23  ;;  %v4137_v38 = vcombine.low %v185_v24, %v189_v25 }
  0x19   : > { %3293 = vmatpush1.bf16.msra.mxu0 %v4119_v18  ;;  %3457 = vmatpush1.bf16.msra.mxu1 %v4121_v19  ;;  %v196_v31 = vld [vmem:[%s4726_s14 + $0x120] sm:$0xff]  ;;  %v197_v36 = vld [vmem:[%s4726_s14 + $0x128] sm:$0xff] }
  0x1a   : > { %3294 = vmatprep.subr.bf16.mxu0 %v4128_v20  ;;  %3458 = vmatprep.subr.bf16.mxu1 %v4130_v21  ;;  %v4144_v39 = vcombine.high %v192_v30, %v196_v31  ;;  %v4146_v40 = vcombine.high %v193_v35, %v197_v36  ;;  %v200_v41 = vld [vmem:[%s4726_s14 + $0x140] sm:$0xff]  ;;  %v201_v45 = vld [vmem:[%s4726_s14 + $0x148] sm:$0xff]  ;;  %v4143_v47 = vcombine.low %v192_v30, %v196_v31 }
  0x1b   : > { %v204_v42 = vld [vmem:[%s4726_s14 + $0x160] sm:$0xff]  ;;  %v205_v46 = vld [vmem:[%s4726_s14 + $0x168] sm:$0xff]  ;;  %v4145_v48 = vcombine.low %v193_v35, %v197_v36 }
  0x1c   : > { %v4152_v49 = vcombine.high %v200_v41, %v204_v42  ;;  %v4154_v50 = vcombine.high %v201_v45, %v205_v46  ;;  %v208_v51 = vld [vmem:[%s4726_s14 + $0x180] sm:$0xff]  ;;  %v209_v54 = vld [vmem:[%s4726_s14 + $0x188] sm:$0xff]  ;;  %v4151_v56 = vcombine.low %v200_v41, %v204_v42  ;;  %v4153_v57 = vcombine.low %v201_v45, %v205_v46 }
  0x1d   : > { %3295 = vmatpush1.bf16.msra.mxu0 %v4127_v26  ;;  %3459 = vmatpush1.bf16.msra.mxu1 %v4129_v27  ;;  %v212_v52 = vld [vmem:[%s4726_s14 + $0x1a0] sm:$0xff]  ;;  %v213_v55 = vld [vmem:[%s4726_s14 + $0x1a8] sm:$0xff] }
  0x1e   : > { %3296 = vmatprep.subr.bf16.mxu0 %v4136_v28  ;;  %3460 = vmatprep.subr.bf16.mxu1 %v4138_v29  ;;  %v4160_v58 = vcombine.high %v208_v51, %v212_v52  ;;  %v4764_v59 = vld [vmem:[%s149_s18] sm:$0xff]  ;;  %v4162_v60 = vcombine.high %v209_v54, %v213_v55  ;;  %v217_v0 = vld [vmem:[%s4726_s14 + $0x1c8] sm:$0xff]  ;;  %v4159_v2 = vcombine.low %v208_v51, %v212_v52 }
  0x1f   : > { %v216_v61 = vld [vmem:[%s4726_s14 + $0x1c0] sm:$0xff]  ;;  %v4770_v63 = vrot.slane %v4764_v59, %v4760_v53  ;;  %v221_v1 = vld [vmem:[%s4726_s14 + $0x1e8] sm:$0xff]  ;;  %v4161_v4 = vcombine.low %v209_v54, %v213_v55 }
  0x20   : > { %v220_v62 = vld [vmem:[%s4726_s14 + $0x1e0] sm:$0xff]  ;;  %v4170_v6 = vcombine.high %v217_v0, %v221_v1  ;;  %v225_v10 = vld [vmem:[%s4726_s14 + $0x208] sm:$0xff]  ;;  %v4169_v13 = vcombine.low %v217_v0, %v221_v1 }
  0x21   : > { %3297 = vmatpush1.bf16.msra.mxu0 %v4135_v37  ;;  %3461 = vmatpush1.bf16.msra.mxu1 %v4137_v38  ;;  %v688_v3 = vcombine.high %v4770_v63, %v4770_v63  ;;  %v4168_v5 = vcombine.high %v216_v61, %v220_v62  ;;  %v224_v7 = vld [vmem:[%s4726_s14 + $0x200] sm:$0xff]  ;;  %v229_v11 = vld [vmem:[%s4726_s14 + $0x228] sm:$0xff]  ;;  %v4167_v12 = vcombine.low %v216_v61, %v220_v62 }
  0x22   : > { %3298 = vmatprep.subr.bf16.mxu0 %v4144_v39  ;;  %3462 = vmatprep.subr.bf16.mxu1 %v4146_v40  ;;  %v228_v8 = vld [vmem:[%s4726_s14 + $0x220] sm:$0xff]  ;;  %v4178_v15 = vcombine.high %v225_v10, %v229_v11  ;;  %v233_v18 = vld [vmem:[%s4726_s14 + $0x248] sm:$0xff]  ;;  %v4177_v21 = vcombine.low %v225_v10, %v229_v11 }
  0x23   : > { %v4779_v9 = vrot.slane %v688_v3, %v4760_v53  ;;  %v4176_v14 = vcombine.high %v224_v7, %v228_v8  ;;  %v232_v16 = vld [vmem:[%s4726_s14 + $0x240] sm:$0xff]  ;;  %v237_v19 = vld [vmem:[%s4726_s14 + $0x268] sm:$0xff]  ;;  %v4175_v20 = vcombine.low %v224_v7, %v228_v8 }
  0x24   : > { %v236_v17 = vld [vmem:[%s4726_s14 + $0x260] sm:$0xff]  ;;  %v4186_v23 = vcombine.high %v233_v18, %v237_v19  ;;  %v241_v26 = vld [vmem:[%s4726_s14 + $0x288] sm:$0xff]  ;;  %v4185_v29 = vcombine.low %v233_v18, %v237_v19 }
  0x25   : > { %3299 = vmatpush1.bf16.msra.mxu0 %v4143_v47  ;;  %3463 = vmatpush1.bf16.msra.mxu1 %v4145_v48  ;;  %v4184_v22 = vcombine.high %v232_v16, %v236_v17  ;;  %v240_v24 = vld [vmem:[%s4726_s14 + $0x280] sm:$0xff]  ;;  %v245_v27 = vld [vmem:[%s4726_s14 + $0x2a8] sm:$0xff]  ;;  %v4183_v28 = vcombine.low %v232_v16, %v236_v17 }
  0x26   : > { %3300 = vmatprep.subr.bf16.mxu0 %v4152_v49  ;;  %3464 = vmatprep.subr.bf16.mxu1 %v4154_v50  ;;  %v244_v25 = vld [vmem:[%s4726_s14 + $0x2a0] sm:$0xff]  ;;  %v4194_v31 = vcombine.high %v241_v26, %v245_v27  ;;  %v249_v34 = vld [vmem:[%s4726_s14 + $0x2c8] sm:$0xff]  ;;  %v4193_v37 = vcombine.low %v241_v26, %v245_v27 }
  0x27   : > { %3322 = vmatprep.mubr.bf16.mxu0 %v4779_v9  ;;  %3486 = vmatprep.mubr.bf16.mxu1 %v4779_v9  ;;  %v4192_v30 = vcombine.high %v240_v24, %v244_v25  ;;  %v248_v32 = vld [vmem:[%s4726_s14 + $0x2c0] sm:$0xff]  ;;  %v253_v35 = vld [vmem:[%s4726_s14 + $0x2e8] sm:$0xff]  ;;  %v4191_v36 = vcombine.low %v240_v24, %v244_v25 }
  0x28   : > { %v252_v33 = vld [vmem:[%s4726_s14 + $0x2e0] sm:$0xff]  ;;  %v4202_v39 = vcombine.high %v249_v34, %v253_v35  ;;  %v257_v42 = vld [vmem:[%s4726_s14 + $0x308] sm:$0xff]  ;;  %v4201_v45 = vcombine.low %v249_v34, %v253_v35 }
  0x29   : > { %3301 = vmatpush1.bf16.msra.mxu0 %v4151_v56  ;;  %3465 = vmatpush1.bf16.msra.mxu1 %v4153_v57  ;;  %v4200_v38 = vcombine.high %v248_v32, %v252_v33  ;;  %v256_v40 = vld [vmem:[%s4726_s14 + $0x300] sm:$0xff]  ;;  %v261_v43 = vld [vmem:[%s4726_s14 + $0x328] sm:$0xff]  ;;  %v4199_v44 = vcombine.low %v248_v32, %v252_v33 }
  0x2a   : > { %3302 = vmatprep.subr.bf16.mxu0 %v4160_v58  ;;  %3466 = vmatprep.subr.bf16.mxu1 %v4162_v60  ;;  %v260_v41 = vld [vmem:[%s4726_s14 + $0x320] sm:$0xff]  ;;  %v4210_v47 = vcombine.high %v257_v42, %v261_v43  ;;  %v265_v50 = vld [vmem:[%s4726_s14 + $0x348] sm:$0xff]  ;;  %v4209_v54 = vcombine.low %v257_v42, %v261_v43 }
  0x2b   : > { %v4208_v46 = vcombine.high %v256_v40, %v260_v41  ;;  %v264_v48 = vld [vmem:[%s4726_s14 + $0x340] sm:$0xff]  ;;  %v269_v51 = vld [vmem:[%s4726_s14 + $0x368] sm:$0xff]  ;;  %v4207_v52 = vcombine.low %v256_v40, %v260_v41 }
  0x2c   : > { %v268_v49 = vld [vmem:[%s4726_s14 + $0x360] sm:$0xff]  ;;  %v4218_v56 = vcombine.high %v265_v50, %v269_v51  ;;  %v273_v60 = vld [vmem:[%s4726_s14 + $0x388] sm:$0xff]  ;;  %v4217_v0 = vcombine.low %v265_v50, %v269_v51 }
  0x2d   : > { %3303 = vmatpush1.bf16.msra.mxu0 %v4159_v2  ;;  %3467 = vmatpush1.bf16.msra.mxu1 %v4161_v4  ;;  %v4216_v55 = vcombine.high %v264_v48, %v268_v49  ;;  %v272_v57 = vld [vmem:[%s4726_s14 + $0x380] sm:$0xff]  ;;  %v277_v61 = vld [vmem:[%s4726_s14 + $0x3a8] sm:$0xff]  ;;  %v4215_v62 = vcombine.low %v264_v48, %v268_v49 }
  0x2e   : > { %3304 = vmatprep.subr.bf16.mxu0 %v4168_v5  ;;  %3468 = vmatprep.subr.bf16.mxu1 %v4170_v6  ;;  %v276_v58 = vld [vmem:[%s4726_s14 + $0x3a0] sm:$0xff]  ;;  %v4226_v2 = vcombine.high %v273_v60, %v277_v61  ;;  %v281_v5 = vld [vmem:[%s4726_s14 + $0x3c8] sm:$0xff]  ;;  %v4225_v8 = vcombine.low %v273_v60, %v277_v61 }
  0x2f   : > { %v4224_v1 = vcombine.high %v272_v57, %v276_v58  ;;  %v280_v3 = vld [vmem:[%s4726_s14 + $0x3c0] sm:$0xff]  ;;  %v285_v6 = vld [vmem:[%s4726_s14 + $0x3e8] sm:$0xff]  ;;  %v4223_v7 = vcombine.low %v272_v57, %v276_v58 }
  0x30   : > { %v284_v4 = vld [vmem:[%s4726_s14 + $0x3e0] sm:$0xff]  ;;  %v4234_v11 = vcombine.high %v281_v5, %v285_v6  ;;  %v4233_v17 = vcombine.low %v281_v5, %v285_v6  ;;  %v301_v24 = vld [vmem:[%s4726_s14 + $0x468] sm:$0xff] }
  0x31   : > { %3305 = vmatpush1.bf16.msra.mxu0 %v4167_v12  ;;  %3469 = vmatpush1.bf16.msra.mxu1 %v4169_v13  ;;  %v4232_v10 = vcombine.high %v280_v3, %v284_v4  ;;  %v288_v12 = vld [vmem:[%s4726_s14 + $0x400] sm:$0xff]  ;;  %v4231_v16 = vcombine.low %v280_v3, %v284_v4  ;;  %v309_v32 = vld [vmem:[%s4726_s14 + $0x4a8] sm:$0xff] }
  0x32   : > { %3306 = vmatprep.subr.bf16.mxu0 %v4176_v14  ;;  %3470 = vmatprep.subr.bf16.mxu1 %v4178_v15  ;;  %v292_v13 = vld [vmem:[%s4726_s14 + $0x420] sm:$0xff]  ;;  %v289_v14 = vld [vmem:[%s4726_s14 + $0x408] sm:$0xff] }
  0x33   : > { %v293_v15 = vld [vmem:[%s4726_s14 + $0x428] sm:$0xff]  ;;  %v4240_v18 = vcombine.high %v288_v12, %v292_v13  ;;  %v4239_v25 = vcombine.low %v288_v12, %v292_v13 }
  0x34   : > { %v4242_v19 = vcombine.high %v289_v14, %v293_v15  ;;  %v4241_v26 = vcombine.low %v289_v14, %v293_v15  ;;  %v317_v40 = vld [vmem:[%s4726_s14 + $0x4e8] sm:$0xff] }
  0x35   : > { %3307 = vmatpush1.bf16.msra.mxu0 %v4175_v20  ;;  %3471 = vmatpush1.bf16.msra.mxu1 %v4177_v21  ;;  %v296_v20 = vld [vmem:[%s4726_s14 + $0x440] sm:$0xff]  ;;  %v325_v48 = vld [vmem:[%s4726_s14 + $0x528] sm:$0xff] }
  0x36   : > { %3308 = vmatprep.subr.bf16.mxu0 %v4184_v22  ;;  %3472 = vmatprep.subr.bf16.mxu1 %v4186_v23  ;;  %v300_v21 = vld [vmem:[%s4726_s14 + $0x460] sm:$0xff]  ;;  %v4821_v22 = vrot.slane %v4770_v63, %v4760_v53  ;;  %v297_v23 = vld [vmem:[%s4726_s14 + $0x448] sm:$0xff] }
  0x37   : > { %v4248_v27 = vcombine.high %v296_v20, %v300_v21  ;;  %v305_v63 = vld [vmem:[%s4726_s14 + $0x488] sm:$0xff]  ;;  %v4247_v33 = vcombine.low %v296_v20, %v300_v21  ;;  %v4249_v34 = vcombine.low %v297_v23, %v301_v24 }
  0x38   : > { %v4257_v42 = vcombine.low %v305_v63, %v309_v32  ;;  %v333_v57 = vld [vmem:[%s4726_s14 + $0x568] sm:$0xff] }
  0x39   : > { %3309 = vmatpush1.bf16.msra.mxu0 %v4183_v28  ;;  %3473 = vmatpush1.bf16.msra.mxu1 %v4185_v29  ;;  %v4250_v28 = vcombine.high %v297_v23, %v301_v24  ;;  %v304_v29 = vld [vmem:[%s4726_s14 + $0x480] sm:$0xff]  ;;  %v341_v3 = vld [vmem:[%s4726_s14 + $0x5a8] sm:$0xff] }
  0x3a   : > { %3310 = vmatprep.subr.bf16.mxu0 %v4192_v30  ;;  %3474 = vmatprep.subr.bf16.mxu1 %v4194_v31  ;;  %v308_v30 = vld [vmem:[%s4726_s14 + $0x4a0] sm:$0xff]  ;;  %v4829_v31 = vcombine.high %v4779_v9, %v4779_v9  ;;  %v349_v12 = vld [vmem:[%s4726_s14 + $0x5e8] sm:$0xff] }
  0x3b   : > { %v4256_v35 = vcombine.high %v304_v29, %v308_v30  ;;  %v4255_v41 = vcombine.low %v304_v29, %v308_v30  ;;  %v357_v20 = vld [vmem:[%s4726_s14 + $0x628] sm:$0xff] }
  0x3c   : > { %v365_v29 = vld [vmem:[%s4726_s14 + $0x668] sm:$0xff] }
  0x3d   : > { %3311 = vmatpush1.bf16.msra.mxu0 %v4191_v36  ;;  %3475 = vmatpush1.bf16.msra.mxu1 %v4193_v37  ;;  %v4258_v36 = vcombine.high %v305_v63, %v309_v32  ;;  %v312_v37 = vld [vmem:[%s4726_s14 + $0x4c0] sm:$0xff] }
  0x3e   : > { %3312 = vmatprep.subr.bf16.mxu0 %v4200_v38  ;;  %3476 = vmatprep.subr.bf16.mxu1 %v4202_v39  ;;  %v316_v38 = vld [vmem:[%s4726_s14 + $0x4e0] sm:$0xff]  ;;  %v313_v39 = vld [vmem:[%s4726_s14 + $0x4c8] sm:$0xff] }
  0x3f   : > { %v4264_v43 = vcombine.high %v312_v37, %v316_v38  ;;  %v4263_v49 = vcombine.low %v312_v37, %v316_v38  ;;  %v4265_v50 = vcombine.low %v313_v39, %v317_v40  ;;  %v373_v37 = vld [vmem:[%s4726_s14 + $0x6a8] sm:$0xff] }
  0x41   : > { %3313 = vmatpush1.bf16.msra.mxu0 %v4199_v44  ;;  %3477 = vmatpush1.bf16.msra.mxu1 %v4201_v45  ;;  %v4266_v44 = vcombine.high %v313_v39, %v317_v40  ;;  %v320_v45 = vld [vmem:[%s4726_s14 + $0x500] sm:$0xff] }
  0x42   : > { %3314 = vmatprep.subr.bf16.mxu0 %v4208_v46  ;;  %3478 = vmatprep.subr.bf16.mxu1 %v4210_v47  ;;  %v324_v46 = vld [vmem:[%s4726_s14 + $0x520] sm:$0xff]  ;;  %v321_v47 = vld [vmem:[%s4726_s14 + $0x508] sm:$0xff] }
  0x43   : > { %v4272_v51 = vcombine.high %v320_v45, %v324_v46  ;;  %v4271_v58 = vcombine.low %v320_v45, %v324_v46  ;;  %v4273_v60 = vcombine.low %v321_v47, %v325_v48  ;;  %v381_v45 = vld [vmem:[%s4726_s14 + $0x6e8] sm:$0xff] }
  0x45   : > { %3315 = vmatpush1.bf16.msra.mxu0 %v4207_v52  ;;  %3479 = vmatpush1.bf16.msra.mxu1 %v4209_v54  ;;  %v4274_v52 = vcombine.high %v321_v47, %v325_v48  ;;  %v328_v54 = vld [vmem:[%s4726_s14 + $0x540] sm:$0xff] }
  0x46   : > { %3316 = vmatprep.subr.bf16.mxu0 %v4216_v55  ;;  %3480 = vmatprep.subr.bf16.mxu1 %v4218_v56  ;;  %v332_v55 = vld [vmem:[%s4726_s14 + $0x560] sm:$0xff]  ;;  %v329_v56 = vld [vmem:[%s4726_s14 + $0x548] sm:$0xff] }
  0x47   : > { %v4280_v61 = vcombine.high %v328_v54, %v332_v55  ;;  %v4279_v4 = vcombine.low %v328_v54, %v332_v55  ;;  %v4281_v5 = vcombine.low %v329_v56, %v333_v57  ;;  %v389_v54 = vld [vmem:[%s4726_s14 + $0x728] sm:$0xff] }
  0x49   : > { %3317 = vmatpush1.bf16.msra.mxu0 %v4215_v62  ;;  %3481 = vmatpush1.bf16.msra.mxu1 %v4217_v0  ;;  %v4282_v62 = vcombine.high %v329_v56, %v333_v57  ;;  %v336_v0 = vld [vmem:[%s4726_s14 + $0x580] sm:$0xff] }
  0x4a   : > { %3318 = vmatprep.subr.bf16.mxu0 %v4224_v1  ;;  %3482 = vmatprep.subr.bf16.mxu1 %v4226_v2  ;;  %v340_v1 = vld [vmem:[%s4726_s14 + $0x5a0] sm:$0xff]  ;;  %v337_v2 = vld [vmem:[%s4726_s14 + $0x588] sm:$0xff] }
  0x4b   : > { %v4288_v6 = vcombine.high %v336_v0, %v340_v1  ;;  %v4287_v13 = vcombine.low %v336_v0, %v340_v1  ;;  %v4289_v14 = vcombine.low %v337_v2, %v341_v3  ;;  %v397_v0 = vld [vmem:[%s4726_s14 + $0x768] sm:$0xff] }
  0x4d   : > { %3319 = vmatpush1.bf16.msra.mxu0 %v4223_v7  ;;  %3483 = vmatpush1.bf16.msra.mxu1 %v4225_v8  ;;  %v4290_v7 = vcombine.high %v337_v2, %v341_v3  ;;  %v344_v8 = vld [vmem:[%s4726_s14 + $0x5c0] sm:$0xff] }
  0x4e   : > { %3320 = vmatprep.subr.bf16.mxu0 %v4232_v10  ;;  %3484 = vmatprep.subr.bf16.mxu1 %v4234_v11  ;;  %v348_v10 = vld [vmem:[%s4726_s14 + $0x5e0] sm:$0xff]  ;;  %v345_v11 = vld [vmem:[%s4726_s14 + $0x5c8] sm:$0xff] }
  0x4f   : > { %v4296_v15 = vcombine.high %v344_v8, %v348_v10  ;;  %v4295_v21 = vcombine.low %v344_v8, %v348_v10  ;;  %v4297_v23 = vcombine.low %v345_v11, %v349_v12  ;;  %v405_v8 = vld [vmem:[%s4726_s14 + $0x7a8] sm:$0xff] }
  0x51   : > { %3321 = vmatpush1.bf16.msra.mxu0 %v4231_v16  ;;  %3485 = vmatpush1.bf16.msra.mxu1 %v4233_v17  ;;  %v4298_v16 = vcombine.high %v345_v11, %v349_v12  ;;  %v352_v17 = vld [vmem:[%s4726_s14 + $0x600] sm:$0xff] }
  0x52   : > { %3331 = vmatprep.subr.bf16.mxu0 %v4240_v18  ;;  %3495 = vmatprep.subr.bf16.mxu1 %v4242_v19  ;;  %v356_v18 = vld [vmem:[%s4726_s14 + $0x620] sm:$0xff]  ;;  %v353_v19 = vld [vmem:[%s4726_s14 + $0x608] sm:$0xff] }
  0x53   : > { %v4304_v24 = vcombine.high %v352_v17, %v356_v18  ;;  %v4303_v30 = vcombine.low %v352_v17, %v356_v18  ;;  %v4305_v63 = vcombine.low %v353_v19, %v357_v20  ;;  %v409_v17 = vld [vmem:[%s4726_s14 + $0x7c8] sm:$0xff] }
  0x54   : > { %3323 = vmatmul.mubr.bf16.vlgmr.msra.gmra.mrb[0].mxu0 %v4821_v22  ;;  %3487 = vmatmul.mubr.bf16.vlgmr.msra.gmra.mrb[0].mxu1 %v4821_v22  ;;  %v413_v18 = vld [vmem:[%s4726_s14 + $0x7e8] sm:$0xff] }
  0x55   : > { %3332 = vmatpush1.bf16.msra.mxu0 %v4239_v25  ;;  %3496 = vmatpush1.bf16.msra.mxu1 %v4241_v26  ;;  %v4306_v25 = vcombine.high %v353_v19, %v357_v20  ;;  %v360_v26 = vld [vmem:[%s4726_s14 + $0x640] sm:$0xff] }
  0x56   : > { %3333 = vmatprep.subr.bf16.mxu0 %v4248_v27  ;;  %3497 = vmatprep.subr.bf16.mxu1 %v4250_v28  ;;  %v364_v27 = vld [vmem:[%s4726_s14 + $0x660] sm:$0xff]  ;;  %v361_v28 = vld [vmem:[%s4726_s14 + $0x648] sm:$0xff] }
  0x57   : > { %3363 = vmatprep.mubr.bf16.mxu0 %v4829_v31  ;;  %3527 = vmatprep.mubr.bf16.mxu1 %v4829_v31  ;;  %v4312_v32 = vcombine.high %v360_v26, %v364_v27  ;;  %v4311_v38 = vcombine.low %v360_v26, %v364_v27  ;;  %v4313_v39 = vcombine.low %v361_v28, %v365_v29  ;;  %v421_v27 = vld [vmem:[%s4726_s14 + $0x828] sm:$0xff] }
  0x59   : > { %3334 = vmatpush1.bf16.msra.mxu0 %v4247_v33  ;;  %3498 = vmatpush1.bf16.msra.mxu1 %v4249_v34  ;;  %v4314_v33 = vcombine.high %v361_v28, %v365_v29  ;;  %v368_v34 = vld [vmem:[%s4726_s14 + $0x680] sm:$0xff]  ;;  %v4361_v29 = vcombine.low %v409_v17, %v413_v18 }
  0x5a   : > { %3335 = vmatprep.subr.bf16.mxu0 %v4256_v35  ;;  %3499 = vmatprep.subr.bf16.mxu1 %v4258_v36  ;;  %v372_v35 = vld [vmem:[%s4726_s14 + $0x6a0] sm:$0xff]  ;;  %v369_v36 = vld [vmem:[%s4726_s14 + $0x688] sm:$0xff] }
  0x5b   : > { %v4320_v40 = vcombine.high %v368_v34, %v372_v35  ;;  %v4319_v46 = vcombine.low %v368_v34, %v372_v35  ;;  %v4321_v47 = vcombine.low %v369_v36, %v373_v37  ;;  %v4904_v35 = vcombine.high %v4821_v22, %v4821_v22 }
  0x5d   : > { %3336 = vmatpush1.bf16.msra.mxu0 %v4255_v41  ;;  %3500 = vmatpush1.bf16.msra.mxu1 %v4257_v42  ;;  %v4322_v41 = vcombine.high %v369_v36, %v373_v37  ;;  %v376_v42 = vld [vmem:[%s4726_s14 + $0x6c0] sm:$0xff]  ;;  %v425_v36 = vld [vmem:[%s4726_s14 + $0x848] sm:$0xff] }
  0x5e   : > { %3337 = vmatprep.subr.bf16.mxu0 %v4264_v43  ;;  %3501 = vmatprep.subr.bf16.mxu1 %v4266_v44  ;;  %v380_v43 = vld [vmem:[%s4726_s14 + $0x6e0] sm:$0xff]  ;;  %v377_v44 = vld [vmem:[%s4726_s14 + $0x6c8] sm:$0xff] }
  0x5f   : > { %v4328_v48 = vcombine.high %v376_v42, %v380_v43  ;;  %v4327_v55 = vcombine.low %v376_v42, %v380_v43  ;;  %v4329_v56 = vcombine.low %v377_v44, %v381_v45  ;;  %v429_v37 = vld [vmem:[%s4726_s14 + $0x868] sm:$0xff]  ;;  %v432_v42 = vld [vmem:[%s4726_s14 + $0x880] sm:$0xff] }
  0x60   : > { %v436_v43 = vld [vmem:[%s4726_s14 + $0x8a0] sm:$0xff] }
  0x61   : > { %3338 = vmatpush1.bf16.msra.mxu0 %v4263_v49  ;;  %3502 = vmatpush1.bf16.msra.mxu1 %v4265_v50  ;;  %v4330_v49 = vcombine.high %v377_v44, %v381_v45  ;;  %v384_v50 = vld [vmem:[%s4726_s14 + $0x700] sm:$0xff]  ;;  %v433_v45 = vld [vmem:[%s4726_s14 + $0x888] sm:$0xff] }
  0x62   : > { %3339 = vmatprep.subr.bf16.mxu0 %v4272_v51  ;;  %3503 = vmatprep.subr.bf16.mxu1 %v4274_v52  ;;  %v388_v51 = vld [vmem:[%s4726_s14 + $0x720] sm:$0xff]  ;;  %v385_v52 = vld [vmem:[%s4726_s14 + $0x708] sm:$0xff] }
  0x63   : > { %v4336_v57 = vcombine.high %v384_v50, %v388_v51  ;;  %v4335_v1 = vcombine.low %v384_v50, %v388_v51  ;;  %v4337_v2 = vcombine.low %v385_v52, %v389_v54  ;;  %v440_v51 = vld [vmem:[%s4726_s14 + $0x8c0] sm:$0xff] }
  0x65   : > { %3340 = vmatpush1.bf16.msra.mxu0 %v4271_v58  ;;  %3504 = vmatpush1.bf16.msra.mxu1 %v4273_v60  ;;  %v4338_v58 = vcombine.high %v385_v52, %v389_v54  ;;  %v392_v60 = vld [vmem:[%s4726_s14 + $0x740] sm:$0xff]  ;;  %v441_v54 = vld [vmem:[%s4726_s14 + $0x8c8] sm:$0xff] }
  0x66   : > { %3341 = vmatprep.subr.bf16.mxu0 %v4280_v61  ;;  %3505 = vmatprep.subr.bf16.mxu1 %v4282_v62  ;;  %v396_v61 = vld [vmem:[%s4726_s14 + $0x760] sm:$0xff]  ;;  %v393_v62 = vld [vmem:[%s4726_s14 + $0x748] sm:$0xff] }
  0x67   : > { %v4344_v3 = vcombine.high %v392_v60, %v396_v61  ;;  %v4343_v10 = vcombine.low %v392_v60, %v396_v61  ;;  %v4345_v11 = vcombine.low %v393_v62, %v397_v0  ;;  %v444_v52 = vld [vmem:[%s4726_s14 + $0x8e0] sm:$0xff] }
  0x68   : > { %v448_v61 = vld [vmem:[%s4726_s14 + $0x900] sm:$0xff] }
  0x69   : > { %3342 = vmatpush1.bf16.msra.mxu0 %v4279_v4  ;;  %3506 = vmatpush1.bf16.msra.mxu1 %v4281_v5  ;;  %v4346_v4 = vcombine.high %v393_v62, %v397_v0  ;;  %v400_v5 = vld [vmem:[%s4726_s14 + $0x780] sm:$0xff]  ;;  %v449_v0 = vld [vmem:[%s4726_s14 + $0x908] sm:$0xff] }
  0x6a   : > { %3343 = vmatprep.subr.bf16.mxu0 %v4288_v6  ;;  %3507 = vmatprep.subr.bf16.mxu1 %v4290_v7  ;;  %v404_v6 = vld [vmem:[%s4726_s14 + $0x7a0] sm:$0xff]  ;;  %v401_v7 = vld [vmem:[%s4726_s14 + $0x788] sm:$0xff] }
  0x6b   : > { %v4352_v12 = vcombine.high %v400_v5, %v404_v6  ;;  %v4351_v19 = vcombine.low %v400_v5, %v404_v6  ;;  %v4353_v20 = vcombine.low %v401_v7, %v405_v8  ;;  %v452_v62 = vld [vmem:[%s4726_s14 + $0x920] sm:$0xff] }
  0x6c   : > { %v456_v6 = vld [vmem:[%s4726_s14 + $0x940] sm:$0xff] }
  0x6d   : > { %3344 = vmatpush1.bf16.msra.mxu0 %v4287_v13  ;;  %3508 = vmatpush1.bf16.msra.mxu1 %v4289_v14  ;;  %v4354_v13 = vcombine.high %v401_v7, %v405_v8  ;;  %v408_v14 = vld [vmem:[%s4726_s14 + $0x7c0] sm:$0xff]  ;;  %v457_v8 = vld [vmem:[%s4726_s14 + $0x948] sm:$0xff] }
  0x6e   : > { %3345 = vmatprep.subr.bf16.mxu0 %v4296_v15  ;;  %3509 = vmatprep.subr.bf16.mxu1 %v4298_v16  ;;  %v412_v15 = vld [vmem:[%s4726_s14 + $0x7e0] sm:$0xff]  ;;  %v673_v16 = vcombine.high %v4764_v59, %v4764_v59  ;;  %v417_v59 = vld [vmem:[%s4726_s14 + $0x808] sm:$0xff] }
  0x6f   : > { %v4359_v28 = vcombine.low %v408_v14, %v412_v15  ;;  %v460_v7 = vld [vmem:[%s4726_s14 + $0x960] sm:$0xff] }
  0x70   : > { %v4894_v26 = vrot.slane %v673_v16, %v4760_v53  ;;  %v468_v16 = vld [vmem:[%s4726_s14 + $0x9a0] sm:$0xff] }
  0x71   : > { %3346 = vmatpush1.bf16.msra.mxu0 %v4295_v21  ;;  %3510 = vmatpush1.bf16.msra.mxu1 %v4297_v23  ;;  %v4360_v21 = vcombine.high %v408_v14, %v412_v15  ;;  %v4362_v23 = vcombine.high %v409_v17, %v413_v18  ;;  %v464_v15 = vld [vmem:[%s4726_s14 + $0x980] sm:$0xff]  ;;  %v465_v17 = vld [vmem:[%s4726_s14 + $0x988] sm:$0xff] }
  0x72   : > { %3347 = vmatprep.subr.bf16.mxu0 %v4304_v24  ;;  %3511 = vmatprep.subr.bf16.mxu1 %v4306_v25  ;;  %v416_v24 = vld [vmem:[%s4726_s14 + $0x800] sm:$0xff]  ;;  %v689_v34 = vcombine.high %v4894_v26, %v4894_v26  ;;  %v469_v18 = vld [vmem:[%s4726_s14 + $0x9a8] sm:$0xff] }
  0x73   : > { %v420_v25 = vld [vmem:[%s4726_s14 + $0x820] sm:$0xff] }
  0x74   : > { %v4911_v44 = vrot.slane %v689_v34, %v4760_v53  ;;  %v481_v34 = vld [vmem:[%s4726_s14 + $0xa08] sm:$0xff] }
  0x75   : > { %3348 = vmatpush1.bf16.msra.mxu0 %v4303_v30  ;;  %3512 = vmatpush1.bf16.msra.mxu1 %v4305_v63  ;;  %v4368_v30 = vcombine.high %v416_v24, %v420_v25  ;;  %v4370_v63 = vcombine.high %v417_v59, %v421_v27 }
  0x76   : > { %3349 = vmatprep.subr.bf16.mxu0 %v4312_v32  ;;  %3513 = vmatprep.subr.bf16.mxu1 %v4314_v33  ;;  %v424_v32 = vld [vmem:[%s4726_s14 + $0x840] sm:$0xff] }
  0x77   : > { %v428_v33 = vld [vmem:[%s4726_s14 + $0x860] sm:$0xff] }
  0x79   : > { %3350 = vmatpush1.bf16.msra.mxu0 %v4311_v38  ;;  %3514 = vmatpush1.bf16.msra.mxu1 %v4313_v39  ;;  %v4367_v38 = vcombine.low %v416_v24, %v420_v25  ;;  %v4369_v39 = vcombine.low %v417_v59, %v421_v27  ;;  %v472_v24 = vld [vmem:[%s4726_s14 + $0x9c0] sm:$0xff]  ;;  %v473_v59 = vld [vmem:[%s4726_s14 + $0x9c8] sm:$0xff] }
  0x7a   : > { %3351 = vmatprep.subr.bf16.mxu0 %v4320_v40  ;;  %3515 = vmatprep.subr.bf16.mxu1 %v4322_v41  ;;  %v4376_v40 = vcombine.high %v424_v32, %v428_v33  ;;  %v4378_v41 = vcombine.high %v425_v36, %v429_v37  ;;  %v476_v25 = vld [vmem:[%s4726_s14 + $0x9e0] sm:$0xff]  ;;  %v477_v27 = vld [vmem:[%s4726_s14 + $0x9e8] sm:$0xff] }
  0x7d   : > { %3352 = vmatpush1.bf16.msra.mxu0 %v4319_v46  ;;  %3516 = vmatpush1.bf16.msra.mxu1 %v4321_v47  ;;  %v437_v46 = vld [vmem:[%s4726_s14 + $0x8a8] sm:$0xff]  ;;  %v4375_v47 = vcombine.low %v424_v32, %v428_v33  ;;  %v480_v32 = vld [vmem:[%s4726_s14 + $0xa00] sm:$0xff] }
  0x7e   : > { %3353 = vmatprep.subr.bf16.mxu0 %v4328_v48  ;;  %3517 = vmatprep.subr.bf16.mxu1 %v4330_v49  ;;  %v4377_v48 = vcombine.low %v425_v36, %v429_v37  ;;  %v4384_v49 = vcombine.high %v432_v42, %v436_v43  ;;  %v4386_v50 = vcombine.high %v433_v45, %v437_v46  ;;  %v484_v33 = vld [vmem:[%s4726_s14 + $0xa20] sm:$0xff]  ;;  %v485_v36 = vld [vmem:[%s4726_s14 + $0xa28] sm:$0xff] }
  0x7f   : > { %v4423_v37 = vcombine.low %v472_v24, %v476_v25 }
  0x81   : > { %3354 = vmatpush1.bf16.msra.mxu0 %v4327_v55  ;;  %3518 = vmatpush1.bf16.msra.mxu1 %v4329_v56  ;;  %v445_v55 = vld [vmem:[%s4726_s14 + $0x8e8] sm:$0xff]  ;;  %v4383_v56 = vcombine.low %v432_v42, %v436_v43  ;;  %v492_v42 = vld [vmem:[%s4726_s14 + $0xa60] sm:$0xff] }
  0x82   : > { %3355 = vmatprep.subr.bf16.mxu0 %v4336_v57  ;;  %3519 = vmatprep.subr.bf16.mxu1 %v4338_v58  ;;  %v4385_v57 = vcombine.low %v433_v45, %v437_v46  ;;  %v4392_v58 = vcombine.high %v440_v51, %v444_v52  ;;  %v4394_v60 = vcombine.high %v441_v54, %v445_v55  ;;  %v489_v43 = vld [vmem:[%s4726_s14 + $0xa48] sm:$0xff] }
  0x83   : > { %v493_v45 = vld [vmem:[%s4726_s14 + $0xa68] sm:$0xff]  ;;  %v4431_v46 = vcombine.low %v480_v32, %v484_v33 }
  0x85   : > { %3356 = vmatpush1.bf16.msra.mxu0 %v4335_v1  ;;  %3520 = vmatpush1.bf16.msra.mxu1 %v4337_v2  ;;  %v453_v1 = vld [vmem:[%s4726_s14 + $0x928] sm:$0xff]  ;;  %v4391_v2 = vcombine.low %v440_v51, %v444_v52  ;;  %v500_v51 = vld [vmem:[%s4726_s14 + $0xaa0] sm:$0xff] }
  0x86   : > { %3357 = vmatprep.subr.bf16.mxu0 %v4344_v3  ;;  %3521 = vmatprep.subr.bf16.mxu1 %v4346_v4  ;;  %v4393_v3 = vcombine.low %v441_v54, %v445_v55  ;;  %v4400_v4 = vcombine.high %v448_v61, %v452_v62  ;;  %v4402_v5 = vcombine.high %v449_v0, %v453_v1  ;;  %v497_v52 = vld [vmem:[%s4726_s14 + $0xa88] sm:$0xff] }
  0x87   : > { %v501_v54 = vld [vmem:[%s4726_s14 + $0xaa8] sm:$0xff] }
  0x89   : > { %3358 = vmatpush1.bf16.msra.mxu0 %v4343_v10  ;;  %3522 = vmatpush1.bf16.msra.mxu1 %v4345_v11  ;;  %v461_v10 = vld [vmem:[%s4726_s14 + $0x968] sm:$0xff]  ;;  %v4399_v11 = vcombine.low %v448_v61, %v452_v62  ;;  %v508_v61 = vld [vmem:[%s4726_s14 + $0xae0] sm:$0xff] }
  0x8a   : > { %3359 = vmatprep.subr.bf16.mxu0 %v4352_v12  ;;  %3523 = vmatprep.subr.bf16.mxu1 %v4354_v13  ;;  %v4401_v12 = vcombine.low %v449_v0, %v453_v1  ;;  %v4408_v13 = vcombine.high %v456_v6, %v460_v7  ;;  %v4410_v14 = vcombine.high %v457_v8, %v461_v10  ;;  %v505_v62 = vld [vmem:[%s4726_s14 + $0xac8] sm:$0xff] }
  0x8b   : > { %v509_v0 = vld [vmem:[%s4726_s14 + $0xae8] sm:$0xff] }
  0x8d   : > { %3360 = vmatpush1.bf16.msra.mxu0 %v4351_v19  ;;  %3524 = vmatpush1.bf16.msra.mxu1 %v4353_v20  ;;  %v4407_v19 = vcombine.low %v456_v6, %v460_v7  ;;  %v4409_v20 = vcombine.low %v457_v8, %v461_v10  ;;  %v516_v6 = vld [vmem:[%s4726_s14 + $0xb20] sm:$0xff]  ;;  %v513_v7 = vld [vmem:[%s4726_s14 + $0xb08] sm:$0xff] }
  0x8e   : > { %3361 = vmatprep.subr.bf16.mxu0 %v4360_v21  ;;  %3525 = vmatprep.subr.bf16.mxu1 %v4362_v23  ;;  %v4416_v21 = vcombine.high %v464_v15, %v468_v16  ;;  %v4418_v23 = vcombine.high %v465_v17, %v469_v18  ;;  %v517_v8 = vld [vmem:[%s4726_s14 + $0xb28] sm:$0xff] }
  0x91   : > { %3362 = vmatpush1.bf16.msra.mxu0 %v4359_v28  ;;  %3526 = vmatpush1.bf16.msra.mxu1 %v4361_v29  ;;  %v4415_v28 = vcombine.low %v464_v15, %v468_v16  ;;  %v4417_v29 = vcombine.low %v465_v17, %v469_v18  ;;  %v524_v15 = vld [vmem:[%s4726_s14 + $0xb60] sm:$0xff]  ;;  %v521_v16 = vld [vmem:[%s4726_s14 + $0xb48] sm:$0xff] }
  0x92   : > { %3372 = vmatprep.subr.bf16.mxu0 %v4368_v30  ;;  %3536 = vmatprep.subr.bf16.mxu1 %v4370_v63  ;;  %v4424_v30 = vcombine.high %v472_v24, %v476_v25  ;;  %v4426_v63 = vcombine.high %v473_v59, %v477_v27  ;;  %v525_v17 = vld [vmem:[%s4726_s14 + $0xb68] sm:$0xff]  ;;  %v532_v24 = vld [vmem:[%s4726_s14 + $0xba0] sm:$0xff] }
  0x93   : > { %v529_v25 = vld [vmem:[%s4726_s14 + $0xb88] sm:$0xff] }
  0x94   : > { %3364 = vmatmul.mubr.bf16.vlgmr.msra.gmra.mrb[0].mxu0 %v4904_v35  ;;  %3528 = vmatmul.mubr.bf16.vlgmr.msra.gmra.mrb[0].mxu1 %v4904_v35 }
  0x95   : > { %3373 = vmatpush1.bf16.msra.mxu0 %v4367_v38  ;;  %3537 = vmatpush1.bf16.msra.mxu1 %v4369_v39  ;;  %v4425_v38 = vcombine.low %v473_v59, %v477_v27  ;;  %v4432_v39 = vcombine.high %v480_v32, %v484_v33  ;;  %v533_v59 = vld [vmem:[%s4726_s14 + $0xba8] sm:$0xff]  ;;  %v540_v32 = vld [vmem:[%s4726_s14 + $0xbe0] sm:$0xff] }
  0x96   : > { %3374 = vmatprep.subr.bf16.mxu0 %v4376_v40  ;;  %3538 = vmatprep.subr.bf16.mxu1 %v4378_v41  ;;  %v4434_v40 = vcombine.high %v481_v34, %v485_v36  ;;  %v488_v41 = vld [vmem:[%s4726_s14 + $0xa40] sm:$0xff]  ;;  %v537_v33 = vld [vmem:[%s4726_s14 + $0xbc8] sm:$0xff] }
  0x97   : > { %3404 = vmatprep.mubr.bf16.mxu0 %v4911_v44  ;;  %3568 = vmatprep.mubr.bf16.mxu1 %v4911_v44  ;;  %v4439_v55 = vcombine.low %v488_v41, %v492_v42 }
  0x99   : > { %3375 = vmatpush1.bf16.msra.mxu0 %v4375_v47  ;;  %3539 = vmatpush1.bf16.msra.mxu1 %v4377_v48  ;;  %v4433_v47 = vcombine.low %v481_v34, %v485_v36  ;;  %v4440_v48 = vcombine.high %v488_v41, %v492_v42  ;;  %v541_v34 = vld [vmem:[%s4726_s14 + $0xbe8] sm:$0xff]  ;;  %v548_v41 = vld [vmem:[%s4726_s14 + $0xc20] sm:$0xff] }
  0x9a   : > { %3376 = vmatprep.subr.bf16.mxu0 %v4384_v49  ;;  %3540 = vmatprep.subr.bf16.mxu1 %v4386_v50  ;;  %v4442_v49 = vcombine.high %v489_v43, %v493_v45  ;;  %v496_v50 = vld [vmem:[%s4726_s14 + $0xa80] sm:$0xff]  ;;  %v545_v42 = vld [vmem:[%s4726_s14 + $0xc08] sm:$0xff] }
  0x9b   : > { %v4447_v1 = vcombine.low %v496_v50, %v500_v51 }
  0x9d   : > { %3377 = vmatpush1.bf16.msra.mxu0 %v4383_v56  ;;  %3541 = vmatpush1.bf16.msra.mxu1 %v4385_v57  ;;  %v4441_v56 = vcombine.low %v489_v43, %v493_v45  ;;  %v4448_v57 = vcombine.high %v496_v50, %v500_v51  ;;  %v549_v43 = vld [vmem:[%s4726_s14 + $0xc28] sm:$0xff]  ;;  %v556_v50 = vld [vmem:[%s4726_s14 + $0xc60] sm:$0xff]  ;;  %v4979_v51 = vrot.slane %v4894_v26, %v4760_v53 }
  0x9e   : > { %3378 = vmatprep.subr.bf16.mxu0 %v4392_v58  ;;  %3542 = vmatprep.subr.bf16.mxu1 %v4394_v60  ;;  %v4450_v58 = vcombine.high %v497_v52, %v501_v54  ;;  %v504_v60 = vld [vmem:[%s4726_s14 + $0xac0] sm:$0xff]  ;;  %v561_v26 = vld [vmem:[%s4726_s14 + $0xc88] sm:$0xff] }
  0x9f   : > { %v4455_v10 = vcombine.low %v504_v60, %v508_v61 }
  0xa1   : > { %3379 = vmatpush1.bf16.msra.mxu0 %v4391_v2  ;;  %3543 = vmatpush1.bf16.msra.mxu1 %v4393_v3  ;;  %v4449_v2 = vcombine.low %v497_v52, %v501_v54  ;;  %v4456_v3 = vcombine.high %v504_v60, %v508_v61  ;;  %v553_v52 = vld [vmem:[%s4726_s14 + $0xc48] sm:$0xff]  ;;  %v560_v60 = vld [vmem:[%s4726_s14 + $0xc80] sm:$0xff] }
  0xa2   : > { %3380 = vmatprep.subr.bf16.mxu0 %v4400_v4  ;;  %3544 = vmatprep.subr.bf16.mxu1 %v4402_v5  ;;  %v4458_v4 = vcombine.high %v505_v62, %v509_v0  ;;  %v512_v5 = vld [vmem:[%s4726_s14 + $0xb00] sm:$0xff]  ;;  %v557_v54 = vld [vmem:[%s4726_s14 + $0xc68] sm:$0xff] }
  0xa3   : > { %v4463_v18 = vcombine.low %v512_v5, %v516_v6  ;;  %v564_v61 = vld [vmem:[%s4726_s14 + $0xca0] sm:$0xff] }
  0xa5   : > { %3381 = vmatpush1.bf16.msra.mxu0 %v4399_v11  ;;  %3545 = vmatpush1.bf16.msra.mxu1 %v4401_v12  ;;  %v4457_v11 = vcombine.low %v505_v62, %v509_v0  ;;  %v4464_v12 = vcombine.high %v512_v5, %v516_v6  ;;  %v4987_v62 = vcombine.high %v4911_v44, %v4911_v44  ;;  %v565_v0 = vld [vmem:[%s4726_s14 + $0xca8] sm:$0xff]  ;;  %v568_v5 = vld [vmem:[%s4726_s14 + $0xcc0] sm:$0xff] }
  0xa6   : > { %3382 = vmatprep.subr.bf16.mxu0 %v4408_v13  ;;  %3546 = vmatprep.subr.bf16.mxu1 %v4410_v14  ;;  %v4466_v13 = vcombine.high %v513_v7, %v517_v8  ;;  %v520_v14 = vld [vmem:[%s4726_s14 + $0xb40] sm:$0xff] }
  0xa7   : > { %v4471_v27 = vcombine.low %v520_v14, %v524_v15  ;;  %v572_v6 = vld [vmem:[%s4726_s14 + $0xce0] sm:$0xff] }
  0xa9   : > { %3383 = vmatpush1.bf16.msra.mxu0 %v4407_v19  ;;  %3547 = vmatpush1.bf16.msra.mxu1 %v4409_v20  ;;  %v4465_v19 = vcombine.low %v513_v7, %v517_v8  ;;  %v4472_v20 = vcombine.high %v520_v14, %v524_v15  ;;  %v569_v7 = vld [vmem:[%s4726_s14 + $0xcc8] sm:$0xff]  ;;  %v576_v14 = vld [vmem:[%s4726_s14 + $0xd00] sm:$0xff] }
  0xaa   : > { %3384 = vmatprep.subr.bf16.mxu0 %v4416_v21  ;;  %3548 = vmatprep.subr.bf16.mxu1 %v4418_v23  ;;  %v4474_v21 = vcombine.high %v521_v16, %v525_v17  ;;  %v528_v23 = vld [vmem:[%s4726_s14 + $0xb80] sm:$0xff]  ;;  %v573_v8 = vld [vmem:[%s4726_s14 + $0xce8] sm:$0xff] }
  0xab   : > { %v4479_v36 = vcombine.low %v528_v23, %v532_v24  ;;  %v580_v15 = vld [vmem:[%s4726_s14 + $0xd20] sm:$0xff] }
  0xad   : > { %3385 = vmatpush1.bf16.msra.mxu0 %v4415_v28  ;;  %3549 = vmatpush1.bf16.msra.mxu1 %v4417_v29  ;;  %v4473_v28 = vcombine.low %v521_v16, %v525_v17  ;;  %v4480_v29 = vcombine.high %v528_v23, %v532_v24  ;;  %v577_v16 = vld [vmem:[%s4726_s14 + $0xd08] sm:$0xff]  ;;  %v584_v23 = vld [vmem:[%s4726_s14 + $0xd40] sm:$0xff] }
  0xae   : > { %3386 = vmatprep.subr.bf16.mxu0 %v4424_v30  ;;  %3550 = vmatprep.subr.bf16.mxu1 %v4426_v63  ;;  %v4482_v30 = vcombine.high %v529_v25, %v533_v59  ;;  %v536_v63 = vld [vmem:[%s4726_s14 + $0xbc0] sm:$0xff]  ;;  %v581_v17 = vld [vmem:[%s4726_s14 + $0xd28] sm:$0xff] }
  0xaf   : > { %v4487_v45 = vcombine.low %v536_v63, %v540_v32  ;;  %v588_v24 = vld [vmem:[%s4726_s14 + $0xd60] sm:$0xff] }
  0xb1   : > { %3387 = vmatpush1.bf16.msra.mxu0 %v4423_v37  ;;  %3551 = vmatpush1.bf16.msra.mxu1 %v4425_v38  ;;  %v4481_v37 = vcombine.low %v529_v25, %v533_v59  ;;  %v4488_v38 = vcombine.high %v536_v63, %v540_v32  ;;  %v585_v25 = vld [vmem:[%s4726_s14 + $0xd48] sm:$0xff]  ;;  %v592_v63 = vld [vmem:[%s4726_s14 + $0xd80] sm:$0xff] }
  0xb2   : > { %3388 = vmatprep.subr.bf16.mxu0 %v4432_v39  ;;  %3552 = vmatprep.subr.bf16.mxu1 %v4434_v40  ;;  %v4490_v39 = vcombine.high %v537_v33, %v541_v34  ;;  %v544_v40 = vld [vmem:[%s4726_s14 + $0xc00] sm:$0xff]  ;;  %v589_v59 = vld [vmem:[%s4726_s14 + $0xd68] sm:$0xff] }
  0xb3   : > { %v596_v32 = vld [vmem:[%s4726_s14 + $0xda0] sm:$0xff] }
  0xb5   : > { %3389 = vmatpush1.bf16.msra.mxu0 %v4431_v46  ;;  %3553 = vmatpush1.bf16.msra.mxu1 %v4433_v47  ;;  %v4489_v46 = vcombine.low %v537_v33, %v541_v34  ;;  %v4496_v47 = vcombine.high %v544_v40, %v548_v41  ;;  %v593_v33 = vld [vmem:[%s4726_s14 + $0xd88] sm:$0xff] }
  0xb6   : > { %3390 = vmatprep.subr.bf16.mxu0 %v4440_v48  ;;  %3554 = vmatprep.subr.bf16.mxu1 %v4442_v49  ;;  %v4498_v48 = vcombine.high %v545_v42, %v549_v43  ;;  %v552_v49 = vld [vmem:[%s4726_s14 + $0xc40] sm:$0xff]  ;;  %v597_v34 = vld [vmem:[%s4726_s14 + $0xda8] sm:$0xff] }
  0xb9   : > { %3391 = vmatpush1.bf16.msra.mxu0 %v4439_v55  ;;  %3555 = vmatpush1.bf16.msra.mxu1 %v4441_v56  ;;  %v4495_v55 = vcombine.low %v544_v40, %v548_v41  ;;  %v4497_v56 = vcombine.low %v545_v42, %v549_v43  ;;  %v600_v40 = vld [vmem:[%s4726_s14 + $0xdc0] sm:$0xff]  ;;  %v601_v42 = vld [vmem:[%s4726_s14 + $0xdc8] sm:$0xff] }
  0xba   : > { %3392 = vmatprep.subr.bf16.mxu0 %v4448_v57  ;;  %3556 = vmatprep.subr.bf16.mxu1 %v4450_v58  ;;  %v4504_v57 = vcombine.high %v552_v49, %v556_v50  ;;  %v4506_v58 = vcombine.high %v553_v52, %v557_v54  ;;  %v604_v41 = vld [vmem:[%s4726_s14 + $0xde0] sm:$0xff]  ;;  %v605_v43 = vld [vmem:[%s4726_s14 + $0xde8] sm:$0xff] }
  0xbd   : > { %3393 = vmatpush1.bf16.msra.mxu0 %v4447_v1  ;;  %3557 = vmatpush1.bf16.msra.mxu1 %v4449_v2  ;;  %v4503_v1 = vcombine.low %v552_v49, %v556_v50  ;;  %v4505_v2 = vcombine.low %v553_v52, %v557_v54  ;;  %v608_v49 = vld [vmem:[%s4726_s14 + $0xe00] sm:$0xff]  ;;  %v609_v52 = vld [vmem:[%s4726_s14 + $0xe08] sm:$0xff] }
  0xbe   : > { %3394 = vmatprep.subr.bf16.mxu0 %v4456_v3  ;;  %3558 = vmatprep.subr.bf16.mxu1 %v4458_v4  ;;  %v4512_v3 = vcombine.high %v560_v60, %v564_v61  ;;  %v4514_v4 = vcombine.high %v561_v26, %v565_v0  ;;  %v612_v50 = vld [vmem:[%s4726_s14 + $0xe20] sm:$0xff]  ;;  %v613_v54 = vld [vmem:[%s4726_s14 + $0xe28] sm:$0xff] }
  0xc1   : > { %3395 = vmatpush1.bf16.msra.mxu0 %v4455_v10  ;;  %3559 = vmatpush1.bf16.msra.mxu1 %v4457_v11  ;;  %v4511_v10 = vcombine.low %v560_v60, %v564_v61  ;;  %v4513_v11 = vcombine.low %v561_v26, %v565_v0  ;;  %v616_v60 = vld [vmem:[%s4726_s14 + $0xe40] sm:$0xff]  ;;  %v617_v26 = vld [vmem:[%s4726_s14 + $0xe48] sm:$0xff] }
  0xc2   : > { %3396 = vmatprep.subr.bf16.mxu0 %v4464_v12  ;;  %3560 = vmatprep.subr.bf16.mxu1 %v4466_v13  ;;  %v4520_v12 = vcombine.high %v568_v5, %v572_v6  ;;  %v4522_v13 = vcombine.high %v569_v7, %v573_v8  ;;  %v620_v61 = vld [vmem:[%s4726_s14 + $0xe60] sm:$0xff]  ;;  %v621_v0 = vld [vmem:[%s4726_s14 + $0xe68] sm:$0xff] }
  0xc5   : > { %3397 = vmatpush1.bf16.msra.mxu0 %v4463_v18  ;;  %3561 = vmatpush1.bf16.msra.mxu1 %v4465_v19  ;;  %v4519_v18 = vcombine.low %v568_v5, %v572_v6  ;;  %v4521_v19 = vcombine.low %v569_v7, %v573_v8  ;;  %v624_v5 = vld [vmem:[%s4726_s14 + $0xe80] sm:$0xff]  ;;  %v625_v7 = vld [vmem:[%s4726_s14 + $0xe88] sm:$0xff] }
  0xc6   : > { %3398 = vmatprep.subr.bf16.mxu0 %v4472_v20  ;;  %3562 = vmatprep.subr.bf16.mxu1 %v4474_v21  ;;  %v4528_v20 = vcombine.high %v576_v14, %v580_v15  ;;  %v4530_v21 = vcombine.high %v577_v16, %v581_v17  ;;  %v628_v6 = vld [vmem:[%s4726_s14 + $0xea0] sm:$0xff]  ;;  %v629_v8 = vld [vmem:[%s4726_s14 + $0xea8] sm:$0xff] }
  0xc9   : > { %3399 = vmatpush1.bf16.msra.mxu0 %v4471_v27  ;;  %3563 = vmatpush1.bf16.msra.mxu1 %v4473_v28  ;;  %v4527_v27 = vcombine.low %v576_v14, %v580_v15  ;;  %v4529_v28 = vcombine.low %v577_v16, %v581_v17  ;;  %v632_v14 = vld [vmem:[%s4726_s14 + $0xec0] sm:$0xff]  ;;  %v633_v16 = vld [vmem:[%s4726_s14 + $0xec8] sm:$0xff] }
  0xca   : > { %3400 = vmatprep.subr.bf16.mxu0 %v4480_v29  ;;  %3564 = vmatprep.subr.bf16.mxu1 %v4482_v30  ;;  %v4536_v29 = vcombine.high %v584_v23, %v588_v24  ;;  %v4538_v30 = vcombine.high %v585_v25, %v589_v59  ;;  %v636_v15 = vld [vmem:[%s4726_s14 + $0xee0] sm:$0xff]  ;;  %v637_v17 = vld [vmem:[%s4726_s14 + $0xee8] sm:$0xff] }
  0xcd   : > { %3401 = vmatpush1.bf16.msra.mxu0 %v4479_v36  ;;  %3565 = vmatpush1.bf16.msra.mxu1 %v4481_v37  ;;  %v4535_v36 = vcombine.low %v584_v23, %v588_v24  ;;  %v4537_v37 = vcombine.low %v585_v25, %v589_v59  ;;  %v640_v23 = vld [vmem:[%s4726_s14 + $0xf00] sm:$0xff]  ;;  %v641_v25 = vld [vmem:[%s4726_s14 + $0xf08] sm:$0xff] }
  0xce   : > { %3402 = vmatprep.subr.bf16.mxu0 %v4488_v38  ;;  %3566 = vmatprep.subr.bf16.mxu1 %v4490_v39  ;;  %v4544_v38 = vcombine.high %v592_v63, %v596_v32  ;;  %v4546_v39 = vcombine.high %v593_v33, %v597_v34  ;;  %v644_v24 = vld [vmem:[%s4726_s14 + $0xf20] sm:$0xff]  ;;  %v645_v59 = vld [vmem:[%s4726_s14 + $0xf28] sm:$0xff] }
  0xd1   : > { %3403 = vmatpush1.bf16.msra.mxu0 %v4487_v45  ;;  %3567 = vmatpush1.bf16.msra.mxu1 %v4489_v46  ;;  %v4543_v45 = vcombine.low %v592_v63, %v596_v32  ;;  %v4545_v46 = vcombine.low %v593_v33, %v597_v34  ;;  %v648_v63 = vld [vmem:[%s4726_s14 + $0xf40] sm:$0xff]  ;;  %v649_v33 = vld [vmem:[%s4726_s14 + $0xf48] sm:$0xff] }
  0xd2   : > { %3413 = vmatprep.subr.bf16.mxu0 %v4496_v47  ;;  %3577 = vmatprep.subr.bf16.mxu1 %v4498_v48  ;;  %v4552_v47 = vcombine.high %v600_v40, %v604_v41  ;;  %v4554_v48 = vcombine.high %v601_v42, %v605_v43  ;;  %v652_v32 = vld [vmem:[%s4726_s14 + $0xf60] sm:$0xff]  ;;  %v653_v34 = vld [vmem:[%s4726_s14 + $0xf68] sm:$0xff] }
  0xd4   : > { %3405 = vmatmul.mubr.bf16.vlgmr.msra.gmra.mrb[0].mxu0 %v4979_v51  ;;  %3569 = vmatmul.mubr.bf16.vlgmr.msra.gmra.mrb[0].mxu1 %v4979_v51 }
  0xd5   : > { %3414 = vmatpush1.bf16.msra.mxu0 %v4495_v55  ;;  %3578 = vmatpush1.bf16.msra.mxu1 %v4497_v56  ;;  %v4551_v55 = vcombine.low %v600_v40, %v604_v41  ;;  %v4553_v56 = vcombine.low %v601_v42, %v605_v43  ;;  %v656_v40 = vld [vmem:[%s4726_s14 + $0xf80] sm:$0xff]  ;;  %v657_v42 = vld [vmem:[%s4726_s14 + $0xf88] sm:$0xff] }
  0xd6   : > { %3415 = vmatprep.subr.bf16.mxu0 %v4504_v57  ;;  %3579 = vmatprep.subr.bf16.mxu1 %v4506_v58  ;;  %v4560_v57 = vcombine.high %v608_v49, %v612_v50  ;;  %v4562_v58 = vcombine.high %v609_v52, %v613_v54  ;;  %v660_v41 = vld [vmem:[%s4726_s14 + $0xfa0] sm:$0xff]  ;;  %v661_v43 = vld [vmem:[%s4726_s14 + $0xfa8] sm:$0xff] }
  0xd7   : > { %3445 = vmatprep.mubr.bf16.mxu0 %v4987_v62  ;;  %3609 = vmatprep.mubr.bf16.mxu1 %v4987_v62 }
  0xd9   : > { %3416 = vmatpush1.bf16.msra.mxu0 %v4503_v1  ;;  %3580 = vmatpush1.bf16.msra.mxu1 %v4505_v2  ;;  %v4559_v1 = vcombine.low %v608_v49, %v612_v50  ;;  %v4561_v2 = vcombine.low %v609_v52, %v613_v54  ;;  %v664_v49 = vld [vmem:[%s4726_s14 + $0xfc0] sm:$0xff]  ;;  %v665_v52 = vld [vmem:[%s4726_s14 + $0xfc8] sm:$0xff] }
  0xda   : > { %3417 = vmatprep.subr.bf16.mxu0 %v4512_v3  ;;  %3581 = vmatprep.subr.bf16.mxu1 %v4514_v4  ;;  %v4568_v3 = vcombine.high %v616_v60, %v620_v61  ;;  %v4570_v4 = vcombine.high %v617_v26, %v621_v0  ;;  %v668_v50 = vld [vmem:[%s4726_s14 + $0xfe0] sm:$0xff]  ;;  %v669_v54 = vld [vmem:[%s4726_s14 + $0xfe8] sm:$0xff] }
  0xdd   : > { %3418 = vmatpush1.bf16.msra.mxu0 %v4511_v10  ;;  %3582 = vmatpush1.bf16.msra.mxu1 %v4513_v11  ;;  %v4567_v10 = vcombine.low %v616_v60, %v620_v61  ;;  %v4569_v11 = vcombine.low %v617_v26, %v621_v0  ;;  %v162_v60 = vld [vmem:[%s4726_s14 + $0x10] sm:$0xff]  ;;  %v163_v26 = vld [vmem:[%s4726_s14 + $0x18] sm:$0xff] }
  0xde   : > { %3419 = vmatprep.subr.bf16.mxu0 %v4520_v12  ;;  %3583 = vmatprep.subr.bf16.mxu1 %v4522_v13  ;;  %v4576_v12 = vcombine.high %v624_v5, %v628_v6  ;;  %v4578_v13 = vcombine.high %v625_v7, %v629_v8  ;;  %v166_v61 = vld [vmem:[%s4726_s14 + $0x30] sm:$0xff]  ;;  %v167_v0 = vld [vmem:[%s4726_s14 + $0x38] sm:$0xff] }
  0xe1   : > { %3420 = vmatpush1.bf16.msra.mxu0 %v4519_v18  ;;  %3584 = vmatpush1.bf16.msra.mxu1 %v4521_v19  ;;  %v4575_v18 = vcombine.low %v624_v5, %v628_v6  ;;  %v4577_v19 = vcombine.low %v625_v7, %v629_v8  ;;  %v170_v5 = vld [vmem:[%s4726_s14 + $0x50] sm:$0xff]  ;;  %v5055_v7 = vcombine.high %v4979_v51, %v4979_v51  ;;  %v171_v8 = vld [vmem:[%s4726_s14 + $0x58] sm:$0xff] }
  0xe2   : > { %3421 = vmatprep.subr.bf16.mxu0 %v4528_v20  ;;  %3585 = vmatprep.subr.bf16.mxu1 %v4530_v21  ;;  %v4584_v20 = vcombine.high %v632_v14, %v636_v15  ;;  %v4586_v21 = vcombine.high %v633_v16, %v637_v17  ;;  %v174_v6 = vld [vmem:[%s4726_s14 + $0x70] sm:$0xff] }
  0xe5   : > { %3422 = vmatpush1.bf16.msra.mxu0 %v4527_v27  ;;  %3586 = vmatpush1.bf16.msra.mxu1 %v4529_v28  ;;  %v4583_v27 = vcombine.low %v632_v14, %v636_v15  ;;  %v4585_v28 = vcombine.low %v633_v16, %v637_v17  ;;  %v178_v15 = vld [vmem:[%s4726_s14 + $0x90] sm:$0xff]  ;;  %v179_v17 = vld [vmem:[%s4726_s14 + $0x98] sm:$0xff] }
  0xe6   : > { %3423 = vmatprep.subr.bf16.mxu0 %v4536_v29  ;;  %3587 = vmatprep.subr.bf16.mxu1 %v4538_v30  ;;  %v4592_v29 = vcombine.high %v640_v23, %v644_v24  ;;  %v4594_v30 = vcombine.high %v641_v25, %v645_v59  ;;  %v182_v16 = vld [vmem:[%s4726_s14 + $0xb0] sm:$0xff] }
  0xe9   : > { %3424 = vmatpush1.bf16.msra.mxu0 %v4535_v36  ;;  %3588 = vmatpush1.bf16.msra.mxu1 %v4537_v37  ;;  %v4591_v36 = vcombine.low %v640_v23, %v644_v24  ;;  %v4593_v37 = vcombine.low %v641_v25, %v645_v59  ;;  %v186_v24 = vld [vmem:[%s4726_s14 + $0xd0] sm:$0xff]  ;;  %v187_v59 = vld [vmem:[%s4726_s14 + $0xd8] sm:$0xff] }
  0xea   : > { %3425 = vmatprep.subr.bf16.mxu0 %v4544_v38  ;;  %3589 = vmatprep.subr.bf16.mxu1 %v4546_v39  ;;  %v4600_v38 = vcombine.high %v648_v63, %v652_v32  ;;  %v4602_v39 = vcombine.high %v649_v33, %v653_v34  ;;  %v190_v25 = vld [vmem:[%s4726_s14 + $0xf0] sm:$0xff] }
  0xed   : > { %3426 = vmatpush1.bf16.msra.mxu0 %v4543_v45  ;;  %3590 = vmatpush1.bf16.msra.mxu1 %v4545_v46  ;;  %v4599_v45 = vcombine.low %v648_v63, %v652_v32  ;;  %v4601_v46 = vcombine.low %v649_v33, %v653_v34  ;;  %v194_v32 = vld [vmem:[%s4726_s14 + $0x110] sm:$0xff]  ;;  %v195_v34 = vld [vmem:[%s4726_s14 + $0x118] sm:$0xff] }
  0xee   : > { %3427 = vmatprep.subr.bf16.mxu0 %v4552_v47  ;;  %3591 = vmatprep.subr.bf16.mxu1 %v4554_v48  ;;  %v4608_v47 = vcombine.high %v656_v40, %v660_v41  ;;  %v4610_v48 = vcombine.high %v657_v42, %v661_v43  ;;  %v198_v33 = vld [vmem:[%s4726_s14 + $0x130] sm:$0xff] }
  0xf1   : > { %3428 = vmatpush1.bf16.msra.mxu0 %v4551_v55  ;;  %3592 = vmatpush1.bf16.msra.mxu1 %v4553_v56  ;;  %v4607_v55 = vcombine.low %v656_v40, %v660_v41  ;;  %v4609_v56 = vcombine.low %v657_v42, %v661_v43  ;;  %v202_v40 = vld [vmem:[%s4726_s14 + $0x150] sm:$0xff]  ;;  %v203_v42 = vld [vmem:[%s4726_s14 + $0x158] sm:$0xff] }
  0xf2   : > { %3429 = vmatprep.subr.bf16.mxu0 %v4560_v57  ;;  %3593 = vmatprep.subr.bf16.mxu1 %v4562_v58  ;;  %v4616_v57 = vcombine.high %v664_v49, %v668_v50  ;;  %v4618_v58 = vcombine.high %v665_v52, %v669_v54  ;;  %v206_v41 = vld [vmem:[%s4726_s14 + $0x170] sm:$0xff]  ;;  %v207_v43 = vld [vmem:[%s4726_s14 + $0x178] sm:$0xff] }
  0xf5   : > { %3430 = vmatpush1.bf16.msra.mxu0 %v4559_v1  ;;  %3594 = vmatpush1.bf16.msra.mxu1 %v4561_v2  ;;  %v4615_v1 = vcombine.low %v664_v49, %v668_v50  ;;  %v4617_v2 = vcombine.low %v665_v52, %v669_v54  ;;  %v210_v49 = vld [vmem:[%s4726_s14 + $0x190] sm:$0xff]  ;;  %v211_v52 = vld [vmem:[%s4726_s14 + $0x198] sm:$0xff] }
  0xf6   : > { %3431 = vmatprep.subr.bf16.mxu0 %v4568_v3  ;;  %3595 = vmatprep.subr.bf16.mxu1 %v4570_v4  ;;  %v4116_v3 = vcombine.high %v162_v60, %v166_v61  ;;  %v4118_v4 = vcombine.high %v163_v26, %v167_v0  ;;  %v214_v50 = vld [vmem:[%s4726_s14 + $0x1b0] sm:$0xff]  ;;  %v215_v54 = vld [vmem:[%s4726_s14 + $0x1b8] sm:$0xff] }
  0xf9   : > { %3432 = vmatpush1.bf16.msra.mxu0 %v4567_v10  ;;  %3596 = vmatpush1.bf16.msra.mxu1 %v4569_v11  ;;  %v175_v10 = vld [vmem:[%s4726_s14 + $0x78] sm:$0xff]  ;;  %v4115_v11 = vcombine.low %v162_v60, %v166_v61  ;;  %v218_v60 = vld [vmem:[%s4726_s14 + $0x1d0] sm:$0xff] }
  0xfa   : > { %3433 = vmatprep.subr.bf16.mxu0 %v4576_v12  ;;  %3597 = vmatprep.subr.bf16.mxu1 %v4578_v13  ;;  %v4117_v12 = vcombine.low %v163_v26, %v167_v0  ;;  %v4124_v13 = vcombine.high %v170_v5, %v174_v6  ;;  %v4126_v14 = vcombine.high %v171_v8, %v175_v10  ;;  %v222_v61 = vld [vmem:[%s4726_s14 + $0x1f0] sm:$0xff]  ;;  %v219_v26 = vld [vmem:[%s4726_s14 + $0x1d8] sm:$0xff] }
  0xfb   : > { %v223_v0 = vld [vmem:[%s4726_s14 + $0x1f8] sm:$0xff] }
  0xfd   : > { %3434 = vmatpush1.bf16.msra.mxu0 %v4575_v18  ;;  %3598 = vmatpush1.bf16.msra.mxu1 %v4577_v19  ;;  %v183_v18 = vld [vmem:[%s4726_s14 + $0xb8] sm:$0xff]  ;;  %v4123_v19 = vcombine.low %v170_v5, %v174_v6  ;;  %v226_v5 = vld [vmem:[%s4726_s14 + $0x210] sm:$0xff] }
  0xfe   : > { %3435 = vmatprep.subr.bf16.mxu0 %v4584_v20  ;;  %3599 = vmatprep.subr.bf16.mxu1 %v4586_v21  ;;  %v4125_v20 = vcombine.low %v171_v8, %v175_v10  ;;  %v4132_v21 = vcombine.high %v178_v15, %v182_v16  ;;  %v4134_v23 = vcombine.high %v179_v17, %v183_v18  ;;  %v230_v6 = vld [vmem:[%s4726_s14 + $0x230] sm:$0xff]  ;;  %v227_v8 = vld [vmem:[%s4726_s14 + $0x218] sm:$0xff] }
  0xff   : > { %v231_v10 = vld [vmem:[%s4726_s14 + $0x238] sm:$0xff] }
 0x101   : > { %3436 = vmatpush1.bf16.msra.mxu0 %v4583_v27  ;;  %3600 = vmatpush1.bf16.msra.mxu1 %v4585_v28  ;;  %v191_v27 = vld [vmem:[%s4726_s14 + $0xf8] sm:$0xff]  ;;  %v4131_v28 = vcombine.low %v178_v15, %v182_v16  ;;  %v234_v15 = vld [vmem:[%s4726_s14 + $0x250] sm:$0xff] }
 0x102   : > { %3437 = vmatprep.subr.bf16.mxu0 %v4592_v29  ;;  %3601 = vmatprep.subr.bf16.mxu1 %v4594_v30  ;;  %v4133_v29 = vcombine.low %v179_v17, %v183_v18  ;;  %v4140_v30 = vcombine.high %v186_v24, %v190_v25  ;;  %v4142_v63 = vcombine.high %v187_v59, %v191_v27  ;;  %v238_v16 = vld [vmem:[%s4726_s14 + $0x270] sm:$0xff]  ;;  %v235_v17 = vld [vmem:[%s4726_s14 + $0x258] sm:$0xff] }
 0x103   : > { %v239_v18 = vld [vmem:[%s4726_s14 + $0x278] sm:$0xff] }
 0x105   : > { %3438 = vmatpush1.bf16.msra.mxu0 %v4591_v36  ;;  %3602 = vmatpush1.bf16.msra.mxu1 %v4593_v37  ;;  %v199_v36 = vld [vmem:[%s4726_s14 + $0x138] sm:$0xff]  ;;  %v4139_v37 = vcombine.low %v186_v24, %v190_v25  ;;  %v242_v24 = vld [vmem:[%s4726_s14 + $0x290] sm:$0xff] }
 0x106   : > { %3439 = vmatprep.subr.bf16.mxu0 %v4600_v38  ;;  %3603 = vmatprep.subr.bf16.mxu1 %v4602_v39  ;;  %v4148_v38 = vcombine.high %v194_v32, %v198_v33  ;;  %v4150_v39 = vcombine.high %v195_v34, %v199_v36  ;;  %v246_v25 = vld [vmem:[%s4726_s14 + $0x2b0] sm:$0xff] }
 0x109   : > { %3440 = vmatpush1.bf16.msra.mxu0 %v4599_v45  ;;  %3604 = vmatpush1.bf16.msra.mxu1 %v4601_v46  ;;  %v4147_v45 = vcombine.low %v194_v32, %v198_v33  ;;  %v4149_v46 = vcombine.low %v195_v34, %v199_v36  ;;  %v250_v32 = vld [vmem:[%s4726_s14 + $0x2d0] sm:$0xff]  ;;  %v251_v34 = vld [vmem:[%s4726_s14 + $0x2d8] sm:$0xff] }
 0x10a   : > { %3441 = vmatprep.subr.bf16.mxu0 %v4608_v47  ;;  %3605 = vmatprep.subr.bf16.mxu1 %v4610_v48  ;;  %v4156_v47 = vcombine.high %v202_v40, %v206_v41  ;;  %v4158_v48 = vcombine.high %v203_v42, %v207_v43  ;;  %v254_v33 = vld [vmem:[%s4726_s14 + $0x2f0] sm:$0xff]  ;;  %v255_v36 = vld [vmem:[%s4726_s14 + $0x2f8] sm:$0xff] }
 0x10d   : > { %3442 = vmatpush1.bf16.msra.mxu0 %v4607_v55  ;;  %3606 = vmatpush1.bf16.msra.mxu1 %v4609_v56  ;;  %v4155_v55 = vcombine.low %v202_v40, %v206_v41  ;;  %v4157_v56 = vcombine.low %v203_v42, %v207_v43  ;;  %v258_v40 = vld [vmem:[%s4726_s14 + $0x310] sm:$0xff]  ;;  %v259_v42 = vld [vmem:[%s4726_s14 + $0x318] sm:$0xff] }
 0x10e   : > { %3443 = vmatprep.subr.bf16.mxu0 %v4616_v57  ;;  %3607 = vmatprep.subr.bf16.mxu1 %v4618_v58  ;;  %v4164_v57 = vcombine.high %v210_v49, %v214_v50  ;;  %v4166_v58 = vcombine.high %v211_v52, %v215_v54  ;;  %v262_v41 = vld [vmem:[%s4726_s14 + $0x330] sm:$0xff]  ;;  %v263_v43 = vld [vmem:[%s4726_s14 + $0x338] sm:$0xff] }
 0x111   : > { %3444 = vmatpush1.bf16.msra.mxu0 %v4615_v1  ;;  %3608 = vmatpush1.bf16.msra.mxu1 %v4617_v2  ;;  %v4163_v1 = vcombine.low %v210_v49, %v214_v50  ;;  %v4165_v2 = vcombine.low %v211_v52, %v215_v54  ;;  %v266_v49 = vld [vmem:[%s4726_s14 + $0x350] sm:$0xff]  ;;  %v267_v52 = vld [vmem:[%s4726_s14 + $0x358] sm:$0xff] }
 0x112   : > { %3618 = vmatprep.subr.bf16.mxu0 %v4116_v3  ;;  %3782 = vmatprep.subr.bf16.mxu1 %v4118_v4  ;;  %v4172_v3 = vcombine.high %v218_v60, %v222_v61  ;;  %v4174_v4 = vcombine.high %v219_v26, %v223_v0  ;;  %v270_v50 = vld [vmem:[%s4726_s14 + $0x370] sm:$0xff]  ;;  %v271_v54 = vld [vmem:[%s4726_s14 + $0x378] sm:$0xff] }
 0x114   : > { %3446 = vmatmul.mubr.bf16.vlgmr.msra.gmra.mrb[0].mxu0 %v5055_v7  ;;  %3610 = vmatmul.mubr.bf16.vlgmr.msra.gmra.mrb[0].mxu1 %v5055_v7 }
 0x115   : > { %3619 = vmatpush1.bf16.msra.mxu0 %v4115_v11  ;;  %3783 = vmatpush1.bf16.msra.mxu1 %v4117_v12  ;;  %v4171_v11 = vcombine.low %v218_v60, %v222_v61  ;;  %v4173_v12 = vcombine.low %v219_v26, %v223_v0  ;;  %v274_v60 = vld [vmem:[%s4726_s14 + $0x390] sm:$0xff]  ;;  %v275_v26 = vld [vmem:[%s4726_s14 + $0x398] sm:$0xff] }
 0x116   : > { %3620 = vmatprep.subr.bf16.mxu0 %v4124_v13  ;;  %3784 = vmatprep.subr.bf16.mxu1 %v4126_v14  ;;  %v4180_v13 = vcombine.high %v226_v5, %v230_v6  ;;  %v4182_v14 = vcombine.high %v227_v8, %v231_v10  ;;  %v278_v61 = vld [vmem:[%s4726_s14 + $0x3b0] sm:$0xff]  ;;  %v279_v0 = vld [vmem:[%s4726_s14 + $0x3b8] sm:$0xff] }
 0x117   : > { %3650 = vmatprep.mubr.bf16.mxu0 %v4779_v9  ;;  %3814 = vmatprep.mubr.bf16.mxu1 %v4779_v9  ;;  %v4141_v9 = vcombine.low %v187_v59, %v191_v27  ;;  %v243_v59 = vld [vmem:[%s4726_s14 + $0x298] sm:$0xff] }
 0x118   : > { %v247_v27 = vld [vmem:[%s4726_s14 + $0x2b8] sm:$0xff] }
 0x119   : > { %3621 = vmatpush1.bf16.msra.mxu0 %v4123_v19  ;;  %3785 = vmatpush1.bf16.msra.mxu1 %v4125_v20  ;;  %v4179_v19 = vcombine.low %v226_v5, %v230_v6  ;;  %v4181_v20 = vcombine.low %v227_v8, %v231_v10  ;;  %v282_v5 = vld [vmem:[%s4726_s14 + $0x3d0] sm:$0xff]  ;;  %v283_v8 = vld [vmem:[%s4726_s14 + $0x3d8] sm:$0xff] }
 0x11a   : > { %3622 = vmatprep.subr.bf16.mxu0 %v4132_v21  ;;  %3786 = vmatprep.subr.bf16.mxu1 %v4134_v23  ;;  %v4188_v21 = vcombine.high %v234_v15, %v238_v16  ;;  %v4190_v23 = vcombine.high %v235_v17, %v239_v18  ;;  %v286_v6 = vld [vmem:[%s4726_s14 + $0x3f0] sm:$0xff]  ;;  %v287_v10 = vld [vmem:[%s4726_s14 + $0x3f8] sm:$0xff] }
 0x11d   : > { %3623 = vmatpush1.bf16.msra.mxu0 %v4131_v28  ;;  %3787 = vmatpush1.bf16.msra.mxu1 %v4133_v29  ;;  %v4187_v28 = vcombine.low %v234_v15, %v238_v16  ;;  %v4189_v29 = vcombine.low %v235_v17, %v239_v18  ;;  %v290_v15 = vld [vmem:[%s4726_s14 + $0x410] sm:$0xff]  ;;  %v291_v17 = vld [vmem:[%s4726_s14 + $0x418] sm:$0xff] }
 0x11e   : > { %3624 = vmatprep.subr.bf16.mxu0 %v4140_v30  ;;  %3788 = vmatprep.subr.bf16.mxu1 %v4142_v63  ;;  %v4196_v30 = vcombine.high %v242_v24, %v246_v25  ;;  %v4198_v63 = vcombine.high %v243_v59, %v247_v27  ;;  %v294_v16 = vld [vmem:[%s4726_s14 + $0x430] sm:$0xff]  ;;  %v295_v18 = vld [vmem:[%s4726_s14 + $0x438] sm:$0xff] }
 0x121   : > { %3625 = vmatpush1.bf16.msra.mxu0 %v4139_v37  ;;  %3789 = vmatpush1.bf16.msra.mxu1 %v4141_v9  ;;  %v4195_v37 = vcombine.low %v242_v24, %v246_v25  ;;  %v4197_v9 = vcombine.low %v243_v59, %v247_v27  ;;  %v298_v24 = vld [vmem:[%s4726_s14 + $0x450] sm:$0xff]  ;;  %v299_v59 = vld [vmem:[%s4726_s14 + $0x458] sm:$0xff] }
 0x122   : > { %3626 = vmatprep.subr.bf16.mxu0 %v4148_v38  ;;  %3790 = vmatprep.subr.bf16.mxu1 %v4150_v39  ;;  %v4204_v38 = vcombine.high %v250_v32, %v254_v33  ;;  %v4206_v39 = vcombine.high %v251_v34, %v255_v36  ;;  %v302_v25 = vld [vmem:[%s4726_s14 + $0x470] sm:$0xff]  ;;  %v303_v27 = vld [vmem:[%s4726_s14 + $0x478] sm:$0xff] }
 0x125   : > { %3627 = vmatpush1.bf16.msra.mxu0 %v4147_v45  ;;  %3791 = vmatpush1.bf16.msra.mxu1 %v4149_v46  ;;  %v4203_v45 = vcombine.low %v250_v32, %v254_v33  ;;  %v4205_v46 = vcombine.low %v251_v34, %v255_v36  ;;  %v306_v32 = vld [vmem:[%s4726_s14 + $0x490] sm:$0xff]  ;;  %v307_v34 = vld [vmem:[%s4726_s14 + $0x498] sm:$0xff] }
 0x126   : > { %3628 = vmatprep.subr.bf16.mxu0 %v4156_v47  ;;  %3792 = vmatprep.subr.bf16.mxu1 %v4158_v48  ;;  %v4212_v47 = vcombine.high %v258_v40, %v262_v41  ;;  %v4214_v48 = vcombine.high %v259_v42, %v263_v43  ;;  %v310_v33 = vld [vmem:[%s4726_s14 + $0x4b0] sm:$0xff]  ;;  %v311_v36 = vld [vmem:[%s4726_s14 + $0x4b8] sm:$0xff] }
 0x129   : > { %3629 = vmatpush1.bf16.msra.mxu0 %v4155_v55  ;;  %3793 = vmatpush1.bf16.msra.mxu1 %v4157_v56  ;;  %v4211_v55 = vcombine.low %v258_v40, %v262_v41  ;;  %v4213_v56 = vcombine.low %v259_v42, %v263_v43  ;;  %v314_v40 = vld [vmem:[%s4726_s14 + $0x4d0] sm:$0xff]  ;;  %v315_v42 = vld [vmem:[%s4726_s14 + $0x4d8] sm:$0xff] }
 0x12a   : > { %3630 = vmatprep.subr.bf16.mxu0 %v4164_v57  ;;  %3794 = vmatprep.subr.bf16.mxu1 %v4166_v58  ;;  %v4220_v57 = vcombine.high %v266_v49, %v270_v50  ;;  %v4222_v58 = vcombine.high %v267_v52, %v271_v54  ;;  %v318_v41 = vld [vmem:[%s4726_s14 + $0x4f0] sm:$0xff]  ;;  %v319_v43 = vld [vmem:[%s4726_s14 + $0x4f8] sm:$0xff] }
 0x12d   : > { %3631 = vmatpush1.bf16.msra.mxu0 %v4163_v1  ;;  %3795 = vmatpush1.bf16.msra.mxu1 %v4165_v2  ;;  %v4219_v1 = vcombine.low %v266_v49, %v270_v50  ;;  %v4221_v2 = vcombine.low %v267_v52, %v271_v54  ;;  %v326_v49 = vld [vmem:[%s4726_s14 + $0x530] sm:$0xff]  ;;  %v323_v50 = vld [vmem:[%s4726_s14 + $0x518] sm:$0xff]  ;;  %v4267_v54 = vcombine.low %v314_v40, %v318_v41 }
 0x12e   : > { %3632 = vmatprep.subr.bf16.mxu0 %v4172_v3  ;;  %3796 = vmatprep.subr.bf16.mxu1 %v4174_v4  ;;  %v4228_v3 = vcombine.high %v274_v60, %v278_v61  ;;  %v4230_v4 = vcombine.high %v275_v26, %v279_v0  ;;  %v327_v52 = vld [vmem:[%s4726_s14 + $0x538] sm:$0xff] }
 0x131   : > { %3633 = vmatpush1.bf16.msra.mxu0 %v4171_v11  ;;  %3797 = vmatpush1.bf16.msra.mxu1 %v4173_v12  ;;  %v4227_v11 = vcombine.low %v274_v60, %v278_v61  ;;  %v4229_v12 = vcombine.low %v275_v26, %v279_v0  ;;  %v331_v60 = vld [vmem:[%s4726_s14 + $0x558] sm:$0xff]  ;;  %v4277_v0 = vcombine.low %v323_v50, %v327_v52 }
 0x132   : > { %3634 = vmatprep.subr.bf16.mxu0 %v4180_v13  ;;  %3798 = vmatprep.subr.bf16.mxu1 %v4182_v14  ;;  %v4236_v13 = vcombine.high %v282_v5, %v286_v6  ;;  %v4238_v14 = vcombine.high %v283_v8, %v287_v10  ;;  %v335_v61 = vld [vmem:[%s4726_s14 + $0x578] sm:$0xff] }
 0x135   : > { %3635 = vmatpush1.bf16.msra.mxu0 %v4179_v19  ;;  %3799 = vmatpush1.bf16.msra.mxu1 %v4181_v20  ;;  %v4235_v19 = vcombine.low %v282_v5, %v286_v6  ;;  %v4237_v20 = vcombine.low %v283_v8, %v287_v10  ;;  %v339_v5 = vld [vmem:[%s4726_s14 + $0x598] sm:$0xff]  ;;  %v4285_v10 = vcombine.low %v331_v60, %v335_v61 }
 0x136   : > { %3636 = vmatprep.subr.bf16.mxu0 %v4188_v21  ;;  %3800 = vmatprep.subr.bf16.mxu1 %v4190_v23  ;;  %v4244_v21 = vcombine.high %v290_v15, %v294_v16  ;;  %v4246_v23 = vcombine.high %v291_v17, %v295_v18  ;;  %v343_v6 = vld [vmem:[%s4726_s14 + $0x5b8] sm:$0xff] }
 0x139   : > { %3637 = vmatpush1.bf16.msra.mxu0 %v4187_v28  ;;  %3801 = vmatpush1.bf16.msra.mxu1 %v4189_v29  ;;  %v4243_v28 = vcombine.low %v290_v15, %v294_v16  ;;  %v4245_v29 = vcombine.low %v291_v17, %v295_v18  ;;  %v347_v15 = vld [vmem:[%s4726_s14 + $0x5d8] sm:$0xff]  ;;  %v4293_v18 = vcombine.low %v339_v5, %v343_v6 }
 0x13a   : > { %3638 = vmatprep.subr.bf16.mxu0 %v4196_v30  ;;  %3802 = vmatprep.subr.bf16.mxu1 %v4198_v63  ;;  %v4252_v30 = vcombine.high %v298_v24, %v302_v25  ;;  %v4254_v63 = vcombine.high %v299_v59, %v303_v27  ;;  %v351_v16 = vld [vmem:[%s4726_s14 + $0x5f8] sm:$0xff] }
 0x13d   : > { %3639 = vmatpush1.bf16.msra.mxu0 %v4195_v37  ;;  %3803 = vmatpush1.bf16.msra.mxu1 %v4197_v9  ;;  %v4251_v37 = vcombine.low %v298_v24, %v302_v25  ;;  %v4253_v9 = vcombine.low %v299_v59, %v303_v27  ;;  %v355_v24 = vld [vmem:[%s4726_s14 + $0x618] sm:$0xff]  ;;  %v4301_v27 = vcombine.low %v347_v15, %v351_v16 }
 0x13e   : > { %3640 = vmatprep.subr.bf16.mxu0 %v4204_v38  ;;  %3804 = vmatprep.subr.bf16.mxu1 %v4206_v39  ;;  %v4260_v38 = vcombine.high %v306_v32, %v310_v33  ;;  %v4262_v39 = vcombine.high %v307_v34, %v311_v36  ;;  %v359_v25 = vld [vmem:[%s4726_s14 + $0x638] sm:$0xff] }
 0x141   : > { %3641 = vmatpush1.bf16.msra.mxu0 %v4203_v45  ;;  %3805 = vmatpush1.bf16.msra.mxu1 %v4205_v46  ;;  %v4261_v45 = vcombine.low %v307_v34, %v311_v36  ;;  %v4268_v46 = vcombine.high %v314_v40, %v318_v41  ;;  %v4309_v36 = vcombine.low %v355_v24, %v359_v25  ;;  %v371_v40 = vld [vmem:[%s4726_s14 + $0x698] sm:$0xff] }
 0x142   : > { %3642 = vmatprep.subr.bf16.mxu0 %v4212_v47  ;;  %3806 = vmatprep.subr.bf16.mxu1 %v4214_v48  ;;  %v4270_v47 = vcombine.high %v315_v42, %v319_v43  ;;  %v322_v48 = vld [vmem:[%s4726_s14 + $0x510] sm:$0xff]  ;;  %v375_v41 = vld [vmem:[%s4726_s14 + $0x6b8] sm:$0xff] }
 0x143   : > { %v4275_v26 = vcombine.low %v322_v48, %v326_v49 }
 0x145   : > { %3643 = vmatpush1.bf16.msra.mxu0 %v4211_v55  ;;  %3807 = vmatpush1.bf16.msra.mxu1 %v4213_v56  ;;  %v4276_v55 = vcombine.high %v322_v48, %v326_v49  ;;  %v4278_v56 = vcombine.high %v323_v50, %v327_v52  ;;  %v379_v48 = vld [vmem:[%s4726_s14 + $0x6d8] sm:$0xff]  ;;  %v4325_v52 = vcombine.low %v371_v40, %v375_v41 }
 0x146   : > { %3644 = vmatprep.subr.bf16.mxu0 %v4220_v57  ;;  %3808 = vmatprep.subr.bf16.mxu1 %v4222_v58  ;;  %v330_v57 = vld [vmem:[%s4726_s14 + $0x550] sm:$0xff]  ;;  %v383_v49 = vld [vmem:[%s4726_s14 + $0x6f8] sm:$0xff] }
 0x147   : > { %v334_v58 = vld [vmem:[%s4726_s14 + $0x570] sm:$0xff] }
 0x148   : > { %v4283_v8 = vcombine.low %v330_v57, %v334_v58 }
 0x149   : > { %3645 = vmatpush1.bf16.msra.mxu0 %v4219_v1  ;;  %3809 = vmatpush1.bf16.msra.mxu1 %v4221_v2  ;;  %v4284_v1 = vcombine.high %v330_v57, %v334_v58  ;;  %v4286_v2 = vcombine.high %v331_v60, %v335_v61  ;;  %v387_v57 = vld [vmem:[%s4726_s14 + $0x718] sm:$0xff]  ;;  %v4333_v61 = vcombine.low %v379_v48, %v383_v49 }
 0x14a   : > { %3646 = vmatprep.subr.bf16.mxu0 %v4228_v3  ;;  %3810 = vmatprep.subr.bf16.mxu1 %v4230_v4  ;;  %v338_v3 = vld [vmem:[%s4726_s14 + $0x590] sm:$0xff]  ;;  %v391_v58 = vld [vmem:[%s4726_s14 + $0x738] sm:$0xff] }
 0x14b   : > { %v342_v4 = vld [vmem:[%s4726_s14 + $0x5b0] sm:$0xff] }
 0x14c   : > { %v4291_v17 = vcombine.low %v338_v3, %v342_v4 }
 0x14d   : > { %3647 = vmatpush1.bf16.msra.mxu0 %v4227_v11  ;;  %3811 = vmatpush1.bf16.msra.mxu1 %v4229_v12  ;;  %v4292_v11 = vcombine.high %v338_v3, %v342_v4  ;;  %v4294_v12 = vcombine.high %v339_v5, %v343_v6  ;;  %v395_v3 = vld [vmem:[%s4726_s14 + $0x758] sm:$0xff]  ;;  %v4341_v6 = vcombine.low %v387_v57, %v391_v58 }
 0x14e   : > { %3648 = vmatprep.subr.bf16.mxu0 %v4236_v13  ;;  %3812 = vmatprep.subr.bf16.mxu1 %v4238_v14  ;;  %v346_v13 = vld [vmem:[%s4726_s14 + $0x5d0] sm:$0xff]  ;;  %v399_v4 = vld [vmem:[%s4726_s14 + $0x778] sm:$0xff] }
 0x14f   : > { %v350_v14 = vld [vmem:[%s4726_s14 + $0x5f0] sm:$0xff] }
 0x150   : > { %v4299_v59 = vcombine.low %v346_v13, %v350_v14 }
 0x151   : > { %3649 = vmatpush1.bf16.msra.mxu0 %v4235_v19  ;;  %3813 = vmatpush1.bf16.msra.mxu1 %v4237_v20  ;;  %v4300_v19 = vcombine.high %v346_v13, %v350_v14  ;;  %v4302_v20 = vcombine.high %v347_v15, %v351_v16  ;;  %v403_v13 = vld [vmem:[%s4726_s14 + $0x798] sm:$0xff]  ;;  %v4349_v16 = vcombine.low %v395_v3, %v399_v4 }
 0x152   : > { %3659 = vmatprep.subr.bf16.mxu0 %v4244_v21  ;;  %3823 = vmatprep.subr.bf16.mxu1 %v4246_v23  ;;  %v354_v21 = vld [vmem:[%s4726_s14 + $0x610] sm:$0xff]  ;;  %v407_v14 = vld [vmem:[%s4726_s14 + $0x7b8] sm:$0xff] }
 0x153   : > { %v358_v23 = vld [vmem:[%s4726_s14 + $0x630] sm:$0xff] }
 0x154   : > { %3651 = vmatmul.mubr.bf16.vlgmr.msra.gmra.mrb[4].mxu0 %v4821_v22  ;;  %3815 = vmatmul.mubr.bf16.vlgmr.msra.gmra.mrb[4].mxu1 %v4821_v22  ;;  %v4259_v22 = vcombine.low %v306_v32, %v310_v33  ;;  %v363_v32 = vld [vmem:[%s4726_s14 + $0x658] sm:$0xff]  ;;  %v4307_v34 = vcombine.low %v354_v21, %v358_v23 }
 0x155   : > { %3660 = vmatpush1.bf16.msra.mxu0 %v4243_v28  ;;  %3824 = vmatpush1.bf16.msra.mxu1 %v4245_v29  ;;  %v4308_v28 = vcombine.high %v354_v21, %v358_v23  ;;  %v4310_v29 = vcombine.high %v355_v24, %v359_v25  ;;  %v367_v33 = vld [vmem:[%s4726_s14 + $0x678] sm:$0xff]  ;;  %v4357_v25 = vcombine.low %v403_v13, %v407_v14 }
 0x156   : > { %3661 = vmatprep.subr.bf16.mxu0 %v4252_v30  ;;  %3825 = vmatprep.subr.bf16.mxu1 %v4254_v63  ;;  %v362_v30 = vld [vmem:[%s4726_s14 + $0x650] sm:$0xff]  ;;  %v411_v21 = vld [vmem:[%s4726_s14 + $0x7d8] sm:$0xff] }
 0x157   : > { %3691 = vmatprep.mubr.bf16.mxu0 %v4829_v31  ;;  %3855 = vmatprep.mubr.bf16.mxu1 %v4829_v31  ;;  %v4269_v31 = vcombine.low %v315_v42, %v319_v43  ;;  %v366_v63 = vld [vmem:[%s4726_s14 + $0x670] sm:$0xff]  ;;  %v4317_v43 = vcombine.low %v363_v32, %v367_v33  ;;  %v415_v23 = vld [vmem:[%s4726_s14 + $0x7f8] sm:$0xff] }
 0x158   : > { %v4315_v42 = vcombine.low %v362_v30, %v366_v63 }
 0x159   : > { %3662 = vmatpush1.bf16.msra.mxu0 %v4251_v37  ;;  %3826 = vmatpush1.bf16.msra.mxu1 %v4253_v9  ;;  %v4316_v37 = vcombine.high %v362_v30, %v366_v63  ;;  %v4318_v9 = vcombine.high %v363_v32, %v367_v33  ;;  %v419_v30 = vld [vmem:[%s4726_s14 + $0x818] sm:$0xff]  ;;  %v4365_v33 = vcombine.low %v411_v21, %v415_v23 }
 0x15a   : > { %3663 = vmatprep.subr.bf16.mxu0 %v4260_v38  ;;  %3827 = vmatprep.subr.bf16.mxu1 %v4262_v39  ;;  %v370_v38 = vld [vmem:[%s4726_s14 + $0x690] sm:$0xff]  ;;  %v423_v63 = vld [vmem:[%s4726_s14 + $0x838] sm:$0xff] }
 0x15b   : > { %v374_v39 = vld [vmem:[%s4726_s14 + $0x6b0] sm:$0xff] }
 0x15c   : > { %v4323_v50 = vcombine.low %v370_v38, %v374_v39 }
 0x15d   : > { %3664 = vmatpush1.bf16.msra.mxu0 %v4259_v22  ;;  %3828 = vmatpush1.bf16.msra.mxu1 %v4261_v45  ;;  %v4324_v22 = vcombine.high %v370_v38, %v374_v39  ;;  %v4326_v45 = vcombine.high %v371_v40, %v375_v41  ;;  %v427_v38 = vld [vmem:[%s4726_s14 + $0x858] sm:$0xff]  ;;  %v4373_v41 = vcombine.low %v419_v30, %v423_v63 }
 0x15e   : > { %3665 = vmatprep.subr.bf16.mxu0 %v4268_v46  ;;  %3829 = vmatprep.subr.bf16.mxu1 %v4270_v47  ;;  %v378_v46 = vld [vmem:[%s4726_s14 + $0x6d0] sm:$0xff]  ;;  %v431_v39 = vld [vmem:[%s4726_s14 + $0x878] sm:$0xff] }
 0x15f   : > { %v382_v47 = vld [vmem:[%s4726_s14 + $0x6f0] sm:$0xff] }
 0x160   : > { %v4331_v60 = vcombine.low %v378_v46, %v382_v47 }
 0x161   : > { %3666 = vmatpush1.bf16.msra.mxu0 %v4267_v54  ;;  %3830 = vmatpush1.bf16.msra.mxu1 %v4269_v31  ;;  %v4332_v54 = vcombine.high %v378_v46, %v382_v47  ;;  %v4334_v31 = vcombine.high %v379_v48, %v383_v49  ;;  %v435_v46 = vld [vmem:[%s4726_s14 + $0x898] sm:$0xff]  ;;  %v4381_v49 = vcombine.low %v427_v38, %v431_v39 }
 0x162   : > { %3667 = vmatprep.subr.bf16.mxu0 %v4276_v55  ;;  %3831 = vmatprep.subr.bf16.mxu1 %v4278_v56  ;;  %v386_v55 = vld [vmem:[%s4726_s14 + $0x710] sm:$0xff]  ;;  %v439_v47 = vld [vmem:[%s4726_s14 + $0x8b8] sm:$0xff] }
 0x163   : > { %v390_v56 = vld [vmem:[%s4726_s14 + $0x730] sm:$0xff] }
 0x164   : > { %v4339_v5 = vcombine.low %v386_v55, %v390_v56 }
 0x165   : > { %3668 = vmatpush1.bf16.msra.mxu0 %v4275_v26  ;;  %3832 = vmatpush1.bf16.msra.mxu1 %v4277_v0  ;;  %v4340_v26 = vcombine.high %v386_v55, %v390_v56  ;;  %v4342_v0 = vcombine.high %v387_v57, %v391_v58  ;;  %v443_v55 = vld [vmem:[%s4726_s14 + $0x8d8] sm:$0xff]  ;;  %v4389_v57 = vcombine.low %v435_v46, %v439_v47 }
 0x166   : > { %3669 = vmatprep.subr.bf16.mxu0 %v4284_v1  ;;  %3833 = vmatprep.subr.bf16.mxu1 %v4286_v2  ;;  %v394_v1 = vld [vmem:[%s4726_s14 + $0x750] sm:$0xff]  ;;  %v447_v56 = vld [vmem:[%s4726_s14 + $0x8f8] sm:$0xff] }
 0x167   : > { %v398_v2 = vld [vmem:[%s4726_s14 + $0x770] sm:$0xff] }
 0x168   : > { %v4347_v15 = vcombine.low %v394_v1, %v398_v2 }
 0x169   : > { %3670 = vmatpush1.bf16.msra.mxu0 %v4283_v8  ;;  %3834 = vmatpush1.bf16.msra.mxu1 %v4285_v10  ;;  %v4348_v8 = vcombine.high %v394_v1, %v398_v2  ;;  %v4350_v10 = vcombine.high %v395_v3, %v399_v4  ;;  %v455_v1 = vld [vmem:[%s4726_s14 + $0x938] sm:$0xff] }
 0x16a   : > { %3671 = vmatprep.subr.bf16.mxu0 %v4292_v11  ;;  %3835 = vmatprep.subr.bf16.mxu1 %v4294_v12  ;;  %v402_v11 = vld [vmem:[%s4726_s14 + $0x790] sm:$0xff] }
 0x16b   : > { %v406_v12 = vld [vmem:[%s4726_s14 + $0x7b0] sm:$0xff] }
 0x16c   : > { %v4355_v24 = vcombine.low %v402_v11, %v406_v12 }
 0x16d   : > { %3672 = vmatpush1.bf16.msra.mxu0 %v4291_v17  ;;  %3836 = vmatpush1.bf16.msra.mxu1 %v4293_v18  ;;  %v4356_v17 = vcombine.high %v402_v11, %v406_v12  ;;  %v4358_v18 = vcombine.high %v403_v13, %v407_v14 }
 0x16e   : > { %3673 = vmatprep.subr.bf16.mxu0 %v4300_v19  ;;  %3837 = vmatprep.subr.bf16.mxu1 %v4302_v20  ;;  %v410_v19 = vld [vmem:[%s4726_s14 + $0x7d0] sm:$0xff] }
 0x16f   : > { %v414_v20 = vld [vmem:[%s4726_s14 + $0x7f0] sm:$0xff] }
 0x170   : > { %v4363_v32 = vcombine.low %v410_v19, %v414_v20 }
 0x171   : > { %3674 = vmatpush1.bf16.msra.mxu0 %v4299_v59  ;;  %3838 = vmatpush1.bf16.msra.mxu1 %v4301_v27  ;;  %v4364_v59 = vcombine.high %v410_v19, %v414_v20  ;;  %v4366_v27 = vcombine.high %v411_v21, %v415_v23 }
 0x172   : > { %3675 = vmatprep.subr.bf16.mxu0 %v4308_v28  ;;  %3839 = vmatprep.subr.bf16.mxu1 %v4310_v29  ;;  %v418_v28 = vld [vmem:[%s4726_s14 + $0x810] sm:$0xff] }
 0x173   : > { %v422_v29 = vld [vmem:[%s4726_s14 + $0x830] sm:$0xff] }
 0x174   : > { %v4371_v40 = vcombine.low %v418_v28, %v422_v29 }
 0x175   : > { %3676 = vmatpush1.bf16.msra.mxu0 %v4307_v34  ;;  %3840 = vmatpush1.bf16.msra.mxu1 %v4309_v36  ;;  %v4372_v34 = vcombine.high %v418_v28, %v422_v29  ;;  %v4374_v36 = vcombine.high %v419_v30, %v423_v63 }
 0x176   : > { %3677 = vmatprep.subr.bf16.mxu0 %v4316_v37  ;;  %3841 = vmatprep.subr.bf16.mxu1 %v4318_v9  ;;  %v426_v37 = vld [vmem:[%s4726_s14 + $0x850] sm:$0xff] }
 0x177   : > { %v430_v9 = vld [vmem:[%s4726_s14 + $0x870] sm:$0xff] }
 0x178   : > { %v4379_v48 = vcombine.low %v426_v37, %v430_v9 }
 0x179   : > { %3678 = vmatpush1.bf16.msra.mxu0 %v4315_v42  ;;  %3842 = vmatpush1.bf16.msra.mxu1 %v4317_v43  ;;  %v4380_v42 = vcombine.high %v426_v37, %v430_v9  ;;  %v4382_v43 = vcombine.high %v427_v38, %v431_v39 }
 0x17a   : > { %3679 = vmatprep.subr.bf16.mxu0 %v4324_v22  ;;  %3843 = vmatprep.subr.bf16.mxu1 %v4326_v45  ;;  %v434_v22 = vld [vmem:[%s4726_s14 + $0x890] sm:$0xff] }
 0x17b   : > { %v438_v45 = vld [vmem:[%s4726_s14 + $0x8b0] sm:$0xff] }
 0x17d   : > { %3680 = vmatpush1.bf16.msra.mxu0 %v4323_v50  ;;  %3844 = vmatpush1.bf16.msra.mxu1 %v4325_v52  ;;  %v4388_v50 = vcombine.high %v434_v22, %v438_v45  ;;  %v4390_v52 = vcombine.high %v435_v46, %v439_v47 }
 0x17e   : > { %3681 = vmatprep.subr.bf16.mxu0 %v4332_v54  ;;  %3845 = vmatprep.subr.bf16.mxu1 %v4334_v31  ;;  %v442_v54 = vld [vmem:[%s4726_s14 + $0x8d0] sm:$0xff] }
 0x17f   : > { %v446_v31 = vld [vmem:[%s4726_s14 + $0x8f0] sm:$0xff] }
 0x180   : > { %v4396_v58 = vcombine.high %v442_v54, %v446_v31  ;;  %v4395_v2 = vcombine.low %v442_v54, %v446_v31 }
 0x181   : > { %3682 = vmatpush1.bf16.msra.mxu0 %v4331_v60  ;;  %3846 = vmatpush1.bf16.msra.mxu1 %v4333_v61  ;;  %v4398_v60 = vcombine.high %v443_v55, %v447_v56  ;;  %v450_v61 = vld [vmem:[%s4726_s14 + $0x910] sm:$0xff] }
 0x182   : > { %3683 = vmatprep.subr.bf16.mxu0 %v4340_v26  ;;  %3847 = vmatprep.subr.bf16.mxu1 %v4342_v0  ;;  %v454_v26 = vld [vmem:[%s4726_s14 + $0x930] sm:$0xff]  ;;  %v451_v0 = vld [vmem:[%s4726_s14 + $0x918] sm:$0xff] }
 0x183   : > { %v4404_v3 = vcombine.high %v450_v61, %v454_v26  ;;  %v4406_v4 = vcombine.high %v451_v0, %v455_v1  ;;  %v4403_v11 = vcombine.low %v450_v61, %v454_v26  ;;  %v4405_v12 = vcombine.low %v451_v0, %v455_v1 }
 0x185   : > { %3684 = vmatpush1.bf16.msra.mxu0 %v4339_v5  ;;  %3848 = vmatpush1.bf16.msra.mxu1 %v4341_v6  ;;  %v458_v5 = vld [vmem:[%s4726_s14 + $0x950] sm:$0xff] }
 0x186   : > { %3685 = vmatprep.subr.bf16.mxu0 %v4348_v8  ;;  %3849 = vmatprep.subr.bf16.mxu1 %v4350_v10  ;;  %v462_v6 = vld [vmem:[%s4726_s14 + $0x970] sm:$0xff]  ;;  %v459_v8 = vld [vmem:[%s4726_s14 + $0x958] sm:$0xff] }
 0x187   : > { %v463_v10 = vld [vmem:[%s4726_s14 + $0x978] sm:$0xff]  ;;  %v4412_v13 = vcombine.high %v458_v5, %v462_v6  ;;  %v4411_v19 = vcombine.low %v458_v5, %v462_v6 }
 0x188   : > { %v4414_v14 = vcombine.high %v459_v8, %v463_v10  ;;  %v4413_v20 = vcombine.low %v459_v8, %v463_v10 }
 0x189   : > { %3686 = vmatpush1.bf16.msra.mxu0 %v4347_v15  ;;  %3850 = vmatpush1.bf16.msra.mxu1 %v4349_v16  ;;  %v466_v15 = vld [vmem:[%s4726_s14 + $0x990] sm:$0xff] }
 0x18a   : > { %3687 = vmatprep.subr.bf16.mxu0 %v4356_v17  ;;  %3851 = vmatprep.subr.bf16.mxu1 %v4358_v18  ;;  %v470_v16 = vld [vmem:[%s4726_s14 + $0x9b0] sm:$0xff]  ;;  %v467_v17 = vld [vmem:[%s4726_s14 + $0x998] sm:$0xff] }
 0x18b   : > { %v471_v18 = vld [vmem:[%s4726_s14 + $0x9b8] sm:$0xff]  ;;  %v4420_v21 = vcombine.high %v466_v15, %v470_v16  ;;  %v4419_v28 = vcombine.low %v466_v15, %v470_v16 }
 0x18c   : > { %v4422_v23 = vcombine.high %v467_v17, %v471_v18  ;;  %v4421_v29 = vcombine.low %v467_v17, %v471_v18 }
 0x18d   : > { %3688 = vmatpush1.bf16.msra.mxu0 %v4355_v24  ;;  %3852 = vmatpush1.bf16.msra.mxu1 %v4357_v25  ;;  %v474_v24 = vld [vmem:[%s4726_s14 + $0x9d0] sm:$0xff] }
 0x18e   : > { %3689 = vmatprep.subr.bf16.mxu0 %v4364_v59  ;;  %3853 = vmatprep.subr.bf16.mxu1 %v4366_v27  ;;  %v478_v25 = vld [vmem:[%s4726_s14 + $0x9f0] sm:$0xff]  ;;  %v475_v59 = vld [vmem:[%s4726_s14 + $0x9d8] sm:$0xff] }
 0x18f   : > { %v479_v27 = vld [vmem:[%s4726_s14 + $0x9f8] sm:$0xff]  ;;  %v4428_v30 = vcombine.high %v474_v24, %v478_v25  ;;  %v4427_v37 = vcombine.low %v474_v24, %v478_v25 }
 0x190   : > { %v4430_v63 = vcombine.high %v475_v59, %v479_v27  ;;  %v4429_v9 = vcombine.low %v475_v59, %v479_v27 }
 0x191   : > { %3690 = vmatpush1.bf16.msra.mxu0 %v4363_v32  ;;  %3854 = vmatpush1.bf16.msra.mxu1 %v4365_v33  ;;  %v482_v32 = vld [vmem:[%s4726_s14 + $0xa10] sm:$0xff] }
 0x192   : > { %3700 = vmatprep.subr.bf16.mxu0 %v4372_v34  ;;  %3864 = vmatprep.subr.bf16.mxu1 %v4374_v36  ;;  %v486_v33 = vld [vmem:[%s4726_s14 + $0xa30] sm:$0xff]  ;;  %v483_v34 = vld [vmem:[%s4726_s14 + $0xa18] sm:$0xff] }
 0x193   : > { %v487_v36 = vld [vmem:[%s4726_s14 + $0xa38] sm:$0xff]  ;;  %v4436_v38 = vcombine.high %v482_v32, %v486_v33 }
 0x194   : > { %3692 = vmatmul.mubr.bf16.vlgmr.msra.gmra.mrb[4].mxu0 %v4904_v35  ;;  %3856 = vmatmul.mubr.bf16.vlgmr.msra.gmra.mrb[4].mxu1 %v4904_v35  ;;  %v4387_v35 = vcombine.low %v434_v22, %v438_v45  ;;  %v4438_v39 = vcombine.high %v483_v34, %v487_v36  ;;  %v4435_v22 = vcombine.low %v482_v32, %v486_v33 }
 0x195   : > { %3701 = vmatpush1.bf16.msra.mxu0 %v4371_v40  ;;  %3865 = vmatpush1.bf16.msra.mxu1 %v4373_v41  ;;  %v490_v40 = vld [vmem:[%s4726_s14 + $0xa50] sm:$0xff]  ;;  %v4437_v45 = vcombine.low %v483_v34, %v487_v36 }
 0x196   : > { %3702 = vmatprep.subr.bf16.mxu0 %v4380_v42  ;;  %3866 = vmatprep.subr.bf16.mxu1 %v4382_v43  ;;  %v494_v41 = vld [vmem:[%s4726_s14 + $0xa70] sm:$0xff]  ;;  %v491_v42 = vld [vmem:[%s4726_s14 + $0xa58] sm:$0xff] }
 0x197   : > { %3732 = vmatprep.mubr.bf16.mxu0 %v4911_v44  ;;  %3896 = vmatprep.mubr.bf16.mxu1 %v4911_v44  ;;  %v4397_v44 = vcombine.low %v443_v55, %v447_v56  ;;  %v495_v43 = vld [vmem:[%s4726_s14 + $0xa78] sm:$0xff]  ;;  %v4444_v46 = vcombine.high %v490_v40, %v494_v41  ;;  %v4443_v54 = vcombine.low %v490_v40, %v494_v41 }
 0x198   : > { %v4446_v47 = vcombine.high %v491_v42, %v495_v43  ;;  %v4445_v31 = vcombine.low %v491_v42, %v495_v43 }
 0x199   : > { %3703 = vmatpush1.bf16.msra.mxu0 %v4379_v48  ;;  %3867 = vmatpush1.bf16.msra.mxu1 %v4381_v49  ;;  %v498_v48 = vld [vmem:[%s4726_s14 + $0xa90] sm:$0xff] }
 0x19a   : > { %3704 = vmatprep.subr.bf16.mxu0 %v4388_v50  ;;  %3868 = vmatprep.subr.bf16.mxu1 %v4390_v52  ;;  %v502_v49 = vld [vmem:[%s4726_s14 + $0xab0] sm:$0xff]  ;;  %v499_v50 = vld [vmem:[%s4726_s14 + $0xa98] sm:$0xff] }
 0x19b   : > { %v503_v52 = vld [vmem:[%s4726_s14 + $0xab8] sm:$0xff]  ;;  %v4452_v55 = vcombine.high %v498_v48, %v502_v49  ;;  %v4451_v61 = vcombine.low %v498_v48, %v502_v49 }
 0x19c   : > { %v4454_v56 = vcombine.high %v499_v50, %v503_v52  ;;  %v4453_v26 = vcombine.low %v499_v50, %v503_v52 }
 0x19d   : > { %3705 = vmatpush1.bf16.msra.mxu0 %v4387_v35  ;;  %3869 = vmatpush1.bf16.msra.mxu1 %v4389_v57  ;;  %v506_v35 = vld [vmem:[%s4726_s14 + $0xad0] sm:$0xff] }
 0x19e   : > { %3706 = vmatprep.subr.bf16.mxu0 %v4396_v58  ;;  %3870 = vmatprep.subr.bf16.mxu1 %v4398_v60  ;;  %v510_v57 = vld [vmem:[%s4726_s14 + $0xaf0] sm:$0xff]  ;;  %v507_v58 = vld [vmem:[%s4726_s14 + $0xad8] sm:$0xff] }
 0x19f   : > { %v511_v60 = vld [vmem:[%s4726_s14 + $0xaf8] sm:$0xff]  ;;  %v4460_v0 = vcombine.high %v506_v35, %v510_v57  ;;  %v4459_v5 = vcombine.low %v506_v35, %v510_v57 }
 0x1a0   : > { %v4462_v1 = vcombine.high %v507_v58, %v511_v60  ;;  %v4461_v6 = vcombine.low %v507_v58, %v511_v60 }
 0x1a1   : > { %3707 = vmatpush1.bf16.msra.mxu0 %v4395_v2  ;;  %3871 = vmatpush1.bf16.msra.mxu1 %v4397_v44  ;;  %v514_v2 = vld [vmem:[%s4726_s14 + $0xb10] sm:$0xff] }
 0x1a2   : > { %3708 = vmatprep.subr.bf16.mxu0 %v4404_v3  ;;  %3872 = vmatprep.subr.bf16.mxu1 %v4406_v4  ;;  %v518_v44 = vld [vmem:[%s4726_s14 + $0xb30] sm:$0xff]  ;;  %v515_v3 = vld [vmem:[%s4726_s14 + $0xb18] sm:$0xff] }
 0x1a3   : > { %v519_v4 = vld [vmem:[%s4726_s14 + $0xb38] sm:$0xff]  ;;  %v4468_v8 = vcombine.high %v514_v2, %v518_v44  ;;  %v4467_v15 = vcombine.low %v514_v2, %v518_v44 }
 0x1a4   : > { %v4470_v10 = vcombine.high %v515_v3, %v519_v4  ;;  %v4469_v16 = vcombine.low %v515_v3, %v519_v4  ;;  %v578_v4 = vld [vmem:[%s4726_s14 + $0xd10] sm:$0xff] }
 0x1a5   : > { %3709 = vmatpush1.bf16.msra.mxu0 %v4403_v11  ;;  %3873 = vmatpush1.bf16.msra.mxu1 %v4405_v12  ;;  %v522_v11 = vld [vmem:[%s4726_s14 + $0xb50] sm:$0xff] }
 0x1a6   : > { %3710 = vmatprep.subr.bf16.mxu0 %v4412_v13  ;;  %3874 = vmatprep.subr.bf16.mxu1 %v4414_v14  ;;  %v526_v12 = vld [vmem:[%s4726_s14 + $0xb70] sm:$0xff]  ;;  %v523_v13 = vld [vmem:[%s4726_s14 + $0xb58] sm:$0xff] }
 0x1a7   : > { %v527_v14 = vld [vmem:[%s4726_s14 + $0xb78] sm:$0xff]  ;;  %v4476_v17 = vcombine.high %v522_v11, %v526_v12  ;;  %v4475_v24 = vcombine.low %v522_v11, %v526_v12 }
 0x1a8   : > { %v4478_v18 = vcombine.high %v523_v13, %v527_v14  ;;  %v4477_v25 = vcombine.low %v523_v13, %v527_v14  ;;  %v586_v13 = vld [vmem:[%s4726_s14 + $0xd50] sm:$0xff] }
 0x1a9   : > { %3711 = vmatpush1.bf16.msra.mxu0 %v4411_v19  ;;  %3875 = vmatpush1.bf16.msra.mxu1 %v4413_v20  ;;  %v530_v19 = vld [vmem:[%s4726_s14 + $0xb90] sm:$0xff] }
 0x1aa   : > { %3712 = vmatprep.subr.bf16.mxu0 %v4420_v21  ;;  %3876 = vmatprep.subr.bf16.mxu1 %v4422_v23  ;;  %v534_v20 = vld [vmem:[%s4726_s14 + $0xbb0] sm:$0xff]  ;;  %v531_v21 = vld [vmem:[%s4726_s14 + $0xb98] sm:$0xff] }
 0x1ab   : > { %v535_v23 = vld [vmem:[%s4726_s14 + $0xbb8] sm:$0xff]  ;;  %v4484_v59 = vcombine.high %v530_v19, %v534_v20  ;;  %v4483_v32 = vcombine.low %v530_v19, %v534_v20  ;;  %v590_v14 = vld [vmem:[%s4726_s14 + $0xd70] sm:$0xff] }
 0x1ac   : > { %v4486_v27 = vcombine.high %v531_v21, %v535_v23  ;;  %v4485_v33 = vcombine.low %v531_v21, %v535_v23  ;;  %v4540_v19 = vcombine.high %v586_v13, %v590_v14  ;;  %v594_v21 = vld [vmem:[%s4726_s14 + $0xd90] sm:$0xff] }
 0x1ad   : > { %3713 = vmatpush1.bf16.msra.mxu0 %v4419_v28  ;;  %3877 = vmatpush1.bf16.msra.mxu1 %v4421_v29  ;;  %v538_v28 = vld [vmem:[%s4726_s14 + $0xbd0] sm:$0xff] }
 0x1ae   : > { %3714 = vmatprep.subr.bf16.mxu0 %v4428_v30  ;;  %3878 = vmatprep.subr.bf16.mxu1 %v4430_v63  ;;  %v542_v29 = vld [vmem:[%s4726_s14 + $0xbf0] sm:$0xff]  ;;  %v539_v30 = vld [vmem:[%s4726_s14 + $0xbd8] sm:$0xff] }
 0x1af   : > { %v543_v63 = vld [vmem:[%s4726_s14 + $0xbf8] sm:$0xff]  ;;  %v4492_v34 = vcombine.high %v538_v28, %v542_v29  ;;  %v4491_v40 = vcombine.low %v538_v28, %v542_v29  ;;  %v598_v23 = vld [vmem:[%s4726_s14 + $0xdb0] sm:$0xff] }
 0x1b0   : > { %v4494_v36 = vcombine.high %v539_v30, %v543_v63  ;;  %v4493_v41 = vcombine.low %v539_v30, %v543_v63  ;;  %v4548_v28 = vcombine.high %v594_v21, %v598_v23  ;;  %v602_v29 = vld [vmem:[%s4726_s14 + $0xdd0] sm:$0xff] }
 0x1b1   : > { %3715 = vmatpush1.bf16.msra.mxu0 %v4427_v37  ;;  %3879 = vmatpush1.bf16.msra.mxu1 %v4429_v9  ;;  %v546_v37 = vld [vmem:[%s4726_s14 + $0xc10] sm:$0xff] }
 0x1b2   : > { %3716 = vmatprep.subr.bf16.mxu0 %v4436_v38  ;;  %3880 = vmatprep.subr.bf16.mxu1 %v4438_v39  ;;  %v550_v9 = vld [vmem:[%s4726_s14 + $0xc30] sm:$0xff]  ;;  %v547_v38 = vld [vmem:[%s4726_s14 + $0xc18] sm:$0xff] }
 0x1b3   : > { %v551_v39 = vld [vmem:[%s4726_s14 + $0xc38] sm:$0xff]  ;;  %v4500_v42 = vcombine.high %v546_v37, %v550_v9  ;;  %v4499_v48 = vcombine.low %v546_v37, %v550_v9 }
 0x1b4   : > { %v4502_v43 = vcombine.high %v547_v38, %v551_v39  ;;  %v4501_v49 = vcombine.low %v547_v38, %v551_v39  ;;  %v4547_v38 = vcombine.low %v594_v21, %v598_v23  ;;  %v638_v21 = vld [vmem:[%s4726_s14 + $0xef0] sm:$0xff]  ;;  %v635_v23 = vld [vmem:[%s4726_s14 + $0xed8] sm:$0xff] }
 0x1b5   : > { %3717 = vmatpush1.bf16.msra.mxu0 %v4435_v22  ;;  %3881 = vmatpush1.bf16.msra.mxu1 %v4437_v45  ;;  %v554_v22 = vld [vmem:[%s4726_s14 + $0xc50] sm:$0xff] }
 0x1b6   : > { %3718 = vmatprep.subr.bf16.mxu0 %v4444_v46  ;;  %3882 = vmatprep.subr.bf16.mxu1 %v4446_v47  ;;  %v558_v45 = vld [vmem:[%s4726_s14 + $0xc70] sm:$0xff]  ;;  %v555_v46 = vld [vmem:[%s4726_s14 + $0xc58] sm:$0xff] }
 0x1b7   : > { %v559_v47 = vld [vmem:[%s4726_s14 + $0xc78] sm:$0xff]  ;;  %v4508_v50 = vcombine.high %v554_v22, %v558_v45  ;;  %v4507_v35 = vcombine.low %v554_v22, %v558_v45 }
 0x1b8   : > { %v4510_v52 = vcombine.high %v555_v46, %v559_v47  ;;  %v4509_v57 = vcombine.low %v555_v46, %v559_v47  ;;  %v610_v47 = vld [vmem:[%s4726_s14 + $0xe10] sm:$0xff] }
 0x1b9   : > { %3719 = vmatpush1.bf16.msra.mxu0 %v4443_v54  ;;  %3883 = vmatpush1.bf16.msra.mxu1 %v4445_v31  ;;  %v562_v54 = vld [vmem:[%s4726_s14 + $0xc90] sm:$0xff] }
 0x1ba   : > { %3720 = vmatprep.subr.bf16.mxu0 %v4452_v55  ;;  %3884 = vmatprep.subr.bf16.mxu1 %v4454_v56  ;;  %v566_v31 = vld [vmem:[%s4726_s14 + $0xcb0] sm:$0xff]  ;;  %v563_v55 = vld [vmem:[%s4726_s14 + $0xc98] sm:$0xff] }
 0x1bb   : > { %v567_v56 = vld [vmem:[%s4726_s14 + $0xcb8] sm:$0xff]  ;;  %v4516_v58 = vcombine.high %v562_v54, %v566_v31 }
 0x1bc   : > { %v4518_v60 = vcombine.high %v563_v55, %v567_v56  ;;  %v4517_v2 = vcombine.low %v563_v55, %v567_v56 }
 0x1bd   : > { %3721 = vmatpush1.bf16.msra.mxu0 %v4451_v61  ;;  %3885 = vmatpush1.bf16.msra.mxu1 %v4453_v26  ;;  %v570_v61 = vld [vmem:[%s4726_s14 + $0xcd0] sm:$0xff] }
 0x1be   : > { %3722 = vmatprep.subr.bf16.mxu0 %v4460_v0  ;;  %3886 = vmatprep.subr.bf16.mxu1 %v4462_v1  ;;  %v574_v26 = vld [vmem:[%s4726_s14 + $0xcf0] sm:$0xff]  ;;  %v571_v0 = vld [vmem:[%s4726_s14 + $0xcd8] sm:$0xff] }
 0x1bf   : > { %v575_v1 = vld [vmem:[%s4726_s14 + $0xcf8] sm:$0xff]  ;;  %v4524_v44 = vcombine.high %v570_v61, %v574_v26 }
 0x1c0   : > { %v4526_v3 = vcombine.high %v571_v0, %v575_v1 }
 0x1c1   : > { %3723 = vmatpush1.bf16.msra.mxu0 %v4459_v5  ;;  %3887 = vmatpush1.bf16.msra.mxu1 %v4461_v6  ;;  %v582_v5 = vld [vmem:[%s4726_s14 + $0xd30] sm:$0xff]  ;;  %v579_v6 = vld [vmem:[%s4726_s14 + $0xd18] sm:$0xff] }
 0x1c2   : > { %3724 = vmatprep.subr.bf16.mxu0 %v4468_v8  ;;  %3888 = vmatprep.subr.bf16.mxu1 %v4470_v10  ;;  %v583_v8 = vld [vmem:[%s4726_s14 + $0xd38] sm:$0xff]  ;;  %v4523_v10 = vcombine.low %v570_v61, %v574_v26  ;;  %v4532_v11 = vcombine.high %v578_v4, %v582_v5 }
 0x1c3   : > { %v4534_v12 = vcombine.high %v579_v6, %v583_v8 }
 0x1c5   : > { %3725 = vmatpush1.bf16.msra.mxu0 %v4467_v15  ;;  %3889 = vmatpush1.bf16.msra.mxu1 %v4469_v16  ;;  %v587_v15 = vld [vmem:[%s4726_s14 + $0xd58] sm:$0xff] }
 0x1c6   : > { %3726 = vmatprep.subr.bf16.mxu0 %v4476_v17  ;;  %3890 = vmatprep.subr.bf16.mxu1 %v4478_v18  ;;  %v591_v16 = vld [vmem:[%s4726_s14 + $0xd78] sm:$0xff]  ;;  %v4531_v17 = vcombine.low %v578_v4, %v582_v5  ;;  %v4533_v18 = vcombine.low %v579_v6, %v583_v8 }
 0x1c7   : > { %v4542_v20 = vcombine.high %v587_v15, %v591_v16  ;;  %v619_v4 = vld [vmem:[%s4726_s14 + $0xe58] sm:$0xff] }
 0x1c8   : > { %v623_v5 = vld [vmem:[%s4726_s14 + $0xe78] sm:$0xff] }
 0x1c9   : > { %3727 = vmatpush1.bf16.msra.mxu0 %v4475_v24  ;;  %3891 = vmatpush1.bf16.msra.mxu1 %v4477_v25  ;;  %v595_v24 = vld [vmem:[%s4726_s14 + $0xd98] sm:$0xff] }
 0x1ca   : > { %3728 = vmatprep.subr.bf16.mxu0 %v4484_v59  ;;  %3892 = vmatprep.subr.bf16.mxu1 %v4486_v27  ;;  %v599_v25 = vld [vmem:[%s4726_s14 + $0xdb8] sm:$0xff]  ;;  %v4539_v59 = vcombine.low %v586_v13, %v590_v14  ;;  %v4541_v27 = vcombine.low %v587_v15, %v591_v16  ;;  %v630_v13 = vld [vmem:[%s4726_s14 + $0xeb0] sm:$0xff] }
 0x1cb   : > { %v4550_v63 = vcombine.high %v595_v24, %v599_v25  ;;  %v4549_v39 = vcombine.low %v595_v24, %v599_v25  ;;  %v627_v14 = vld [vmem:[%s4726_s14 + $0xe98] sm:$0xff] }
 0x1cc   : > { %v631_v15 = vld [vmem:[%s4726_s14 + $0xeb8] sm:$0xff] }
 0x1cd   : > { %3729 = vmatpush1.bf16.msra.mxu0 %v4483_v32  ;;  %3893 = vmatpush1.bf16.msra.mxu1 %v4485_v33  ;;  %v606_v32 = vld [vmem:[%s4726_s14 + $0xdf0] sm:$0xff]  ;;  %v603_v33 = vld [vmem:[%s4726_s14 + $0xdd8] sm:$0xff] }
 0x1ce   : > { %3730 = vmatprep.subr.bf16.mxu0 %v4492_v34  ;;  %3894 = vmatprep.subr.bf16.mxu1 %v4494_v36  ;;  %v607_v34 = vld [vmem:[%s4726_s14 + $0xdf8] sm:$0xff]  ;;  %v4556_v45 = vcombine.high %v602_v29, %v606_v32 }
 0x1cf   : > { %v4558_v46 = vcombine.high %v603_v33, %v607_v34  ;;  %v4557_v61 = vcombine.low %v603_v33, %v607_v34  ;;  %v639_v24 = vld [vmem:[%s4726_s14 + $0xef8] sm:$0xff] }
 0x1d0   : > { %v4589_v34 = vcombine.low %v635_v23, %v639_v24 }
 0x1d1   : > { %3731 = vmatpush1.bf16.msra.mxu0 %v4491_v40  ;;  %3895 = vmatpush1.bf16.msra.mxu1 %v4493_v41 }
 0x1d2   : > { %3741 = vmatprep.subr.bf16.mxu0 %v4500_v42  ;;  %3905 = vmatprep.subr.bf16.mxu1 %v4502_v43 }
 0x1d4   : > { %3733 = vmatmul.mubr.bf16.vlgmr.msra.gmra.mrb[4].mxu0 %v4979_v51  ;;  %3897 = vmatmul.mubr.bf16.vlgmr.msra.gmra.mrb[4].mxu1 %v4979_v51  ;;  %v4515_v51 = vcombine.low %v562_v54, %v566_v31  ;;  %v614_v31 = vld [vmem:[%s4726_s14 + $0xe30] sm:$0xff] }
 0x1d5   : > { %3742 = vmatpush1.bf16.msra.mxu0 %v4499_v48  ;;  %3906 = vmatpush1.bf16.msra.mxu1 %v4501_v49  ;;  %v4563_v6 = vcombine.low %v610_v47, %v614_v31 }
 0x1d6   : > { %3743 = vmatprep.subr.bf16.mxu0 %v4508_v50  ;;  %3907 = vmatprep.subr.bf16.mxu1 %v4510_v52 }
 0x1d7   : > { %3773 = vmatprep.mubr.bf16.mxu0 %v4987_v62  ;;  %3937 = vmatprep.mubr.bf16.mxu1 %v4987_v62  ;;  %v4525_v62 = vcombine.low %v571_v0, %v575_v1  ;;  %v4564_v1 = vcombine.high %v610_v47, %v614_v31  ;;  %v659_v47 = vld [vmem:[%s4726_s14 + $0xf98] sm:$0xff]  ;;  %v666_v31 = vld [vmem:[%s4726_s14 + $0xfd0] sm:$0xff] }
 0x1d9   : > { %3744 = vmatpush1.bf16.msra.mxu0 %v4507_v35  ;;  %3908 = vmatpush1.bf16.msra.mxu1 %v4509_v57  ;;  %v611_v35 = vld [vmem:[%s4726_s14 + $0xe18] sm:$0xff] }
 0x1da   : > { %3745 = vmatprep.subr.bf16.mxu0 %v4516_v58  ;;  %3909 = vmatprep.subr.bf16.mxu1 %v4518_v60  ;;  %v615_v57 = vld [vmem:[%s4726_s14 + $0xe38] sm:$0xff]  ;;  %v4555_v60 = vcombine.low %v602_v29, %v606_v32  ;;  %v642_v29 = vld [vmem:[%s4726_s14 + $0xf10] sm:$0xff] }
 0x1db   : > { %v647_v32 = vld [vmem:[%s4726_s14 + $0xf38] sm:$0xff] }
 0x1dd   : > { %3746 = vmatpush1.bf16.msra.mxu0 %v4515_v51  ;;  %3910 = vmatpush1.bf16.msra.mxu1 %v4517_v2  ;;  %v4566_v51 = vcombine.high %v611_v35, %v615_v57  ;;  %v618_v2 = vld [vmem:[%s4726_s14 + $0xe50] sm:$0xff] }
 0x1de   : > { %3747 = vmatprep.subr.bf16.mxu0 %v4524_v44  ;;  %3911 = vmatprep.subr.bf16.mxu1 %v4526_v3  ;;  %v622_v44 = vld [vmem:[%s4726_s14 + $0xe70] sm:$0xff] }
 0x1df   : > { %v4571_v16 = vcombine.low %v618_v2, %v622_v44 }
 0x1e1   : > { %3748 = vmatpush1.bf16.msra.mxu0 %v4523_v10  ;;  %3912 = vmatpush1.bf16.msra.mxu1 %v4525_v62  ;;  %v4565_v10 = vcombine.low %v611_v35, %v615_v57  ;;  %v4572_v62 = vcombine.high %v618_v2, %v622_v44  ;;  %v671_v35 = vld [vmem:[%s4726_s14 + $0xff8] sm:$0xff] }
 0x1e2   : > { %3749 = vmatprep.subr.bf16.mxu0 %v4532_v11  ;;  %3913 = vmatprep.subr.bf16.mxu1 %v4534_v12  ;;  %v4574_v11 = vcombine.high %v619_v4, %v623_v5  ;;  %v626_v12 = vld [vmem:[%s4726_s14 + $0xe90] sm:$0xff] }
 0x1e3   : > { %v4579_v25 = vcombine.low %v626_v12, %v630_v13 }
 0x1e5   : > { %3750 = vmatpush1.bf16.msra.mxu0 %v4531_v17  ;;  %3914 = vmatpush1.bf16.msra.mxu1 %v4533_v18  ;;  %v4573_v17 = vcombine.low %v619_v4, %v623_v5  ;;  %v4580_v18 = vcombine.high %v626_v12, %v630_v13 }
 0x1e6   : > { %3751 = vmatprep.subr.bf16.mxu0 %v4540_v19  ;;  %3915 = vmatprep.subr.bf16.mxu1 %v4542_v20  ;;  %v4582_v19 = vcombine.high %v627_v14, %v631_v15  ;;  %v634_v20 = vld [vmem:[%s4726_s14 + $0xed0] sm:$0xff] }
 0x1e7   : > { %v3447_v30 = vpop.f32.mrb[0].mxu0  ;;  %v3611_v37 = vpop.f32.mrb[0].mxu1  ;;  %v4587_v33 = vcombine.low %v634_v20, %v638_v21 }
 0x1e8   : > { %vm3946_vm0 = vcmp.ge.f32.partialorder %v3447_v30, 0.0  ;;  %v3954_v36 = vmul.f32 0.2, %v3447_v30  ;;  %v3449_v9 = vpop.f32.mrb[1].mxu0  ;;  %vm3948_vm1 = vcmp.ge.f32.partialorder %v3611_v37, 0.0  ;;  %v3613_v43 = vpop.f32.mrb[1].mxu1 }
 0x1e9   : > { %v3956_v40 = vmul.f32 0.2, %v3611_v37  ;;  %vm3947_vm2 = vcmp.ge.f32.partialorder %v3449_v9, 0.0  ;;  %v3955_v41 = vmul.f32 0.2, %v3449_v9  ;;  %3752 = vmatpush1.bf16.msra.mxu0 %v4539_v59  ;;  %v3451_v22 = vpop.f32.mrb[2].mxu0  ;;  %3916 = vmatpush1.bf16.msra.mxu1 %v4541_v27  ;;  %v4581_v59 = vcombine.low %v627_v14, %v631_v15 }
 0x1ea   : > { %v3962_v42 = vsel %vm3946_vm0, %v3447_v30, %v3954_v36  ;;  %3753 = vmatprep.subr.bf16.mxu0 %v4548_v28  ;;  %vm3949_vm3 = vcmp.ge.f32.partialorder %v3613_v43, 0.0  ;;  %v3957_v50 = vmul.f32 0.2, %v3613_v43  ;;  %v3615_v52 = vpop.f32.mrb[2].mxu1  ;;  %v3452_v54 = vpop.f32.mrb[3].mxu0  ;;  %3917 = vmatprep.subr.bf16.mxu1 %v4550_v63  ;;  %v4588_v27 = vcombine.high %v634_v20, %v638_v21  ;;  %v646_v30 = vld [vmem:[%s4726_s14 + $0xf30] sm:$0xff] }
 0x1eb   : > { %v3964_v48 = vsel %vm3948_vm1, %v3611_v37, %v3956_v40  ;;  %v3963_v49 = vsel %vm3947_vm2, %v3449_v9, %v3955_v41  ;;  %v3616_v56 = vpop.f32.mrb[3].mxu1  ;;  %v4590_v28 = vcombine.high %v635_v23, %v639_v24  ;;  %v643_v63 = vld [vmem:[%s4726_s14 + $0xf18] sm:$0xff]  ;;  %v4596_v36 = vcombine.high %v642_v29, %v646_v30  ;;  %v650_v9 = vld [vmem:[%s4726_s14 + $0xf50] sm:$0xff] }
 0x1ec   : > { %v4623_v55 = vpack.c.bf16 %v3963_v49, %v3962_v42  ;;  %v3965_v58 = vsel %vm3949_vm3, %v3613_v43, %v3957_v50  ;;  %v4598_v37 = vcombine.high %v643_v63, %v647_v32  ;;  %v655_v40 = vld [vmem:[%s4726_s14 + $0xf78] sm:$0xff]  ;;  %v4595_v41 = vcombine.low %v642_v29, %v646_v30 }
 0x1ed   : > { %3754 = vmatpush1.bf16.msra.mxu0 %v4547_v38  ;;  %v4624_v0 = vpack.c.bf16 %v3965_v58, %v3964_v48  ;;  %3918 = vmatpush1.bf16.msra.mxu1 %v4549_v39  ;;  %v654_v38 = vld [vmem:[%s4726_s14 + $0xf70] sm:$0xff]  ;;  %v651_v39 = vld [vmem:[%s4726_s14 + $0xf58] sm:$0xff]  ;;  %v4597_v42 = vcombine.low %v643_v63, %v647_v32 }
 0x1ee   : > { %v5296_v26 = vrot.slane %v4623_v55, %v4760_v53  ;;  %3755 = vmatprep.subr.bf16.mxu0 %v4556_v45  ;;  %3919 = vmatprep.subr.bf16.mxu1 %v4558_v46  ;;  %v4604_v43 = vcombine.high %v650_v9, %v654_v38  ;;  %v4606_v22 = vcombine.high %v651_v39, %v655_v40  ;;  %v658_v45 = vld [vmem:[%s4726_s14 + $0xf90] sm:$0xff]  ;;  %v663_v48 = vld [vmem:[%s4726_s14 + $0xfb8] sm:$0xff] }
 0x1ef   : > { %v5301_v3 = vrot.slane %v4624_v0, %v4760_v53  ;;  %v662_v46 = vld [vmem:[%s4726_s14 + $0xfb0] sm:$0xff]  ;;  %v4603_v49 = vcombine.low %v650_v9, %v654_v38  ;;  %v4605_v50 = vcombine.low %v651_v39, %v655_v40  ;;  %v4614_v54 = vcombine.high %v659_v47, %v663_v48  ;;  %v667_v56 = vld [vmem:[%s4726_s14 + $0xfd8] sm:$0xff] }
 0x1f0   : > { %v4612_v52 = vcombine.high %v658_v45, %v662_v46  ;;  %v670_v55 = vld [vmem:[%s4726_s14 + $0xff0] sm:$0xff]  ;;  %v4611_v57 = vcombine.low %v658_v45, %v662_v46  ;;  %v4613_v58 = vcombine.low %v659_v47, %v663_v48 }
 0x1f1   : > { %3756 = vmatpush1.bf16.msra.mxu0 %v4555_v60  ;;  %v4018_v8 = vcombine.low %v5296_v26, %v5301_v3  ;;  %3920 = vmatpush1.bf16.msra.mxu1 %v4557_v61  ;;  %v4620_v60 = vcombine.high %v666_v31, %v670_v55  ;;  %v4622_v61 = vcombine.high %v667_v56, %v671_v35 }
 0x1f2   : > { %3757 = vmatprep.subr.bf16.mxu0 %v4564_v1  ;;  %3921 = vmatprep.subr.bf16.mxu1 %v4566_v51  ;;  %v4619_v0 = vcombine.low %v666_v31, %v670_v55  ;;  %v4621_v1 = vcombine.low %v667_v56, %v671_v35 }
 0x1f3   : > { %v4026_v24 = vrot.slane %v4018_v8, %v4760_v53 }
 0x1f5   : > { %3758 = vmatpush1.bf16.msra.mxu0 %v4563_v6  ;;  %3922 = vmatpush1.bf16.msra.mxu1 %v4565_v10 }
 0x1f6   : > { %3759 = vmatprep.subr.bf16.mxu0 %v4572_v62  ;;  %3923 = vmatprep.subr.bf16.mxu1 %v4574_v11 }
 0x1f9   : > { %3760 = vmatpush1.bf16.msra.mxu0 %v4571_v16  ;;  %3924 = vmatpush1.bf16.msra.mxu1 %v4573_v17 }
 0x1fa   : > { %3761 = vmatprep.subr.bf16.mxu0 %v4580_v18  ;;  %3925 = vmatprep.subr.bf16.mxu1 %v4582_v19 }
 0x1fd   : > { %3762 = vmatpush1.bf16.msra.mxu0 %v4579_v25  ;;  %3926 = vmatpush1.bf16.msra.mxu1 %v4581_v59 }
 0x1fe   : > { %3763 = vmatprep.subr.bf16.mxu0 %v4588_v27  ;;  %3927 = vmatprep.subr.bf16.mxu1 %v4590_v28 }
 0x201   : > { %3764 = vmatpush1.bf16.msra.mxu0 %v4587_v33  ;;  %3928 = vmatpush1.bf16.msra.mxu1 %v4589_v34 }
 0x202   : > { %3765 = vmatprep.subr.bf16.mxu0 %v4596_v36  ;;  %3929 = vmatprep.subr.bf16.mxu1 %v4598_v37 }
 0x205   : > { %3766 = vmatpush1.bf16.msra.mxu0 %v4595_v41  ;;  %3930 = vmatpush1.bf16.msra.mxu1 %v4597_v42 }
 0x206   : > { %3767 = vmatprep.subr.bf16.mxu0 %v4604_v43  ;;  %3931 = vmatprep.subr.bf16.mxu1 %v4606_v22 }
 0x209   : > { %3768 = vmatpush1.bf16.msra.mxu0 %v4603_v49  ;;  %3932 = vmatpush1.bf16.msra.mxu1 %v4605_v50 }
 0x20a   : > { %3769 = vmatprep.subr.bf16.mxu0 %v4612_v52  ;;  %3933 = vmatprep.subr.bf16.mxu1 %v4614_v54 }
 0x20d   : > { %3770 = vmatpush1.bf16.msra.mxu0 %v4611_v57  ;;  %3934 = vmatpush1.bf16.msra.mxu1 %v4613_v58 }
 0x20e   : > { %3771 = vmatprep.subr.bf16.mxu0 %v4620_v60  ;;  %3935 = vmatprep.subr.bf16.mxu1 %v4622_v61 }
 0x211   : > { %3772 = vmatpush1.bf16.msra.mxu0 %v4619_v0  ;;  %3936 = vmatpush1.bf16.msra.mxu1 %v4621_v1 }
 0x214   : > { %3774 = vmatmul.mubr.bf16.vlgmr.msra.gmra.mrb[4].mxu0 %v5055_v7  ;;  %3938 = vmatmul.mubr.bf16.vlgmr.msra.gmra.mrb[4].mxu1 %v5055_v7 }
 0x2e7   : > { %v3775_v51 = vpop.f32.mrb[4].mxu0  ;;  %v3939_v44 = vpop.f32.mrb[4].mxu1 }
 0x2e8   : > { %vm3950_vm4 = vcmp.ge.f32.partialorder %v3775_v51, 0.0  ;;  %v3958_v2 = vmul.f32 0.2, %v3775_v51  ;;  %v3777_v4 = vpop.f32.mrb[5].mxu0  ;;  %vm3952_vm5 = vcmp.ge.f32.partialorder %v3939_v44, 0.0  ;;  %v3941_v62 = vpop.f32.mrb[5].mxu1 }
 0x2e9   : > { %v3960_v5 = vmul.f32 0.2, %v3939_v44  ;;  %vm3951_vm6 = vcmp.ge.f32.partialorder %v3777_v4, 0.0  ;;  %v3959_v6 = vmul.f32 0.2, %v3777_v4  ;;  %v3779_v11 = vpop.f32.mrb[6].mxu0 }
 0x2ea   : > { %v3966_v10 = vsel %vm3950_vm4, %v3775_v51, %v3958_v2  ;;  %vm3953_vm7 = vcmp.ge.f32.partialorder %v3941_v62, 0.0  ;;  %v3961_v14 = vmul.f32 0.2, %v3941_v62  ;;  %v3943_v15 = vpop.f32.mrb[6].mxu1  ;;  %v3780_v16 = vpop.f32.mrb[7].mxu0 }
 0x2eb   : > { %v3968_v12 = vsel %vm3952_vm5, %v3939_v44, %v3960_v5  ;;  %v3967_v13 = vsel %vm3951_vm6, %v3777_v4, %v3959_v6  ;;  %v3944_v17 = vpop.f32.mrb[7].mxu1 }
 0x2ec   : > { %v4625_v7 = vpack.c.bf16 %v3967_v13, %v3966_v10  ;;  %v3969_v18 = vsel %vm3953_vm7, %v3941_v62, %v3961_v14 }
 0x2ed   : > { %v4626_v20 = vpack.c.bf16 %v3969_v18, %v3968_v12 }
 0x2ee   : > { %v4010_v19 = vrot.slane %v4625_v7, %v4760_v53 }
 0x2ef   : > { %v4017_v21 = vrot.slane %v4626_v20, %v4760_v53 }
 0x2f1   : > { %v4019_v23 = vcombine.low %v4010_v19, %v4017_v21 }
 0x2f3   : > { %v4033_v25 = vrot.slane %v4019_v23, %v4760_v53 }
 0x2f5   : > { %v4034_v59 = vcombine.low %v4026_v24, %v4033_v25 }
 0x2f7   : > { %4036 = vst [vmem:[%s158_s21] sm:$0xff] %v4034_v59 }
 0x2f8 PF: > { %s12_s9 = sadd.s32 1, %s4694_s9  }
 0x2f9   : > { %p9_p4 = scmp.ge.s32.totalorder %s12_s9, 6  }
 0x2fb   :  { %11 = sbr.rel (!%p9_p4) target bundleno = 1 (0x1), region = 61 }

// kernel: refiner_block.9
= control target key start
LH: loop header
LB: loop body
LE: loop exit
PB: predicated region body
PF: predicated region fallthrough
CT: control target
= control target key end

     0   :  { %s1586_s12 = smov 0   ;;  %s1588_s13 = smov 0   ;;  %s2000_s0 = inlined_call_operand.vmem [shape: bf16[216,2048], index: 0, kind: input, shape index: {}]   ;;  %s2001_s1 = inlined_call_operand.vmem [shape: bf16[3,216], index: 1, kind: input, shape index: {}]   ;;  %s2002_s2 = inlined_call_operand.vmem [shape: f32[3,1], index: 2, kind: input, shape index: {}]   ;;  %s2003_s3 = inlined_call_operand.vmem [shape: f32[3,2048], index: 3, kind: output, shape index: {}]  }
   0x1   :  { %s1590_s14 = smov 0  }
   0x2 LB: > { %s1356_s15 = sadd.s32 4294967295, %s1563_s14   ;;  %s1603_s16 = sadd.s32 1, %s1563_s14   ;;  %s1563_s14 = sphi %s1590_s14, %s2006_s14   ;;  %s1559_s13 = sphi %s1588_s13, %s2005_s13   ;;  %s1555_s12 = sphi %s1586_s12, %s2004_s12  }
   0x3   : > { %s17_s17 = ssub.s32 %s1563_s14, %s1603_s16  ;;  %s20_s18 = sadd.s32 1, %s1559_s13 }
   0x4   : > { %p18_p0 = scmp.eq.s32.totalorder %s17_s17, 0  ;;  %p27_p1 = scmp.ne.s32.totalorder %s1559_s13, %s1555_s12 }
   0x5   : > { %p28_p2 = scmp.eq.s32.totalorder %s1563_s14, 0  ;;  %p1359_p4 = scmp.ge.s32.totalorder %s1563_s14, 2 }
   0x6   : > { %s1612_s19 = scalar_select %p18_p0, %s1559_s13, %s20_s18  }
   0x7   : > { %p29_p3 = por %p28_p2, %p27_p1  ;;  %127 = sbr.rel (%p1359_p4) target bundleno = 73 (0x49), region = 24 }
   0xe   : > { %130 = sbr.rel (!%p29_p3) target bundleno = 73 (0x49), region = 28  ;;  %s132_s20 = sand.u32 (%p29_p3), 1, %s1559_s13  }
   0xf   : > { %s1488_s21 = sshll.u32 (%p29_p3), %s1563_s14, 5  ;;  %s1489_s22 = smul.u32 (%p29_p3), 864, %s132_s20 }
  0x10   : > { %s1620_s25 = scalar_lea.vmem (%p29_p3), %s2000_s0, %s1488_s21 }
  0x11   : > { %v150_v0 = vld [vmem:[%s1620_s25] sm:$0xff] (%p29_p3)  ;;  %v152_v1 = vld [vmem:[%s1620_s25 + $0x8] sm:$0xff] (%p29_p3)  ;;  %v154_v2 = vld [vmem:[%s1620_s25 + $0x10] sm:$0xff] (%p29_p3)  ;;  %s1628_s26 = scalar_lea.vmem (%p29_p3), [#allocation2], %s1489_s22 }
  0x12   : > { %v156_v3 = vld [vmem:[%s1620_s25 + $0x18] sm:$0xff] (%p29_p3)  ;;  %v158_v4 = vld [vmem:[%s1620_s25 + $0x40] sm:$0xff] (%p29_p3)  ;;  %v160_v5 = vld [vmem:[%s1620_s25 + $0x48] sm:$0xff] (%p29_p3)  ;;  %151 = vst [vmem:[%s1628_s26] sm:$0xff] (%p29_p3), %v150_v0 }
  0x13   : > { %153 = vst [vmem:[%s1628_s26 + $0x8] sm:$0xff] (%p29_p3), %v152_v1  ;;  %155 = vst [vmem:[%s1628_s26 + $0x10] sm:$0xff] (%p29_p3), %v154_v2  ;;  %v162_v6 = vld [vmem:[%s1620_s25 + $0x50] sm:$0xff] (%p29_p3)  ;;  %v164_v7 = vld [vmem:[%s1620_s25 + $0x58] sm:$0xff] (%p29_p3) }
  0x14   : > { %157 = vst [vmem:[%s1628_s26 + $0x18] sm:$0xff] (%p29_p3), %v156_v3  ;;  %159 = vst [vmem:[%s1628_s26 + $0x20] sm:$0xff] (%p29_p3), %v158_v4  ;;  %v166_v8 = vld [vmem:[%s1620_s25 + $0x80] sm:$0xff] (%p29_p3)  ;;  %v168_v9 = vld [vmem:[%s1620_s25 + $0x88] sm:$0xff] (%p29_p3) }
  0x15   : > { %161 = vst [vmem:[%s1628_s26 + $0x28] sm:$0xff] %v160_v5  ;;  %163 = vst [vmem:[%s1628_s26 + $0x30] sm:$0xff] %v162_v6  ;;  %v170_v10 = vld [vmem:[%s1620_s25 + $0x90] sm:$0xff]  ;;  %v172_v11 = vld [vmem:[%s1620_s25 + $0x98] sm:$0xff] }
  0x16   : > { %165 = vst [vmem:[%s1628_s26 + $0x38] sm:$0xff] %v164_v7  ;;  %167 = vst [vmem:[%s1628_s26 + $0x40] sm:$0xff] %v166_v8  ;;  %v174_v12 = vld [vmem:[%s1620_s25 + $0xc0] sm:$0xff]  ;;  %v176_v13 = vld [vmem:[%s1620_s25 + $0xc8] sm:$0xff] }
  0x17   : > { %169 = vst [vmem:[%s1628_s26 + $0x48] sm:$0xff] %v168_v9  ;;  %171 = vst [vmem:[%s1628_s26 + $0x50] sm:$0xff] %v170_v10  ;;  %v178_v14 = vld [vmem:[%s1620_s25 + $0xd0] sm:$0xff]  ;;  %v180_v15 = vld [vmem:[%s1620_s25 + $0xd8] sm:$0xff] }
  0x18   : > { %173 = vst [vmem:[%s1628_s26 + $0x58] sm:$0xff] %v172_v11  ;;  %175 = vst [vmem:[%s1628_s26 + $0x60] sm:$0xff] %v174_v12  ;;  %v182_v16 = vld [vmem:[%s1620_s25 + $0x100] sm:$0xff]  ;;  %v184_v17 = vld [vmem:[%s1620_s25 + $0x108] sm:$0xff] }
  0x19   : > { %177 = vst [vmem:[%s1628_s26 + $0x68] sm:$0xff] %v176_v13  ;;  %179 = vst [vmem:[%s1628_s26 + $0x70] sm:$0xff] %v178_v14  ;;  %v186_v18 = vld [vmem:[%s1620_s25 + $0x110] sm:$0xff]  ;;  %v188_v19 = vld [vmem:[%s1620_s25 + $0x118] sm:$0xff] }
  0x1a   : > { %181 = vst [vmem:[%s1628_s26 + $0x78] sm:$0xff] %v180_v15  ;;  %183 = vst [vmem:[%s1628_s26 + $0x80] sm:$0xff] %v182_v16  ;;  %v190_v20 = vld [vmem:[%s1620_s25 + $0x140] sm:$0xff]  ;;  %v192_v21 = vld [vmem:[%s1620_s25 + $0x148] sm:$0xff] }
  0x1b   : > { %185 = vst [vmem:[%s1628_s26 + $0x88] sm:$0xff] %v184_v17  ;;  %187 = vst [vmem:[%s1628_s26 + $0x90] sm:$0xff] %v186_v18  ;;  %v194_v22 = vld [vmem:[%s1620_s25 + $0x150] sm:$0xff]  ;;  %v196_v23 = vld [vmem:[%s1620_s25 + $0x158] sm:$0xff] }
  0x1c   : > { %189 = vst [vmem:[%s1628_s26 + $0x98] sm:$0xff] %v188_v19  ;;  %191 = vst [vmem:[%s1628_s26 + $0xa0] sm:$0xff] %v190_v20  ;;  %v198_v24 = vld [vmem:[%s1620_s25 + $0x180] sm:$0xff]  ;;  %v200_v25 = vld [vmem:[%s1620_s25 + $0x188] sm:$0xff] }
  0x1d   : > { %193 = vst [vmem:[%s1628_s26 + $0xa8] sm:$0xff] %v192_v21  ;;  %195 = vst [vmem:[%s1628_s26 + $0xb0] sm:$0xff] %v194_v22  ;;  %v202_v26 = vld [vmem:[%s1620_s25 + $0x190] sm:$0xff]  ;;  %v204_v27 = vld [vmem:[%s1620_s25 + $0x198] sm:$0xff] }
  0x1e   : > { %197 = vst [vmem:[%s1628_s26 + $0xb8] sm:$0xff] %v196_v23  ;;  %199 = vst [vmem:[%s1628_s26 + $0xc0] sm:$0xff] %v198_v24  ;;  %v206_v28 = vld [vmem:[%s1620_s25 + $0x1c0] sm:$0xff]  ;;  %v208_v29 = vld [vmem:[%s1620_s25 + $0x1c8] sm:$0xff] }
  0x1f   : > { %201 = vst [vmem:[%s1628_s26 + $0xc8] sm:$0xff] %v200_v25  ;;  %203 = vst [vmem:[%s1628_s26 + $0xd0] sm:$0xff] %v202_v26  ;;  %v210_v30 = vld [vmem:[%s1620_s25 + $0x1d0] sm:$0xff]  ;;  %v212_v31 = vld [vmem:[%s1620_s25 + $0x1d8] sm:$0xff] }
  0x20   : > { %205 = vst [vmem:[%s1628_s26 + $0xd8] sm:$0xff] %v204_v27  ;;  %207 = vst [vmem:[%s1628_s26 + $0xe0] sm:$0xff] %v206_v28  ;;  %v214_v32 = vld [vmem:[%s1620_s25 + $0x200] sm:$0xff]  ;;  %v216_v33 = vld [vmem:[%s1620_s25 + $0x208] sm:$0xff] }
  0x21   : > { %209 = vst [vmem:[%s1628_s26 + $0xe8] sm:$0xff] %v208_v29  ;;  %211 = vst [vmem:[%s1628_s26 + $0xf0] sm:$0xff] %v210_v30  ;;  %v218_v34 = vld [vmem:[%s1620_s25 + $0x210] sm:$0xff]  ;;  %v220_v35 = vld [vmem:[%s1620_s25 + $0x218] sm:$0xff] }
  0x22   : > { %213 = vst [vmem:[%s1628_s26 + $0xf8] sm:$0xff] %v212_v31  ;;  %215 = vst [vmem:[%s1628_s26 + $0x100] sm:$0xff] %v214_v32  ;;  %v222_v36 = vld [vmem:[%s1620_s25 + $0x240] sm:$0xff]  ;;  %v224_v37 = vld [vmem:[%s1620_s25 + $0x248] sm:$0xff] }
  0x23   : > { %217 = vst [vmem:[%s1628_s26 + $0x108] sm:$0xff] %v216_v33  ;;  %219 = vst [vmem:[%s1628_s26 + $0x110] sm:$0xff] %v218_v34  ;;  %v226_v38 = vld [vmem:[%s1620_s25 + $0x250] sm:$0xff]  ;;  %v228_v39 = vld [vmem:[%s1620_s25 + $0x258] sm:$0xff] }
  0x24   : > { %221 = vst [vmem:[%s1628_s26 + $0x118] sm:$0xff] %v220_v35  ;;  %223 = vst [vmem:[%s1628_s26 + $0x120] sm:$0xff] %v222_v36  ;;  %v230_v40 = vld [vmem:[%s1620_s25 + $0x280] sm:$0xff]  ;;  %v232_v41 = vld [vmem:[%s1620_s25 + $0x288] sm:$0xff] }
  0x25   : > { %225 = vst [vmem:[%s1628_s26 + $0x128] sm:$0xff] %v224_v37  ;;  %227 = vst [vmem:[%s1628_s26 + $0x130] sm:$0xff] %v226_v38  ;;  %v234_v42 = vld [vmem:[%s1620_s25 + $0x290] sm:$0xff]  ;;  %v236_v43 = vld [vmem:[%s1620_s25 + $0x298] sm:$0xff] }
  0x26   : > { %229 = vst [vmem:[%s1628_s26 + $0x138] sm:$0xff] %v228_v39  ;;  %231 = vst [vmem:[%s1628_s26 + $0x140] sm:$0xff] %v230_v40  ;;  %v238_v44 = vld [vmem:[%s1620_s25 + $0x2c0] sm:$0xff]  ;;  %v240_v45 = vld [vmem:[%s1620_s25 + $0x2c8] sm:$0xff] }
  0x27   : > { %233 = vst [vmem:[%s1628_s26 + $0x148] sm:$0xff] %v232_v41  ;;  %235 = vst [vmem:[%s1628_s26 + $0x150] sm:$0xff] %v234_v42  ;;  %v242_v46 = vld [vmem:[%s1620_s25 + $0x2d0] sm:$0xff]  ;;  %v244_v47 = vld [vmem:[%s1620_s25 + $0x2d8] sm:$0xff] }
  0x28   : > { %237 = vst [vmem:[%s1628_s26 + $0x158] sm:$0xff] %v236_v43  ;;  %239 = vst [vmem:[%s1628_s26 + $0x160] sm:$0xff] %v238_v44  ;;  %v246_v48 = vld [vmem:[%s1620_s25 + $0x300] sm:$0xff]  ;;  %v248_v49 = vld [vmem:[%s1620_s25 + $0x308] sm:$0xff] }
  0x29   : > { %241 = vst [vmem:[%s1628_s26 + $0x168] sm:$0xff] %v240_v45  ;;  %243 = vst [vmem:[%s1628_s26 + $0x170] sm:$0xff] %v242_v46  ;;  %v250_v50 = vld [vmem:[%s1620_s25 + $0x310] sm:$0xff]  ;;  %v252_v51 = vld [vmem:[%s1620_s25 + $0x318] sm:$0xff] }
  0x2a   : > { %245 = vst [vmem:[%s1628_s26 + $0x178] sm:$0xff] %v244_v47  ;;  %247 = vst [vmem:[%s1628_s26 + $0x180] sm:$0xff] %v246_v48  ;;  %v254_v52 = vld [vmem:[%s1620_s25 + $0x340] sm:$0xff]  ;;  %v256_v53 = vld [vmem:[%s1620_s25 + $0x348] sm:$0xff] }
  0x2b   : > { %249 = vst [vmem:[%s1628_s26 + $0x188] sm:$0xff] %v248_v49  ;;  %251 = vst [vmem:[%s1628_s26 + $0x190] sm:$0xff] %v250_v50  ;;  %v258_v54 = vld [vmem:[%s1620_s25 + $0x350] sm:$0xff]  ;;  %v260_v55 = vld [vmem:[%s1620_s25 + $0x358] sm:$0xff] }
  0x2c   : > { %253 = vst [vmem:[%s1628_s26 + $0x198] sm:$0xff] %v252_v51  ;;  %255 = vst [vmem:[%s1628_s26 + $0x1a0] sm:$0xff] %v254_v52  ;;  %v262_v56 = vld [vmem:[%s1620_s25 + $0x380] sm:$0xff]  ;;  %v264_v57 = vld [vmem:[%s1620_s25 + $0x388] sm:$0xff] }
  0x2d   : > { %257 = vst [vmem:[%s1628_s26 + $0x1a8] sm:$0xff] %v256_v53  ;;  %259 = vst [vmem:[%s1628_s26 + $0x1b0] sm:$0xff] %v258_v54  ;;  %v266_v58 = vld [vmem:[%s1620_s25 + $0x390] sm:$0xff]  ;;  %v268_v59 = vld [vmem:[%s1620_s25 + $0x398] sm:$0xff] }
  0x2e   : > { %261 = vst [vmem:[%s1628_s26 + $0x1b8] sm:$0xff] %v260_v55  ;;  %263 = vst [vmem:[%s1628_s26 + $0x1c0] sm:$0xff] %v262_v56  ;;  %v270_v60 = vld [vmem:[%s1620_s25 + $0x3c0] sm:$0xff]  ;;  %v272_v61 = vld [vmem:[%s1620_s25 + $0x3c8] sm:$0xff] }
  0x2f   : > { %265 = vst [vmem:[%s1628_s26 + $0x1c8] sm:$0xff] %v264_v57  ;;  %267 = vst [vmem:[%s1628_s26 + $0x1d0] sm:$0xff] %v266_v58  ;;  %v274_v62 = vld [vmem:[%s1620_s25 + $0x3d0] sm:$0xff]  ;;  %v276_v63 = vld [vmem:[%s1620_s25 + $0x3d8] sm:$0xff] }
  0x30   : > { %269 = vst [vmem:[%s1628_s26 + $0x1d8] sm:$0xff] %v268_v59  ;;  %271 = vst [vmem:[%s1628_s26 + $0x1e0] sm:$0xff] %v270_v60  ;;  %v278_v0 = vld [vmem:[%s1620_s25 + $0x400] sm:$0xff]  ;;  %v280_v1 = vld [vmem:[%s1620_s25 + $0x408] sm:$0xff] }
  0x31   : > { %273 = vst [vmem:[%s1628_s26 + $0x1e8] sm:$0xff] %v272_v61  ;;  %275 = vst [vmem:[%s1628_s26 + $0x1f0] sm:$0xff] %v274_v62  ;;  %v282_v2 = vld [vmem:[%s1620_s25 + $0x410] sm:$0xff]  ;;  %v284_v3 = vld [vmem:[%s1620_s25 + $0x418] sm:$0xff] }
  0x32   : > { %277 = vst [vmem:[%s1628_s26 + $0x1f8] sm:$0xff] %v276_v63  ;;  %279 = vst [vmem:[%s1628_s26 + $0x200] sm:$0xff] %v278_v0  ;;  %v286_v4 = vld [vmem:[%s1620_s25 + $0x440] sm:$0xff]  ;;  %v288_v5 = vld [vmem:[%s1620_s25 + $0x448] sm:$0xff] }
  0x33   : > { %281 = vst [vmem:[%s1628_s26 + $0x208] sm:$0xff] %v280_v1  ;;  %283 = vst [vmem:[%s1628_s26 + $0x210] sm:$0xff] %v282_v2  ;;  %v290_v6 = vld [vmem:[%s1620_s25 + $0x450] sm:$0xff]  ;;  %v292_v7 = vld [vmem:[%s1620_s25 + $0x458] sm:$0xff] }
  0x34   : > { %285 = vst [vmem:[%s1628_s26 + $0x218] sm:$0xff] %v284_v3  ;;  %287 = vst [vmem:[%s1628_s26 + $0x220] sm:$0xff] %v286_v4  ;;  %v294_v8 = vld [vmem:[%s1620_s25 + $0x480] sm:$0xff]  ;;  %v296_v9 = vld [vmem:[%s1620_s25 + $0x488] sm:$0xff] }
  0x35   : > { %289 = vst [vmem:[%s1628_s26 + $0x228] sm:$0xff] %v288_v5  ;;  %291 = vst [vmem:[%s1628_s26 + $0x230] sm:$0xff] %v290_v6  ;;  %v298_v10 = vld [vmem:[%s1620_s25 + $0x490] sm:$0xff]  ;;  %v300_v11 = vld [vmem:[%s1620_s25 + $0x498] sm:$0xff] }
  0x36   : > { %293 = vst [vmem:[%s1628_s26 + $0x238] sm:$0xff] %v292_v7  ;;  %295 = vst [vmem:[%s1628_s26 + $0x240] sm:$0xff] %v294_v8  ;;  %v302_v12 = vld [vmem:[%s1620_s25 + $0x4c0] sm:$0xff]  ;;  %v304_v13 = vld [vmem:[%s1620_s25 + $0x4c8] sm:$0xff] }
  0x37   : > { %297 = vst [vmem:[%s1628_s26 + $0x248] sm:$0xff] %v296_v9  ;;  %299 = vst [vmem:[%s1628_s26 + $0x250] sm:$0xff] %v298_v10  ;;  %v306_v14 = vld [vmem:[%s1620_s25 + $0x4d0] sm:$0xff]  ;;  %v308_v15 = vld [vmem:[%s1620_s25 + $0x4d8] sm:$0xff] }
  0x38   : > { %301 = vst [vmem:[%s1628_s26 + $0x258] sm:$0xff] %v300_v11  ;;  %303 = vst [vmem:[%s1628_s26 + $0x260] sm:$0xff] %v302_v12  ;;  %v310_v16 = vld [vmem:[%s1620_s25 + $0x500] sm:$0xff]  ;;  %v312_v17 = vld [vmem:[%s1620_s25 + $0x508] sm:$0xff] }
  0x39   : > { %305 = vst [vmem:[%s1628_s26 + $0x268] sm:$0xff] %v304_v13  ;;  %307 = vst [vmem:[%s1628_s26 + $0x270] sm:$0xff] %v306_v14  ;;  %v314_v18 = vld [vmem:[%s1620_s25 + $0x510] sm:$0xff]  ;;  %v316_v19 = vld [vmem:[%s1620_s25 + $0x518] sm:$0xff] }
  0x3a   : > { %309 = vst [vmem:[%s1628_s26 + $0x278] sm:$0xff] %v308_v15  ;;  %311 = vst [vmem:[%s1628_s26 + $0x280] sm:$0xff] %v310_v16  ;;  %v318_v20 = vld [vmem:[%s1620_s25 + $0x540] sm:$0xff]  ;;  %v320_v21 = vld [vmem:[%s1620_s25 + $0x548] sm:$0xff] }
  0x3b   : > { %313 = vst [vmem:[%s1628_s26 + $0x288] sm:$0xff] %v312_v17  ;;  %315 = vst [vmem:[%s1628_s26 + $0x290] sm:$0xff] %v314_v18  ;;  %v322_v22 = vld [vmem:[%s1620_s25 + $0x550] sm:$0xff]  ;;  %v324_v23 = vld [vmem:[%s1620_s25 + $0x558] sm:$0xff] }
  0x3c   : > { %317 = vst [vmem:[%s1628_s26 + $0x298] sm:$0xff] %v316_v19  ;;  %319 = vst [vmem:[%s1628_s26 + $0x2a0] sm:$0xff] %v318_v20  ;;  %v326_v24 = vld [vmem:[%s1620_s25 + $0x580] sm:$0xff]  ;;  %v328_v25 = vld [vmem:[%s1620_s25 + $0x588] sm:$0xff] }
  0x3d   : > { %321 = vst [vmem:[%s1628_s26 + $0x2a8] sm:$0xff] %v320_v21  ;;  %323 = vst [vmem:[%s1628_s26 + $0x2b0] sm:$0xff] %v322_v22  ;;  %v330_v26 = vld [vmem:[%s1620_s25 + $0x590] sm:$0xff]  ;;  %v332_v27 = vld [vmem:[%s1620_s25 + $0x598] sm:$0xff] }
  0x3e   : > { %325 = vst [vmem:[%s1628_s26 + $0x2b8] sm:$0xff] %v324_v23  ;;  %327 = vst [vmem:[%s1628_s26 + $0x2c0] sm:$0xff] %v326_v24  ;;  %v334_v28 = vld [vmem:[%s1620_s25 + $0x5c0] sm:$0xff]  ;;  %v336_v29 = vld [vmem:[%s1620_s25 + $0x5c8] sm:$0xff] }
  0x3f   : > { %329 = vst [vmem:[%s1628_s26 + $0x2c8] sm:$0xff] %v328_v25  ;;  %331 = vst [vmem:[%s1628_s26 + $0x2d0] sm:$0xff] %v330_v26  ;;  %v338_v30 = vld [vmem:[%s1620_s25 + $0x5d0] sm:$0xff]  ;;  %v340_v31 = vld [vmem:[%s1620_s25 + $0x5d8] sm:$0xff] }
  0x40   : > { %333 = vst [vmem:[%s1628_s26 + $0x2d8] sm:$0xff] %v332_v27  ;;  %335 = vst [vmem:[%s1628_s26 + $0x2e0] sm:$0xff] %v334_v28  ;;  %v342_v32 = vld [vmem:[%s1620_s25 + $0x600] sm:$0xff]  ;;  %v344_v33 = vld [vmem:[%s1620_s25 + $0x608] sm:$0xff] }
  0x41   : > { %337 = vst [vmem:[%s1628_s26 + $0x2e8] sm:$0xff] %v336_v29  ;;  %339 = vst [vmem:[%s1628_s26 + $0x2f0] sm:$0xff] %v338_v30  ;;  %v346_v34 = vld [vmem:[%s1620_s25 + $0x610] sm:$0xff]  ;;  %v348_v35 = vld [vmem:[%s1620_s25 + $0x618] sm:$0xff] }
  0x42   : > { %341 = vst [vmem:[%s1628_s26 + $0x2f8] sm:$0xff] %v340_v31  ;;  %343 = vst [vmem:[%s1628_s26 + $0x300] sm:$0xff] %v342_v32  ;;  %v350_v36 = vld [vmem:[%s1620_s25 + $0x640] sm:$0xff]  ;;  %v352_v37 = vld [vmem:[%s1620_s25 + $0x648] sm:$0xff] }
  0x43   : > { %345 = vst [vmem:[%s1628_s26 + $0x308] sm:$0xff] %v344_v33  ;;  %347 = vst [vmem:[%s1628_s26 + $0x310] sm:$0xff] %v346_v34  ;;  %v354_v38 = vld [vmem:[%s1620_s25 + $0x650] sm:$0xff]  ;;  %v356_v39 = vld [vmem:[%s1620_s25 + $0x658] sm:$0xff] }
  0x44   : > { %349 = vst [vmem:[%s1628_s26 + $0x318] sm:$0xff] %v348_v35  ;;  %351 = vst [vmem:[%s1628_s26 + $0x320] sm:$0xff] %v350_v36  ;;  %v358_v40 = vld [vmem:[%s1620_s25 + $0x680] sm:$0xff]  ;;  %v360_v41 = vld [vmem:[%s1620_s25 + $0x688] sm:$0xff] }
  0x45   : > { %353 = vst [vmem:[%s1628_s26 + $0x328] sm:$0xff] %v352_v37  ;;  %355 = vst [vmem:[%s1628_s26 + $0x330] sm:$0xff] %v354_v38  ;;  %v362_v42 = vld [vmem:[%s1620_s25 + $0x690] sm:$0xff]  ;;  %v364_v43 = vld [vmem:[%s1620_s25 + $0x698] sm:$0xff] }
  0x46   : > { %357 = vst [vmem:[%s1628_s26 + $0x338] sm:$0xff] %v356_v39  ;;  %359 = vst [vmem:[%s1628_s26 + $0x340] sm:$0xff] %v358_v40 }
  0x47   : > { %361 = vst [vmem:[%s1628_s26 + $0x348] sm:$0xff] %v360_v41  ;;  %363 = vst [vmem:[%s1628_s26 + $0x350] sm:$0xff] %v362_v42 }
  0x48   : > { %365 = vst [vmem:[%s1628_s26 + $0x358] sm:$0xff] %v364_v43 }
  0x49 PF: > { %p1362_p5 = scmp.ge.s32.totalorder %s1563_s14, 1  ;;  %p370_p6 = scmp.lt.s32.totalorder %s1563_s14, 3 }
  0x4b   : > { %p371_p7 = pnand %p1362_p5, %p370_p6 }
  0x4c   : > { %s377_s27 = sand.u32 (!%p371_p7), 1, %s1555_s12   ;;  %v1846_v44 = vld.sshfl [vmem:[%s2001_s1] sm:$0x33 pattern:$0x76325410] (!%p371_p7)  ;;  %vm1073_vm0 = vcmask (!%p371_p7), 719872  }
  0x4d   : > { %374 = sbr.rel (%p371_p7) target bundleno = 428 (0x1ac), region = 51  ;;  %v1850_v45 = vcombine.high (!%p371_p7), %v1846_v44, %v1846_v44  ;;  %v517_v46 = vld [vmem:[%s2002_s2] sm:$0x7] (!%p371_p7)  ;;  %v1565_v47 = vmov (!%p371_p7), 0   ;;  %vm1077_vm1 = vcmask (!%p371_p7), 1043456   ;;  %s1363_s7 = sshll.u32 (!%p371_p7), %s1356_s15, 3 }
  0x4e   : > { %s1490_s30 = smul.u32 (!%p371_p7), 864, %s377_s27  ;;  %1516 = vset.pattern.permute.xlu0 (!%p371_p7), %v1565_v47  ;;  %p402_p8 = scmp.lt.s32.totalorder (!%p371_p7), %s1363_s7, 15 }
  0x4f   : > { %1479 = vmatprep.mubr.msk.bf16.mxu0 (!%p371_p7), %vm1073_vm0, %v1850_v45  ;;  %1481 = vmatprep.mubr.msk.bf16.mxu1 (!%p371_p7), %vm1073_vm0, %v1850_v45 }
  0x50   : > { %s1859_s6 = scalar_lea.vmem (!%p371_p7), [#allocation2], %s1490_s30  ;;  %520 = vperm.xlu0 (!%p371_p7), %1516, %v517_v46  }
  0x51   : > { %v409_v48 = vld [vmem:[%s1859_s6] sm:$0xff] (!%p371_p7)  ;;  %v410_v50 = vld [vmem:[%s1859_s6 + $0x8] sm:$0xff] (!%p371_p7) }
  0x52   : > { %v413_v49 = vld [vmem:[%s1859_s6 + $0x20] sm:$0xff] (!%p371_p7)  ;;  %v414_v52 = vld [vmem:[%s1859_s6 + $0x28] sm:$0xff] (!%p371_p7) }
  0x53   : > { %v1367_v51 = vcombine.high (!%p371_p7), %v409_v48, %v413_v49  ;;  %v1366_v53 = vcombine.low (!%p371_p7), %v409_v48, %v413_v49  ;;  %v417_v54 = vld [vmem:[%s1859_s6 + $0x40] sm:$0xff] (!%p371_p7)  ;;  %v1369_v56 = vcombine.high (!%p371_p7), %v410_v50, %v414_v52  ;;  %v1368_v57 = vcombine.low (!%p371_p7), %v410_v50, %v414_v52  ;;  %v418_v59 = vld [vmem:[%s1859_s6 + $0x48] sm:$0xff] (!%p371_p7) }
  0x54   : > { %v421_v55 = vld [vmem:[%s1859_s6 + $0x60] sm:$0xff]  ;;  %v422_v60 = vld [vmem:[%s1859_s6 + $0x68] sm:$0xff]  ;;  %s2008_s7 = smov (!%p402_p8, %s1363_s7), 15 }
  0x55   : > { %v1375_v58 = vcombine.high %v417_v54, %v421_v55  ;;  %v425_v61 = vld [vmem:[%s1859_s6 + $0x80] sm:$0xff]  ;;  %1102 = vmatprep.subr.bf16.mxu0 %v1367_v51  ;;  %v1377_v62 = vcombine.high %v418_v59, %v422_v60  ;;  %v426_v0 = vld [vmem:[%s1859_s6 + $0x88] sm:$0xff]  ;;  %1143 = vmatprep.subr.bf16.mxu1 %v1369_v56  ;;  %v1374_v2 = vcombine.low %v417_v54, %v421_v55  ;;  %s1364_s8 = sshll.u32 %s2008_s7, 2 }
  0x56   : > { %v429_v63 = vld [vmem:[%s1859_s6 + $0xa0] sm:$0xff]  ;;  %v430_v1 = vld [vmem:[%s1859_s6 + $0xa8] sm:$0xff]  ;;  %1103 = vmatpush1.bf16.msra.mxu0 %v1366_v53  ;;  %1144 = vmatpush1.bf16.msra.mxu1 %v1368_v57  ;;  %v1376_v3 = vcombine.low %v418_v59, %v422_v60  ;;  %s405_s11 = scalar_lea.vmem %s2003_s3, %s1364_s8 }
  0x57   : > { %1104 = vmatprep.subr.bf16.mxu0 %v1375_v58  ;;  %v1383_v4 = vcombine.high %v425_v61, %v429_v63  ;;  %1145 = vmatprep.subr.bf16.mxu1 %v1377_v62  ;;  %v1385_v5 = vcombine.high %v426_v0, %v430_v1  ;;  %v433_v6 = vld [vmem:[%s1859_s6 + $0xc0] sm:$0xff]  ;;  %v434_v8 = vld [vmem:[%s1859_s6 + $0xc8] sm:$0xff]  ;;  %v1382_v10 = vcombine.low %v425_v61, %v429_v63 }
  0x58   : > { %v437_v7 = vld [vmem:[%s1859_s6 + $0xe0] sm:$0xff]  ;;  %v438_v9 = vld [vmem:[%s1859_s6 + $0xe8] sm:$0xff]  ;;  %v1384_v11 = vcombine.low %v426_v0, %v430_v1 }
  0x59   : > { %v1391_v12 = vcombine.high %v433_v6, %v437_v7  ;;  %v1393_v13 = vcombine.high %v434_v8, %v438_v9  ;;  %v441_v14 = vld [vmem:[%s1859_s6 + $0x100] sm:$0xff]  ;;  %v442_v16 = vld [vmem:[%s1859_s6 + $0x108] sm:$0xff]  ;;  %v1390_v18 = vcombine.low %v433_v6, %v437_v7  ;;  %v1392_v19 = vcombine.low %v434_v8, %v438_v9 }
  0x5a   : > { %1105 = vmatpush1.bf16.msra.mxu0 %v1374_v2  ;;  %1146 = vmatpush1.bf16.msra.mxu1 %v1376_v3  ;;  %v445_v15 = vld [vmem:[%s1859_s6 + $0x120] sm:$0xff]  ;;  %v446_v17 = vld [vmem:[%s1859_s6 + $0x128] sm:$0xff] }
  0x5b   : > { %1106 = vmatprep.subr.bf16.mxu0 %v1383_v4  ;;  %1147 = vmatprep.subr.bf16.mxu1 %v1385_v5  ;;  %v1399_v20 = vcombine.high %v441_v14, %v445_v15  ;;  %v1401_v21 = vcombine.high %v442_v16, %v446_v17  ;;  %v449_v22 = vld [vmem:[%s1859_s6 + $0x140] sm:$0xff]  ;;  %v450_v24 = vld [vmem:[%s1859_s6 + $0x148] sm:$0xff]  ;;  %v1398_v26 = vcombine.low %v441_v14, %v445_v15 }
  0x5c   : > { %v453_v23 = vld [vmem:[%s1859_s6 + $0x160] sm:$0xff]  ;;  %v454_v25 = vld [vmem:[%s1859_s6 + $0x168] sm:$0xff]  ;;  %v1400_v27 = vcombine.low %v442_v16, %v446_v17 }
  0x5d   : > { %v1407_v28 = vcombine.high %v449_v22, %v453_v23  ;;  %v1409_v29 = vcombine.high %v450_v24, %v454_v25  ;;  %v457_v30 = vld [vmem:[%s1859_s6 + $0x180] sm:$0xff]  ;;  %v458_v32 = vld [vmem:[%s1859_s6 + $0x188] sm:$0xff]  ;;  %v1406_v34 = vcombine.low %v449_v22, %v453_v23  ;;  %v1408_v35 = vcombine.low %v450_v24, %v454_v25 }
  0x5e   : > { %1107 = vmatpush1.bf16.msra.mxu0 %v1382_v10  ;;  %1148 = vmatpush1.bf16.msra.mxu1 %v1384_v11  ;;  %v461_v31 = vld [vmem:[%s1859_s6 + $0x1a0] sm:$0xff]  ;;  %v462_v33 = vld [vmem:[%s1859_s6 + $0x1a8] sm:$0xff] }
  0x5f   : > { %1108 = vmatprep.subr.bf16.mxu0 %v1391_v12  ;;  %1149 = vmatprep.subr.bf16.mxu1 %v1393_v13  ;;  %v1415_v36 = vcombine.high %v457_v30, %v461_v31  ;;  %v1417_v37 = vcombine.high %v458_v32, %v462_v33  ;;  %v465_v38 = vld [vmem:[%s1859_s6 + $0x1c0] sm:$0xff]  ;;  %v466_v40 = vld [vmem:[%s1859_s6 + $0x1c8] sm:$0xff]  ;;  %v1414_v42 = vcombine.low %v457_v30, %v461_v31 }
  0x60   : > { %v469_v39 = vld [vmem:[%s1859_s6 + $0x1e0] sm:$0xff]  ;;  %v470_v41 = vld [vmem:[%s1859_s6 + $0x1e8] sm:$0xff]  ;;  %v1416_v43 = vcombine.low %v458_v32, %v462_v33  ;;  %v411_v32 = vld [vmem:[%s1859_s6 + $0x10] sm:$0xff] }
  0x61   : > { %v1423_v46 = vcombine.high %v465_v38, %v469_v39  ;;  %v1425_v47 = vcombine.high %v466_v40, %v470_v41  ;;  %v473_v48 = vld [vmem:[%s1859_s6 + $0x200] sm:$0xff]  ;;  %v474_v50 = vld [vmem:[%s1859_s6 + $0x208] sm:$0xff]  ;;  %v1422_v52 = vcombine.low %v465_v38, %v469_v39  ;;  %v1424_v53 = vcombine.low %v466_v40, %v470_v41  ;;  %v415_v33 = vld [vmem:[%s1859_s6 + $0x30] sm:$0xff] }
  0x62   : > { %1109 = vmatpush1.bf16.msra.mxu0 %v1390_v18  ;;  %1150 = vmatpush1.bf16.msra.mxu1 %v1392_v19  ;;  %v477_v49 = vld [vmem:[%s1859_s6 + $0x220] sm:$0xff]  ;;  %v478_v51 = vld [vmem:[%s1859_s6 + $0x228] sm:$0xff]  ;;  %v419_v40 = vld [vmem:[%s1859_s6 + $0x50] sm:$0xff] }
  0x63   : > { %1110 = vmatprep.subr.bf16.mxu0 %v1399_v20  ;;  %1151 = vmatprep.subr.bf16.mxu1 %v1401_v21  ;;  %v1431_v54 = vcombine.high %v473_v48, %v477_v49  ;;  %v1433_v55 = vcombine.high %v474_v50, %v478_v51  ;;  %v481_v56 = vld [vmem:[%s1859_s6 + $0x240] sm:$0xff]  ;;  %v482_v58 = vld [vmem:[%s1859_s6 + $0x248] sm:$0xff]  ;;  %v1430_v60 = vcombine.low %v473_v48, %v477_v49  ;;  %v423_v41 = vld [vmem:[%s1859_s6 + $0x70] sm:$0xff] }
  0x64   : > { %v485_v57 = vld [vmem:[%s1859_s6 + $0x260] sm:$0xff]  ;;  %v486_v59 = vld [vmem:[%s1859_s6 + $0x268] sm:$0xff]  ;;  %v1432_v61 = vcombine.low %v474_v50, %v478_v51  ;;  %v1379_v48 = vcombine.high %v419_v40, %v423_v41  ;;  %v427_v50 = vld [vmem:[%s1859_s6 + $0x90] sm:$0xff] }
  0x65   : > { %v1439_v62 = vcombine.high %v481_v56, %v485_v57  ;;  %v1441_v63 = vcombine.high %v482_v58, %v486_v59  ;;  %v489_v0 = vld [vmem:[%s1859_s6 + $0x280] sm:$0xff]  ;;  %v490_v2 = vld [vmem:[%s1859_s6 + $0x288] sm:$0xff]  ;;  %v1438_v4 = vcombine.low %v481_v56, %v485_v57  ;;  %v1440_v5 = vcombine.low %v482_v58, %v486_v59  ;;  %v431_v51 = vld [vmem:[%s1859_s6 + $0xb0] sm:$0xff] }
  0x66   : > { %1111 = vmatpush1.bf16.msra.mxu0 %v1398_v26  ;;  %1152 = vmatpush1.bf16.msra.mxu1 %v1400_v27  ;;  %v493_v1 = vld [vmem:[%s1859_s6 + $0x2a0] sm:$0xff]  ;;  %v494_v3 = vld [vmem:[%s1859_s6 + $0x2a8] sm:$0xff]  ;;  %v1387_v56 = vcombine.high %v427_v50, %v431_v51  ;;  %v435_v58 = vld [vmem:[%s1859_s6 + $0xd0] sm:$0xff] }
  0x67   : > { %1112 = vmatprep.subr.bf16.mxu0 %v1407_v28  ;;  %1153 = vmatprep.subr.bf16.mxu1 %v1409_v29  ;;  %v1447_v6 = vcombine.high %v489_v0, %v493_v1  ;;  %v1449_v7 = vcombine.high %v490_v2, %v494_v3  ;;  %v497_v8 = vld [vmem:[%s1859_s6 + $0x2c0] sm:$0xff]  ;;  %v498_v10 = vld [vmem:[%s1859_s6 + $0x2c8] sm:$0xff]  ;;  %v1446_v12 = vcombine.low %v489_v0, %v493_v1  ;;  %v439_v59 = vld [vmem:[%s1859_s6 + $0xf0] sm:$0xff] }
  0x68   : > { %v501_v9 = vld [vmem:[%s1859_s6 + $0x2e0] sm:$0xff]  ;;  %v502_v11 = vld [vmem:[%s1859_s6 + $0x2e8] sm:$0xff]  ;;  %v1448_v13 = vcombine.low %v490_v2, %v494_v3  ;;  %v1395_v0 = vcombine.high %v435_v58, %v439_v59  ;;  %v443_v2 = vld [vmem:[%s1859_s6 + $0x110] sm:$0xff] }
  0x69   : > { %v1455_v14 = vcombine.high %v497_v8, %v501_v9  ;;  %v1457_v15 = vcombine.high %v498_v10, %v502_v11  ;;  %v505_v16 = vld [vmem:[%s1859_s6 + $0x300] sm:$0xff]  ;;  %v506_v18 = vld [vmem:[%s1859_s6 + $0x308] sm:$0xff]  ;;  %v1454_v20 = vcombine.low %v497_v8, %v501_v9  ;;  %v1456_v21 = vcombine.low %v498_v10, %v502_v11  ;;  %v447_v3 = vld [vmem:[%s1859_s6 + $0x130] sm:$0xff] }
  0x6a   : > { %1113 = vmatpush1.bf16.msra.mxu0 %v1406_v34  ;;  %1154 = vmatpush1.bf16.msra.mxu1 %v1408_v35  ;;  %v509_v17 = vld [vmem:[%s1859_s6 + $0x320] sm:$0xff]  ;;  %v510_v19 = vld [vmem:[%s1859_s6 + $0x328] sm:$0xff]  ;;  %v412_v34 = vld [vmem:[%s1859_s6 + $0x18] sm:$0xff] }
  0x6b   : > { %1114 = vmatprep.subr.bf16.mxu0 %v1415_v36  ;;  %1155 = vmatprep.subr.bf16.mxu1 %v1417_v37  ;;  %v1463_v22 = vcombine.high %v505_v16, %v509_v17  ;;  %v1465_v23 = vcombine.high %v506_v18, %v510_v19  ;;  %v513_v24 = vld [vmem:[%s1859_s6 + $0x340] sm:$0xff]  ;;  %v514_v25 = vld [vmem:[%s1859_s6 + $0x348] sm:$0xff]  ;;  %v1462_v26 = vcombine.low %v505_v16, %v509_v17  ;;  %v416_v35 = vld [vmem:[%s1859_s6 + $0x38] sm:$0xff] }
  0x6c   : > { %v1464_v27 = vcombine.low %v506_v18, %v510_v19  ;;  %v1471_v28 = vcombine.high %v513_v24, %v513_v24  ;;  %v1470_v29 = vcombine.low %v513_v24, %v513_v24  ;;  %v1473_v30 = vcombine.high %v514_v25, %v514_v25  ;;  %v451_v9 = vld [vmem:[%s1859_s6 + $0x150] sm:$0xff]  ;;  %v452_v11 = vld [vmem:[%s1859_s6 + $0x158] sm:$0xff] }
  0x6d   : > { %v1472_v31 = vcombine.low %v514_v25, %v514_v25  ;;  %v1371_v37 = vcombine.high %v411_v32, %v415_v33  ;;  %v1373_v39 = vcombine.high %v412_v34, %v416_v35  ;;  %v455_v10 = vld [vmem:[%s1859_s6 + $0x170] sm:$0xff]  ;;  %v460_v19 = vld [vmem:[%s1859_s6 + $0x198] sm:$0xff] }
  0x6e   : > { %1115 = vmatpush1.bf16.msra.mxu0 %v1414_v42  ;;  %1156 = vmatpush1.bf16.msra.mxu1 %v1416_v43  ;;  %v1079_v36 = vsel %vm1077_vm1, %v1470_v29, 0  ;;  %v420_v42 = vld [vmem:[%s1859_s6 + $0x58] sm:$0xff]  ;;  %v459_v17 = vld [vmem:[%s1859_s6 + $0x190] sm:$0xff] }
  0x6f   : > { %1116 = vmatprep.subr.bf16.mxu0 %v1423_v46  ;;  %1157 = vmatprep.subr.bf16.mxu1 %v1425_v47  ;;  %v1085_v38 = vsel %vm1077_vm1, %v1472_v31, 0  ;;  %v424_v43 = vld [vmem:[%s1859_s6 + $0x78] sm:$0xff]  ;;  %v1370_v46 = vcombine.low %v411_v32, %v415_v33  ;;  %v1372_v47 = vcombine.low %v412_v34, %v416_v35  ;;  %v463_v18 = vld [vmem:[%s1859_s6 + $0x1b0] sm:$0xff] }
  0x70   : > { %v1381_v49 = vcombine.high %v420_v42, %v424_v43  ;;  %v467_v25 = vld [vmem:[%s1859_s6 + $0x1d0] sm:$0xff]  ;;  %v1418_v29 = vcombine.low %v459_v17, %v463_v18  ;;  %v476_v35 = vld [vmem:[%s1859_s6 + $0x218] sm:$0xff] }
  0x71   : > { %v475_v33 = vld [vmem:[%s1859_s6 + $0x210] sm:$0xff] }
  0x72   : > { %1117 = vmatpush1.bf16.msra.mxu0 %v1422_v52  ;;  %1158 = vmatpush1.bf16.msra.mxu1 %v1424_v53  ;;  %v428_v52 = vld [vmem:[%s1859_s6 + $0x98] sm:$0xff]  ;;  %v479_v34 = vld [vmem:[%s1859_s6 + $0x230] sm:$0xff] }
  0x73   : > { %1118 = vmatprep.subr.bf16.mxu0 %v1431_v54  ;;  %1159 = vmatprep.subr.bf16.mxu1 %v1433_v55  ;;  %v432_v53 = vld [vmem:[%s1859_s6 + $0xb8] sm:$0xff]  ;;  %v1378_v54 = vcombine.low %v419_v40, %v423_v41  ;;  %v1380_v55 = vcombine.low %v420_v42, %v424_v43  ;;  %v483_v41 = vld [vmem:[%s1859_s6 + $0x250] sm:$0xff] }
  0x74   : > { %v1389_v57 = vcombine.high %v428_v52, %v432_v53  ;;  %v487_v42 = vld [vmem:[%s1859_s6 + $0x270] sm:$0xff]  ;;  %v484_v43 = vld [vmem:[%s1859_s6 + $0x258] sm:$0xff] }
  0x76   : > { %1119 = vmatpush1.bf16.msra.mxu0 %v1430_v60  ;;  %1160 = vmatpush1.bf16.msra.mxu1 %v1432_v61  ;;  %v436_v60 = vld [vmem:[%s1859_s6 + $0xd8] sm:$0xff] }
  0x77   : > { %1120 = vmatprep.subr.bf16.mxu0 %v1439_v62  ;;  %1161 = vmatprep.subr.bf16.mxu1 %v1441_v63  ;;  %v440_v61 = vld [vmem:[%s1859_s6 + $0xf8] sm:$0xff]  ;;  %v1386_v62 = vcombine.low %v427_v50, %v431_v51  ;;  %v1388_v63 = vcombine.low %v428_v52, %v432_v53  ;;  %v491_v51 = vld [vmem:[%s1859_s6 + $0x290] sm:$0xff] }
  0x78   : > { %v1397_v1 = vcombine.high %v436_v60, %v440_v61  ;;  %v495_v52 = vld [vmem:[%s1859_s6 + $0x2b0] sm:$0xff]  ;;  %v492_v53 = vld [vmem:[%s1859_s6 + $0x298] sm:$0xff] }
  0x7a   : > { %1121 = vmatpush1.bf16.msra.mxu0 %v1438_v4  ;;  %1162 = vmatpush1.bf16.msra.mxu1 %v1440_v5  ;;  %v444_v4 = vld [vmem:[%s1859_s6 + $0x118] sm:$0xff] }
  0x7b   : > { %1122 = vmatprep.subr.bf16.mxu0 %v1447_v6  ;;  %1163 = vmatprep.subr.bf16.mxu1 %v1449_v7  ;;  %v448_v5 = vld [vmem:[%s1859_s6 + $0x138] sm:$0xff]  ;;  %v1394_v6 = vcombine.low %v435_v58, %v439_v59  ;;  %v1403_v7 = vcombine.high %v443_v2, %v447_v3  ;;  %v499_v59 = vld [vmem:[%s1859_s6 + $0x2d0] sm:$0xff] }
  0x7c   : > { %v1405_v8 = vcombine.high %v444_v4, %v448_v5 }
  0x7e   : > { %1123 = vmatpush1.bf16.msra.mxu0 %v1446_v12  ;;  %1164 = vmatpush1.bf16.msra.mxu1 %v1448_v13  ;;  %v456_v12 = vld [vmem:[%s1859_s6 + $0x178] sm:$0xff]  ;;  %v1402_v13 = vcombine.low %v443_v2, %v447_v3  ;;  %v507_v3 = vld [vmem:[%s1859_s6 + $0x310] sm:$0xff] }
  0x7f   : > { %1124 = vmatprep.subr.bf16.mxu0 %v1455_v14  ;;  %1165 = vmatprep.subr.bf16.mxu1 %v1457_v15  ;;  %v1404_v14 = vcombine.low %v444_v4, %v448_v5  ;;  %v1411_v15 = vcombine.high %v451_v9, %v455_v10  ;;  %v1413_v16 = vcombine.high %v452_v11, %v456_v12  ;;  %v511_v4 = vld [vmem:[%s1859_s6 + $0x330] sm:$0xff]  ;;  %v508_v5 = vld [vmem:[%s1859_s6 + $0x318] sm:$0xff] }
  0x82   : > { %1125 = vmatpush1.bf16.msra.mxu0 %v1454_v20  ;;  %1166 = vmatpush1.bf16.msra.mxu1 %v1456_v21  ;;  %v464_v20 = vld [vmem:[%s1859_s6 + $0x1b8] sm:$0xff]  ;;  %v1410_v21 = vcombine.low %v451_v9, %v455_v10  ;;  %v515_v10 = vld [vmem:[%s1859_s6 + $0x350] sm:$0xff] }
  0x83   : > { %1126 = vmatprep.subr.bf16.mxu0 %v1463_v22  ;;  %1167 = vmatprep.subr.bf16.mxu1 %v1465_v23  ;;  %v1412_v22 = vcombine.low %v452_v11, %v456_v12  ;;  %v1419_v23 = vcombine.high %v459_v17, %v463_v18  ;;  %v1421_v24 = vcombine.high %v460_v19, %v464_v20  ;;  %v516_v11 = vld [vmem:[%s1859_s6 + $0x358] sm:$0xff] }
  0x84   : > { %v1466_v12 = vcombine.low %v507_v3, %v511_v4  ;;  %v1476_v17 = vcombine.low %v516_v11, %v516_v11 }
  0x86   : > { %1127 = vmatpush1.bf16.msra.mxu0 %v1462_v26  ;;  %1168 = vmatpush1.bf16.msra.mxu1 %v1464_v27  ;;  %v471_v26 = vld [vmem:[%s1859_s6 + $0x1f0] sm:$0xff]  ;;  %v468_v27 = vld [vmem:[%s1859_s6 + $0x1d8] sm:$0xff] }
  0x87   : > { %1478 = vmatprep.subr.msk.bf16.mxu0 %vm1077_vm1, %v1471_v28  ;;  %1480 = vmatprep.subr.msk.bf16.mxu1 %vm1077_vm1, %v1473_v30  ;;  %v472_v28 = vld [vmem:[%s1859_s6 + $0x1f8] sm:$0xff]  ;;  %v1420_v30 = vcombine.low %v460_v19, %v464_v20  ;;  %v1427_v31 = vcombine.high %v467_v25, %v471_v26  ;;  %v1097_v19 = vsel %vm1077_vm1, %v1476_v17, 0 }
  0x88   : > { %v1429_v32 = vcombine.high %v468_v27, %v472_v28 }
  0x8a   : > { %1129 = vmatpush1.bf16.msra.mxu0 %v1079_v36  ;;  %1170 = vmatpush1.bf16.msra.mxu1 %v1085_v38  ;;  %v480_v36 = vld [vmem:[%s1859_s6 + $0x238] sm:$0xff]  ;;  %v1428_v38 = vcombine.low %v468_v27, %v472_v28 }
  0x8b   : > { %1184 = vmatprep.subr.bf16.mxu0 %v1371_v37  ;;  %1225 = vmatprep.subr.bf16.mxu1 %v1373_v39  ;;  %v1426_v37 = vcombine.low %v467_v25, %v471_v26  ;;  %v1435_v39 = vcombine.high %v475_v33, %v479_v34  ;;  %v1437_v40 = vcombine.high %v476_v35, %v480_v36 }
  0x8d   : > { %1135 = vmatmul.mubr.bf16.vlgmr.msra.gmra.mrb[0].mxu0 %v1846_v44  ;;  %1176 = vmatmul.mubr.bf16.vlgmr.msra.gmra.mrb[0].mxu1 %v1846_v44 }
  0x8e   : > { %1185 = vmatpush1.bf16.msra.mxu0 %v1370_v46  ;;  %1226 = vmatpush1.bf16.msra.mxu1 %v1372_v47  ;;  %v488_v46 = vld [vmem:[%s1859_s6 + $0x278] sm:$0xff]  ;;  %v1434_v47 = vcombine.low %v475_v33, %v479_v34 }
  0x8f   : > { %1186 = vmatprep.subr.bf16.mxu0 %v1379_v48  ;;  %1227 = vmatprep.subr.bf16.mxu1 %v1381_v49  ;;  %v1436_v48 = vcombine.low %v476_v35, %v480_v36  ;;  %v1443_v49 = vcombine.high %v483_v41, %v487_v42  ;;  %v1445_v50 = vcombine.high %v484_v43, %v488_v46 }
  0x90   : > { %1483 = vmatprep.mubr.msk.bf16.mxu0 %vm1073_vm0, %v1850_v45  ;;  %1485 = vmatprep.mubr.msk.bf16.mxu1 %vm1073_vm0, %v1850_v45  ;;  %v1396_v45 = vcombine.low %v436_v60, %v440_v61  ;;  %v503_v60 = vld [vmem:[%s1859_s6 + $0x2f0] sm:$0xff]  ;;  %v500_v61 = vld [vmem:[%s1859_s6 + $0x2d8] sm:$0xff] }
  0x92   : > { %1187 = vmatpush1.bf16.msra.mxu0 %v1378_v54  ;;  %1228 = vmatpush1.bf16.msra.mxu1 %v1380_v55  ;;  %v496_v54 = vld [vmem:[%s1859_s6 + $0x2b8] sm:$0xff]  ;;  %v1442_v55 = vcombine.low %v483_v41, %v487_v42 }
  0x93   : > { %1188 = vmatprep.subr.bf16.mxu0 %v1387_v56  ;;  %1229 = vmatprep.subr.bf16.mxu1 %v1389_v57  ;;  %v1444_v56 = vcombine.low %v484_v43, %v488_v46  ;;  %v1451_v57 = vcombine.high %v491_v51, %v495_v52  ;;  %v1453_v58 = vcombine.high %v492_v53, %v496_v54 }
  0x96   : > { %1189 = vmatpush1.bf16.msra.mxu0 %v1386_v62  ;;  %1230 = vmatpush1.bf16.msra.mxu1 %v1388_v63  ;;  %v504_v62 = vld [vmem:[%s1859_s6 + $0x2f8] sm:$0xff]  ;;  %v1450_v63 = vcombine.low %v491_v51, %v495_v52 }
  0x97   : > { %1190 = vmatprep.subr.bf16.mxu0 %v1395_v0  ;;  %1231 = vmatprep.subr.bf16.mxu1 %v1397_v1  ;;  %v1452_v0 = vcombine.low %v492_v53, %v496_v54  ;;  %v1459_v1 = vcombine.high %v499_v59, %v503_v60  ;;  %v1461_v2 = vcombine.high %v500_v61, %v504_v62 }
  0x9a   : > { %1191 = vmatpush1.bf16.msra.mxu0 %v1394_v6  ;;  %1232 = vmatpush1.bf16.msra.mxu1 %v1396_v45  ;;  %v512_v6 = vld [vmem:[%s1859_s6 + $0x338] sm:$0xff]  ;;  %v1458_v45 = vcombine.low %v499_v59, %v503_v60 }
  0x9b   : > { %1192 = vmatprep.subr.bf16.mxu0 %v1403_v7  ;;  %1233 = vmatprep.subr.bf16.mxu1 %v1405_v8  ;;  %v1460_v7 = vcombine.low %v500_v61, %v504_v62  ;;  %v1467_v8 = vcombine.high %v507_v3, %v511_v4  ;;  %v1469_v9 = vcombine.high %v508_v5, %v512_v6 }
  0x9e   : > { %1193 = vmatpush1.bf16.msra.mxu0 %v1402_v13  ;;  %1234 = vmatpush1.bf16.msra.mxu1 %v1404_v14  ;;  %v1468_v13 = vcombine.low %v508_v5, %v512_v6  ;;  %v1475_v14 = vcombine.high %v515_v10, %v515_v10 }
  0x9f   : > { %1194 = vmatprep.subr.bf16.mxu0 %v1411_v15  ;;  %1235 = vmatprep.subr.bf16.mxu1 %v1413_v16  ;;  %v1474_v15 = vcombine.low %v515_v10, %v515_v10  ;;  %v1477_v16 = vcombine.high %v516_v11, %v516_v11 }
  0xa1   : > { %v1091_v18 = vsel %vm1077_vm1, %v1474_v15, 0 }
  0xa2   : > { %1195 = vmatpush1.bf16.msra.mxu0 %v1410_v21  ;;  %1236 = vmatpush1.bf16.msra.mxu1 %v1412_v22 }
  0xa3   : > { %1196 = vmatprep.subr.bf16.mxu0 %v1419_v23  ;;  %1237 = vmatprep.subr.bf16.mxu1 %v1421_v24 }
  0xa6   : > { %1197 = vmatpush1.bf16.msra.mxu0 %v1418_v29  ;;  %1238 = vmatpush1.bf16.msra.mxu1 %v1420_v30 }
  0xa7   : > { %1198 = vmatprep.subr.bf16.mxu0 %v1427_v31  ;;  %1239 = vmatprep.subr.bf16.mxu1 %v1429_v32 }
  0xaa   : > { %1199 = vmatpush1.bf16.msra.mxu0 %v1426_v37  ;;  %1240 = vmatpush1.bf16.msra.mxu1 %v1428_v38 }
  0xab   : > { %1200 = vmatprep.subr.bf16.mxu0 %v1435_v39  ;;  %1241 = vmatprep.subr.bf16.mxu1 %v1437_v40 }
  0xae   : > { %1201 = vmatpush1.bf16.msra.mxu0 %v1434_v47  ;;  %1242 = vmatpush1.bf16.msra.mxu1 %v1436_v48 }
  0xaf   : > { %1202 = vmatprep.subr.bf16.mxu0 %v1443_v49  ;;  %1243 = vmatprep.subr.bf16.mxu1 %v1445_v50 }
  0xb2   : > { %1203 = vmatpush1.bf16.msra.mxu0 %v1442_v55  ;;  %1244 = vmatpush1.bf16.msra.mxu1 %v1444_v56 }
  0xb3   : > { %1204 = vmatprep.subr.bf16.mxu0 %v1451_v57  ;;  %1245 = vmatprep.subr.bf16.mxu1 %v1453_v58 }
  0xb6   : > { %1205 = vmatpush1.bf16.msra.mxu0 %v1450_v63  ;;  %1246 = vmatpush1.bf16.msra.mxu1 %v1452_v0 }
  0xb7   : > { %1206 = vmatprep.subr.bf16.mxu0 %v1459_v1  ;;  %1247 = vmatprep.subr.bf16.mxu1 %v1461_v2 }
  0xba   : > { %1207 = vmatpush1.bf16.msra.mxu0 %v1458_v45  ;;  %1248 = vmatpush1.bf16.msra.mxu1 %v1460_v7 }
  0xbb   : > { %1208 = vmatprep.subr.bf16.mxu0 %v1467_v8  ;;  %1249 = vmatprep.subr.bf16.mxu1 %v1469_v9 }
  0xbe   : > { %1209 = vmatpush1.bf16.msra.mxu0 %v1466_v12  ;;  %1250 = vmatpush1.bf16.msra.mxu1 %v1468_v13 }
  0xbf   : > { %1482 = vmatprep.subr.msk.bf16.mxu0 %vm1077_vm1, %v1475_v14  ;;  %1484 = vmatprep.subr.msk.bf16.mxu1 %vm1077_vm1, %v1477_v16 }
  0xc2   : > { %1211 = vmatpush1.bf16.msra.mxu0 %v1091_v18  ;;  %1252 = vmatpush1.bf16.msra.mxu1 %v1097_v19 }
  0xc5   : > { %1217 = vmatmul.mubr.bf16.vlgmr.msra.gmra.mrb[4].mxu0 %v1846_v44  ;;  %1258 = vmatmul.mubr.bf16.vlgmr.msra.gmra.mrb[4].mxu1 %v1846_v44 }
  0xcf   : > { %v521_v20 = vpop.permute.xlu0 %520 }
 0x160   : > { %v1136_v21 = vpop.f32.mrb[0].mxu0  ;;  %v1177_v22 = vpop.f32.mrb[0].mxu1 }
 0x161   : > { %v1137_v23 = vadd.f32 %v1136_v21, %v521_v20  ;;  %v1138_v24 = vpop.f32.mrb[1].mxu0  ;;  %v1178_v25 = vadd.f32 %v1177_v22, %v521_v20  ;;  %v1179_v27 = vpop.f32.mrb[1].mxu1 }
 0x162   : > { %v1139_v26 = vadd.f32 %v1138_v24, %v521_v20  ;;  %v1140_v28 = vpop.f32.mrb[2].mxu0  ;;  %v1180_v29 = vadd.f32 %v1179_v27, %v521_v20  ;;  %v1181_v30 = vpop.f32.mrb[2].mxu1 }
 0x163   : > { %1525 = vtanh.f32 %v1137_v23  ;;  %v1141_v31 = vpop.f32.mrb[3].mxu0  ;;  %v1182_v32 = vpop.f32.mrb[3].mxu1 }
 0x164   : > { %1527 = vtanh.f32 %v1178_v25 }
 0x165   : > { %1529 = vtanh.f32 %v1139_v26 }
 0x166   : > { %1531 = vtanh.f32 %v1180_v29 }
 0x16d   : > { %v1526_v44 = vpop.eup %1525 }
 0x16e   : > { %v1528_v33 = vpop.eup %1527 }
 0x16f   : > { %v1530_v34 = vpop.eup %1529 }
 0x170   : > { %v1532_v35 = vpop.eup %1531  ;;  %v1282_v36 = vcombine.low %v1526_v44, %v1530_v34 }
 0x171   : > { %v1283_v37 = vcombine.low %v1528_v33, %v1532_v35 }
 0x172   : > { %1290 = vst [vmem:[%s405_s11] sm:$0x77] %v1282_v36 }
 0x173   : > { %1291 = vst [vmem:[%s405_s11 + $0x8] sm:$0x77] %v1283_v37 }
 0x198   : > { %v1218_v38 = vpop.f32.mrb[4].mxu0  ;;  %v1259_v40 = vpop.f32.mrb[4].mxu1 }
 0x199   : > { %v1219_v39 = vadd.f32 %v1218_v38, %v521_v20  ;;  %v1220_v41 = vpop.f32.mrb[5].mxu0  ;;  %v1260_v42 = vadd.f32 %v1259_v40, %v521_v20  ;;  %v1261_v46 = vpop.f32.mrb[5].mxu1 }
 0x19a   : > { %v1221_v43 = vadd.f32 %v1220_v41, %v521_v20  ;;  %v1222_v47 = vpop.f32.mrb[6].mxu0  ;;  %v1262_v48 = vadd.f32 %v1261_v46, %v521_v20  ;;  %v1263_v49 = vpop.f32.mrb[6].mxu1 }
 0x19b   : > { %1533 = vtanh.f32 %v1219_v39  ;;  %v1223_v50 = vpop.f32.mrb[7].mxu0  ;;  %v1264_v51 = vpop.f32.mrb[7].mxu1 }
 0x19c   : > { %1535 = vtanh.f32 %v1260_v42 }
 0x19d   : > { %1537 = vtanh.f32 %v1221_v43 }
 0x19e   : > { %1539 = vtanh.f32 %v1262_v48 }
 0x1a5   : > { %v1534_v52 = vpop.eup %1533 }
 0x1a6   : > { %v1536_v53 = vpop.eup %1535 }
 0x1a7   : > { %v1538_v54 = vpop.eup %1537 }
 0x1a8   : > { %v1540_v55 = vpop.eup %1539  ;;  %v1284_v56 = vcombine.low %v1534_v52, %v1538_v54 }
 0x1a9   : > { %v1285_v57 = vcombine.low %v1536_v53, %v1540_v55 }
 0x1aa   : > { %1292 = vst [vmem:[%s405_s11 + $0x10] sm:$0x77] %v1284_v56 }
 0x1ab   : > { %1293 = vst [vmem:[%s405_s11 + $0x18] sm:$0x77] %v1285_v57 }
 0x1ac PF: > { %p10_p9 = scmp.ge.s32.totalorder %s1603_s16, 4   ;;  %s2004_s12 = smov %s1559_s13 }
 0x1ad   : > { %s2005_s13 = smov %s1612_s19  ;;  %s2006_s14 = smov %s1603_s16 }
 0x1ae   :  { %12 = sbr.rel (!%p10_p9) target bundleno = 2 (0x2), region = 90 }

</bundles_post_ra>
